<compile_context>
chip_gen: v7x
topology: tpu7x:2x2x1
jax: 0.10.0
libtpu: 0.0.40
codegen_flags: <defaults>
</compile_context>

<pallas_src>
import functools

import jax
import jax.numpy as jnp
from jax.experimental import pallas as pl
from jax.experimental.pallas import tpu as pltpu


def _silu(x):
    # SiLU = x * sigmoid(x). exp and the approximate reciprocal both run on the
    # EUP slot, keeping VALU slots free on the activated (GhostConv1) path.
    return x * pl.reciprocal(1.0 + jnp.exp(-x), approx=True)


def _conv1x1(w, parts):
    """[Cout, Cin] @ concat(parts, axis=0) -> [Cout, HW], f32 accumulation.

    Wide channels: ONE full-K bf16 MXU matmul (the in-register sublane concat is
    cheap and doubles contraction depth vs. two half-K matmuls).
    Tiny channels (this test case): VPU broadcast-FMA, never materializing the
    concat and never touching the MXU.
    """
    cout, cin = w.shape
    if cin >= 32 and cout >= 8:
        h = parts[0] if len(parts) == 1 else jnp.concatenate(parts, axis=0)
        return jnp.dot(w.astype(jnp.bfloat16), h.astype(jnp.bfloat16),
                       preferred_element_type=jnp.float32)
    acc = None
    ci = 0
    for p in parts:
        for r in range(p.shape[0]):
            term = w[:, ci:ci + 1] * p[r:r + 1, :]
            acc = term if acc is None else acc + term
            ci += 1
    return acc


def _dw5x5_flat(y, d_ref, wmask_ref, buf_ref, *, W, HW, PAD):
    """Depthwise 5x5, stride 1, SAME pad, on the flattened [C, H*W] layout.

    y is stored once into the interior of a zero-padded VMEM scratch row.  The
    five row shifts (dh) are window loads from that scratch (out-of-image rows
    land in the zero padding); the four column shifts (dw != 0) are pltpu.roll
    of the loaded window along the lane axis.  The lanes that wrap around in the
    roll are exactly the columns wmask zeroes, so the result matches SAME
    zero-padding semantics.
    """
    c = y.shape[0]
    zpad = jnp.zeros((c, PAD), jnp.float32)
    buf_ref[:, :PAD] = zpad                   # only the pads are zeroed; the
    buf_ref[:, PAD + HW:] = zpad              # interior is overwritten below.
    buf_ref[:, PAD:PAD + HW] = y              # lane-aligned (PAD % 128 == 0)
    acc = jnp.zeros((c, HW), jnp.float32)
    for dh in range(-2, 3):
        base = buf_ref[:, PAD + dh * W:PAD + dh * W + HW]   # one load per dh
        for dw in range(-2, 3):
            t = (dh + 2) * 5 + (dw + 2)       # PyTorch [c, 1, 5, 5] tap index
            if dw == 0:
                tap = base
            else:
                # roll by (-dw mod HW): tap[i] = base[i + dw]; wrapped lanes are
                # killed by the same per-column validity mask as before.
                tap = (pltpu.roll(base, (HW - dw) % HW, 1)
                       * wmask_ref[dw + 2:dw + 3, :])
            acc = acc + tap * d_ref[:, t:t + 1]
    return acc


def _ghost_bottleneck_kernel(
        x_ref,                              # (1, C, HW)
        w1_ref, s1_ref, b1_ref,             # GhostConv1.cv1: (cg1, C), (cg1,1), (cg1,1)
        d1_ref, t1_ref, u1_ref,             # GhostConv1.cv2: (cg1, 25), (cg1,1), (cg1,1)
        w2_ref, s2_ref, b2_ref,             # GhostConv2.cv1: (cg2, 2*cg1), (cg2,1), (cg2,1)
        d2_ref, t2_ref, u2_ref,             # GhostConv2.cv2: (cg2, 25), (cg2,1), (cg2,1)
        wmask_ref,                          # (5, HW) column-validity masks, dw=-2..2
        o_ref,                              # (1, C, HW)
        buf1_ref, buf2_ref,                 # VMEM scratch (cg1, HWP), (cg2, HWP)
        *, W, HW, PAD, cg1, cg2):
    x = x_ref[0].astype(jnp.float32)                         # (C, HW)

    # ---- GhostConv(c1, c_), act=True ----
    y1 = _silu(_conv1x1(w1_ref[...], [x]) * s1_ref[...] + b1_ref[...])
    z1 = _dw5x5_flat(y1, d1_ref, wmask_ref, buf1_ref, W=W, HW=HW, PAD=PAD)
    z1 = _silu(z1 * t1_ref[...] + u1_ref[...])

    # ---- GhostConv(c_, c2), act=False ----
    # concat([y1, z1]) never hits HBM; on the MXU path it is a single full-K dot.
    y2 = _conv1x1(w2_ref[...], [y1, z1]) * s2_ref[...] + b2_ref[...]
    z2 = _dw5x5_flat(y2, d2_ref, wmask_ref, buf2_ref, W=W, HW=HW, PAD=PAD)
    z2 = z2 * t2_ref[...] + u2_ref[...]

    # ---- out = concat([y2, z2], ch) + x ----
    # Two half-block stores; for C >= 16 (every real YOLO layer) cg2 % 8 == 0 so
    # these are already full, unmasked sublane-tile stores.
    o_ref[0, :cg2, :] = (y2 + x[:cg2, :]).astype(o_ref.dtype)
    o_ref[0, cg2:, :] = (z2 + x[cg2:, :]).astype(o_ref.dtype)


def _bcast_spec(shape):
    zeros = (0,) * len(shape)
    return pl.BlockSpec(shape, lambda n, _z=zeros: _z)


def _round_up(v, m):
    return (v + m - 1) // m * m


@jax.jit
def ghost_bottleneck(x_nchw, params):
    """GhostBottleneck(c, c, k=3, s=1) forward. x: [N, C, H, W] (PyTorch layout)."""
    N, C, H, W = x_nchw.shape
    HW = H * W
    PAD = _round_up(2 * W + 2, 128)        # covers max |dh*W + dw|, lane-aligned
    HWP = HW + 2 * PAD
    cg1 = C // 4                           # GhostConv1 primary width (c_ // 2)
    cg2 = C // 2                           # GhostConv2 primary width (== c_)

    x2 = x_nchw.reshape(N, C, HW)          # free bitcast: lane-dense H*W axis

    # Column-validity masks for horizontal taps (shape-only; constant-folded).
    col = jnp.arange(HW, dtype=jnp.int32) % W
    wmask = jnp.stack(
        [((col + dw >= 0) & (col + dw < W)).astype(jnp.float32) for dw in range(-2, 3)],
        axis=0)

    f32 = jnp.float32
    args = (
        x2,
        params['g1_pw_w'],
        params['g1_pw_scale'].reshape(cg1, 1).astype(f32),
        params['g1_pw_bias'].reshape(cg1, 1).astype(f32),
        params['g1_dw_w'],
        params['g1_dw_scale'].reshape(cg1, 1).astype(f32),
        params['g1_dw_bias'].reshape(cg1, 1).astype(f32),
        params['g2_pw_w'],
        params['g2_pw_scale'].reshape(cg2, 1).astype(f32),
        params['g2_pw_bias'].reshape(cg2, 1).astype(f32),
        params['g2_dw_w'],
        params['g2_dw_scale'].reshape(cg2, 1).astype(f32),
        params['g2_dw_bias'].reshape(cg2, 1).astype(f32),
        wmask,
    )
    in_specs = [pl.BlockSpec((1, C, HW), lambda n: (n, 0, 0))]
    in_specs += [_bcast_spec(a.shape) for a in args[1:]]

    # Scoped-VMEM limit derived from the actual resident footprint (double
    # buffered in/out blocks + DW scratch + live intermediates), instead of the
    # fixed 32 MiB cap (v5e scoped default is only 16 MiB of 128 MiB physical).
    blk = C * HW * 4
    scratch = (cg1 + cg2) * HWP * 4
    interm = (2 * C + 2 * cg1 + 2 * cg2) * HW * 4
    vmem_limit = int(min(max(4 * blk + scratch + 2 * interm + (2 << 20), 32 << 20),
                         96 << 20))

    out = pl.pallas_call(
        functools.partial(_ghost_bottleneck_kernel,
                          W=W, HW=HW, PAD=PAD, cg1=cg1, cg2=cg2),
        out_shape=jax.ShapeDtypeStruct((N, C, HW), x_nchw.dtype),
        grid=(N,),
        in_specs=in_specs,
        out_specs=pl.BlockSpec((1, C, HW), lambda n: (n, 0, 0)),
        scratch_shapes=[pltpu.VMEM((cg1, HWP), jnp.float32),
                        pltpu.VMEM((cg2, HWP), jnp.float32)],
        compiler_params=pltpu.CompilerParams(
            dimension_semantics=("parallel",),
            vmem_limit_bytes=vmem_limit),
    )(*args)
    return out.reshape(N, C, H, W)


# -------------------- parameters (deterministic, BN folded) --------------------
def _bn_fold(key, c, eps=1e-5):
    k1, k2, k3, k4 = jax.random.split(key, 4)
    gamma = 1.0 + 0.1 * jax.random.normal(k1, (c,), jnp.float32)
    beta = 0.1 * jax.random.normal(k2, (c,), jnp.float32)
    mean = 0.1 * jax.random.normal(k3, (c,), jnp.float32)
    var = 0.5 + jax.random.uniform(k4, (c,), jnp.float32)    # > 0
    scale = gamma / jnp.sqrt(var + eps)
    bias = beta - mean * scale
    return scale, bias


def init_ghost_bottleneck_params(key, c1, c2):
    assert c1 == c2, "s=1 GhostBottleneck has an identity shortcut -> needs c1 == c2"
    assert c2 % 4 == 0, "GhostBottleneck channel bookkeeping needs c2 % 4 == 0"
    cg1 = c2 // 4          # GhostConv1 primary channels
    cg2 = c2 // 2          # GhostConv2 primary channels (== c_)
    c_mid = 2 * cg1        # width between the two GhostConvs
    keys = jax.random.split(key, 8)
    p = {}
    # GhostConv1.cv1 : 1x1 conv c1 -> cg1 (weight [cout, cin]), BN, SiLU
    p['g1_pw_w'] = 0.3 * jax.random.normal(keys[0], (cg1, c1), jnp.float32)
    p['g1_pw_scale'], p['g1_pw_bias'] = _bn_fold(keys[1], cg1)
    # GhostConv1.cv2 : depthwise 5x5 on cg1 channels (weight [c, 25]), BN, SiLU
    p['g1_dw_w'] = 0.3 * jax.random.normal(keys[2], (cg1, 25), jnp.float32)
    p['g1_dw_scale'], p['g1_dw_bias'] = _bn_fold(keys[3], cg1)
    # GhostConv2.cv1 : 1x1 conv c_mid -> cg2, BN, no act
    p['g2_pw_w'] = 0.3 * jax.random.normal(keys[4], (cg2, c_mid), jnp.float32)
    p['g2_pw_scale'], p['g2_pw_bias'] = _bn_fold(keys[5], cg2)
    # GhostConv2.cv2 : depthwise 5x5 on cg2 channels, BN, no act
    p['g2_dw_w'] = 0.3 * jax.random.normal(keys[6], (cg2, 25), jnp.float32)
    p['g2_dw_scale'], p['g2_dw_bias'] = _bn_fold(keys[7], cg2)
    return p


# -------------------- pure-JAX reference (for correctness check) --------------------
def ghost_bottleneck_reference(x_nchw, params):
    hp = jax.lax.Precision.HIGHEST
    x = x_nchw.astype(jnp.float32)

    def act_fn(v):
        return v * jax.nn.sigmoid(v)

    def conv1x1(v, w, s, b, act):
        y = jnp.einsum('oi,nihw->nohw', w, v, precision=hp)
        y = y * s[None, :, None, None] + b[None, :, None, None]
        return act_fn(y) if act else y

    def dw5x5(v, d, s, b, act):
        n, c, h, w = v.shape
        vp = jnp.pad(v, ((0, 0), (0, 0), (2, 2), (2, 2)))
        acc = jnp.zeros_like(v)
        for a in range(5):
            for bb in range(5):
                acc = acc + vp[:, :, a:a + h, bb:bb + w] * d[:, a * 5 + bb][None, :, None, None]
        y = acc * s[None, :, None, None] + b[None, :, None, None]
        return act_fn(y) if act else y

    y1 = conv1x1(x, params['g1_pw_w'], params['g1_pw_scale'], params['g1_pw_bias'], True)
    z1 = dw5x5(y1, params['g1_dw_w'], params['g1_dw_scale'], params['g1_dw_bias'], True)
    h = jnp.concatenate([y1, z1], axis=1)
    y2 = conv1x1(h, params['g2_pw_w'], params['g2_pw_scale'], params['g2_pw_bias'], False)
    z2 = dw5x5(y2, params['g2_dw_w'], params['g2_dw_scale'], params['g2_dw_bias'], False)
    return (jnp.concatenate([y2, z2], axis=1) + x).astype(x_nchw.dtype)


if __name__ == "__main__":
    key = jax.random.PRNGKey(0)
    kx, kp = jax.random.split(key)
    N, C, H, W = 2, 8, 16, 16                 # GhostBottleneck(8, 8), s=1
    x = jax.random.normal(kx, (N, C, H, W), jnp.float32)
    params = init_ghost_bottleneck_params(kp, C, C)

    out = jax.block_until_ready(ghost_bottleneck(x, params))
    assert out.shape == (N, C, H, W) and out.dtype == jnp.float32

    ref = jax.block_until_ready(ghost_bottleneck_reference(x, params))
    max_err = float(jnp.max(jnp.abs(out - ref)))
    # SiLU now uses the EUP approximate reciprocal (perf-review item), so the
    # tolerance is loosened from 1e-3; structural bugs would still show as O(1).
    assert max_err < 5e-2, f"mismatch vs reference: max abs err = {max_err}"
    print("KERNEL_OK")
</pallas_src>

<mosaic_0001>
module attributes {stable_mosaic.version = 11 : i64} {
  func.func @_ghost_bottleneck_kernel(%arg0: i32, %arg1: memref<1x8x256xf32, #tpu.memory_space<vmem>>, %arg2: memref<2x8xf32, #tpu.memory_space<vmem>>, %arg3: memref<2x1xf32, #tpu.memory_space<vmem>>, %arg4: memref<2x1xf32, #tpu.memory_space<vmem>>, %arg5: memref<2x25xf32, #tpu.memory_space<vmem>>, %arg6: memref<2x1xf32, #tpu.memory_space<vmem>>, %arg7: memref<2x1xf32, #tpu.memory_space<vmem>>, %arg8: memref<4x4xf32, #tpu.memory_space<vmem>>, %arg9: memref<4x1xf32, #tpu.memory_space<vmem>>, %arg10: memref<4x1xf32, #tpu.memory_space<vmem>>, %arg11: memref<4x25xf32, #tpu.memory_space<vmem>>, %arg12: memref<4x1xf32, #tpu.memory_space<vmem>>, %arg13: memref<4x1xf32, #tpu.memory_space<vmem>>, %arg14: memref<5x256xf32, #tpu.memory_space<vmem>>, %arg15: memref<1x8x256xf32, #tpu.memory_space<vmem>>, %arg16: memref<2x512xf32, #tpu.memory_space<vmem>>, %arg17: memref<4x512xf32, #tpu.memory_space<vmem>>) attributes {dimension_semantics = [#tpu.dimension_semantics<parallel>], iteration_bounds = array<i64: 2>, scalar_prefetch = 0 : i64, scratch_operands = 2 : i64, tpu.core_type = #tpu.core_type<tc>, window_params = [{transform_indices = @transform_0, window_bounds = array<i64: 1, 8, 256>}, {pipeline_mode = #tpu.pipeline_mode<synchronous>, transform_indices = @transform_1, window_bounds = array<i64: 2, 8>}, {pipeline_mode = #tpu.pipeline_mode<synchronous>, transform_indices = @transform_2, window_bounds = array<i64: 2, 1>}, {pipeline_mode = #tpu.pipeline_mode<synchronous>, transform_indices = @transform_3, window_bounds = array<i64: 2, 1>}, {pipeline_mode = #tpu.pipeline_mode<synchronous>, transform_indices = @transform_4, window_bounds = array<i64: 2, 25>}, {pipeline_mode = #tpu.pipeline_mode<synchronous>, transform_indices = @transform_5, window_bounds = array<i64: 2, 1>}, {pipeline_mode = #tpu.pipeline_mode<synchronous>, transform_indices = @transform_6, window_bounds = array<i64: 2, 1>}, {pipeline_mode = #tpu.pipeline_mode<synchronous>, transform_indices = @transform_7, window_bounds = array<i64: 4, 4>}, {pipeline_mode = #tpu.pipeline_mode<synchronous>, transform_indices = @transform_8, window_bounds = array<i64: 4, 1>}, {pipeline_mode = #tpu.pipeline_mode<synchronous>, transform_indices = @transform_9, window_bounds = array<i64: 4, 1>}, {pipeline_mode = #tpu.pipeline_mode<synchronous>, transform_indices = @transform_10, window_bounds = array<i64: 4, 25>}, {pipeline_mode = #tpu.pipeline_mode<synchronous>, transform_indices = @transform_11, window_bounds = array<i64: 4, 1>}, {pipeline_mode = #tpu.pipeline_mode<synchronous>, transform_indices = @transform_12, window_bounds = array<i64: 4, 1>}, {pipeline_mode = #tpu.pipeline_mode<synchronous>, transform_indices = @transform_13, window_bounds = array<i64: 5, 256>}, {transform_indices = @transform_14, window_bounds = array<i64: 1, 8, 256>}]} {
    %c0 = arith.constant 0 : index
    %c0_0 = arith.constant 0 : index
    %c0_1 = arith.constant 0 : index
    %0 = vector.load %arg1[%c0, %c0_0, %c0_1] : memref<1x8x256xf32, #tpu.memory_space<vmem>>, vector<1x8x256xf32>
    %1 = vector.shape_cast %0 : vector<1x8x256xf32> to vector<8x256xf32>
    %c0_2 = arith.constant 0 : index
    %c0_3 = arith.constant 0 : index
    %2 = vector.load %arg2[%c0_2, %c0_3] : memref<2x8xf32, #tpu.memory_space<vmem>>, vector<2x8xf32>
    %3 = vector.extract_strided_slice %2 {offsets = [0, 0], sizes = [2, 1], strides = [1, 1]} : vector<2x8xf32> to vector<2x1xf32>
    %4 = vector.extract_strided_slice %1 {offsets = [0, 0], sizes = [1, 256], strides = [1, 1]} : vector<8x256xf32> to vector<1x256xf32>
    %5 = vector.broadcast %3 : vector<2x1xf32> to vector<2x256xf32>
    %6 = vector.broadcast %4 : vector<1x256xf32> to vector<2x256xf32>
    %7 = arith.mulf %5, %6 : vector<2x256xf32>
    %8 = vector.extract_strided_slice %2 {offsets = [0, 1], sizes = [2, 1], strides = [1, 1]} : vector<2x8xf32> to vector<2x1xf32>
    %9 = vector.extract_strided_slice %1 {offsets = [1, 0], sizes = [1, 256], strides = [1, 1]} : vector<8x256xf32> to vector<1x256xf32>
    %10 = vector.broadcast %8 : vector<2x1xf32> to vector<2x256xf32>
    %11 = vector.broadcast %9 : vector<1x256xf32> to vector<2x256xf32>
    %12 = arith.mulf %10, %11 : vector<2x256xf32>
    %13 = arith.addf %7, %12 : vector<2x256xf32>
    %14 = vector.extract_strided_slice %2 {offsets = [0, 2], sizes = [2, 1], strides = [1, 1]} : vector<2x8xf32> to vector<2x1xf32>
    %15 = vector.extract_strided_slice %1 {offsets = [2, 0], sizes = [1, 256], strides = [1, 1]} : vector<8x256xf32> to vector<1x256xf32>
    %16 = vector.broadcast %14 : vector<2x1xf32> to vector<2x256xf32>
    %17 = vector.broadcast %15 : vector<1x256xf32> to vector<2x256xf32>
    %18 = arith.mulf %16, %17 : vector<2x256xf32>
    %19 = arith.addf %13, %18 : vector<2x256xf32>
    %20 = vector.extract_strided_slice %2 {offsets = [0, 3], sizes = [2, 1], strides = [1, 1]} : vector<2x8xf32> to vector<2x1xf32>
    %21 = vector.extract_strided_slice %1 {offsets = [3, 0], sizes = [1, 256], strides = [1, 1]} : vector<8x256xf32> to vector<1x256xf32>
    %22 = vector.broadcast %20 : vector<2x1xf32> to vector<2x256xf32>
    %23 = vector.broadcast %21 : vector<1x256xf32> to vector<2x256xf32>
    %24 = arith.mulf %22, %23 : vector<2x256xf32>
    %25 = arith.addf %19, %24 : vector<2x256xf32>
    %26 = vector.extract_strided_slice %2 {offsets = [0, 4], sizes = [2, 1], strides = [1, 1]} : vector<2x8xf32> to vector<2x1xf32>
    %27 = vector.extract_strided_slice %1 {offsets = [4, 0], sizes = [1, 256], strides = [1, 1]} : vector<8x256xf32> to vector<1x256xf32>
    %28 = vector.broadcast %26 : vector<2x1xf32> to vector<2x256xf32>
    %29 = vector.broadcast %27 : vector<1x256xf32> to vector<2x256xf32>
    %30 = arith.mulf %28, %29 : vector<2x256xf32>
    %31 = arith.addf %25, %30 : vector<2x256xf32>
    %32 = vector.extract_strided_slice %2 {offsets = [0, 5], sizes = [2, 1], strides = [1, 1]} : vector<2x8xf32> to vector<2x1xf32>
    %33 = vector.extract_strided_slice %1 {offsets = [5, 0], sizes = [1, 256], strides = [1, 1]} : vector<8x256xf32> to vector<1x256xf32>
    %34 = vector.broadcast %32 : vector<2x1xf32> to vector<2x256xf32>
    %35 = vector.broadcast %33 : vector<1x256xf32> to vector<2x256xf32>
    %36 = arith.mulf %34, %35 : vector<2x256xf32>
    %37 = arith.addf %31, %36 : vector<2x256xf32>
    %38 = vector.extract_strided_slice %2 {offsets = [0, 6], sizes = [2, 1], strides = [1, 1]} : vector<2x8xf32> to vector<2x1xf32>
    %39 = vector.extract_strided_slice %1 {offsets = [6, 0], sizes = [1, 256], strides = [1, 1]} : vector<8x256xf32> to vector<1x256xf32>
    %40 = vector.broadcast %38 : vector<2x1xf32> to vector<2x256xf32>
    %41 = vector.broadcast %39 : vector<1x256xf32> to vector<2x256xf32>
    %42 = arith.mulf %40, %41 : vector<2x256xf32>
    %43 = arith.addf %37, %42 : vector<2x256xf32>
    %44 = vector.extract_strided_slice %2 {offsets = [0, 7], sizes = [2, 1], strides = [1, 1]} : vector<2x8xf32> to vector<2x1xf32>
    %45 = vector.extract_strided_slice %1 {offsets = [7, 0], sizes = [1, 256], strides = [1, 1]} : vector<8x256xf32> to vector<1x256xf32>
    %46 = vector.broadcast %44 : vector<2x1xf32> to vector<2x256xf32>
    %47 = vector.broadcast %45 : vector<1x256xf32> to vector<2x256xf32>
    %48 = arith.mulf %46, %47 : vector<2x256xf32>
    %49 = arith.addf %43, %48 : vector<2x256xf32>
    %c0_4 = arith.constant 0 : index
    %c0_5 = arith.constant 0 : index
    %50 = vector.load %arg3[%c0_4, %c0_5] : memref<2x1xf32, #tpu.memory_space<vmem>>, vector<2x1xf32>
    %51 = vector.broadcast %50 : vector<2x1xf32> to vector<2x256xf32>
    %52 = arith.mulf %49, %51 : vector<2x256xf32>
    %c0_6 = arith.constant 0 : index
    %c0_7 = arith.constant 0 : index
    %53 = vector.load %arg4[%c0_6, %c0_7] : memref<2x1xf32, #tpu.memory_space<vmem>>, vector<2x1xf32>
    %54 = vector.broadcast %53 : vector<2x1xf32> to vector<2x256xf32>
    %55 = arith.addf %52, %54 : vector<2x256xf32>
    %cst = arith.constant 0.000000e+00 : f32
    %56 = vector.broadcast %cst : f32 to vector<2x256xf32>
    %57 = arith.subf %56, %55 : vector<2x256xf32>
    %58 = math.exp %57 : vector<2x256xf32>
    %cst_8 = arith.constant 1.000000e+00 : f32
    %59 = vector.broadcast %cst_8 : f32 to vector<2x256xf32>
    %60 = arith.addf %59, %58 : vector<2x256xf32>
    %61 = tpu.reciprocal %60 {approx = true} : vector<2x256xf32> -> vector<2x256xf32>
    %62 = arith.mulf %55, %61 : vector<2x256xf32>
    %cst_9 = arith.constant 0.000000e+00 : f32
    %63 = vector.broadcast %cst_9 : f32 to vector<2x128xf32>
    %c0_10 = arith.constant 0 : index
    %c0_11 = arith.constant 0 : index
    %64 = vector.load %arg16[%c0_10, %c0_11] : memref<2x512xf32, #tpu.memory_space<vmem>>, vector<2x128xf32>
    tpu.vector_store %arg16[%c0_10, %c0_11], %63 {strides = array<i32>} : memref<2x512xf32, #tpu.memory_space<vmem>>, vector<2x128xf32>,
    %c0_12 = arith.constant 0 : index
    %c384 = arith.constant 384 : index
    %65 = vector.load %arg16[%c0_12, %c384] : memref<2x512xf32, #tpu.memory_space<vmem>>, vector<2x128xf32>
    tpu.vector_store %arg16[%c0_12, %c384], %63 {strides = array<i32>} : memref<2x512xf32, #tpu.memory_space<vmem>>, vector<2x128xf32>,
    %c0_13 = arith.constant 0 : index
    %c128 = arith.constant 128 : index
    %66 = vector.load %arg16[%c0_13, %c128] : memref<2x512xf32, #tpu.memory_space<vmem>>, vector<2x256xf32>
    tpu.vector_store %arg16[%c0_13, %c128], %62 {strides = array<i32>} : memref<2x512xf32, #tpu.memory_space<vmem>>, vector<2x256xf32>,
    %cst_14 = arith.constant 0.000000e+00 : f32
    %67 = vector.broadcast %cst_14 : f32 to vector<2x256xf32>
    %c0_15 = arith.constant 0 : index
    %c96 = arith.constant 96 : index
    %68 = vector.load %arg16[%c0_15, %c96] : memref<2x512xf32, #tpu.memory_space<vmem>>, vector<2x256xf32>
    %c2_i32 = arith.constant 2 : i32
    %69 = tpu.dynamic_rotate %68 by %c2_i32 dim 1 : vector<2x256xf32>, i32 -> vector<2x256xf32>
    %c0_16 = arith.constant 0 : index
    %c0_17 = arith.constant 0 : index
    %70 = vector.load %arg14[%c0_16, %c0_17] : memref<5x256xf32, #tpu.memory_space<vmem>>, vector<1x256xf32>
    %71 = vector.broadcast %70 : vector<1x256xf32> to vector<2x256xf32>
    %72 = arith.mulf %69, %71 : vector<2x256xf32>
    %c0_18 = arith.constant 0 : index
    %c0_19 = arith.constant 0 : index
    %73 = vector.load %arg5[%c0_18, %c0_19] : memref<2x25xf32, #tpu.memory_space<vmem>>, vector<2x1xf32>
    %74 = vector.broadcast %73 : vector<2x1xf32> to vector<2x256xf32>
    %75 = arith.mulf %72, %74 : vector<2x256xf32>
    %76 = arith.addf %67, %75 : vector<2x256xf32>
    %c1_i32 = arith.constant 1 : i32
    %77 = tpu.dynamic_rotate %68 by %c1_i32 dim 1 : vector<2x256xf32>, i32 -> vector<2x256xf32>
    %c1 = arith.constant 1 : index
    %c0_20 = arith.constant 0 : index
    %78 = vector.load %arg14[%c1, %c0_20] : memref<5x256xf32, #tpu.memory_space<vmem>>, vector<1x256xf32>
    %79 = vector.broadcast %78 : vector<1x256xf32> to vector<2x256xf32>
    %80 = arith.mulf %77, %79 : vector<2x256xf32>
    %c0_21 = arith.constant 0 : index
    %c1_22 = arith.constant 1 : index
    %81 = vector.load %arg5[%c0_21, %c1_22] : memref<2x25xf32, #tpu.memory_space<vmem>>, vector<2x1xf32>
    %82 = vector.broadcast %81 : vector<2x1xf32> to vector<2x256xf32>
    %83 = arith.mulf %80, %82 : vector<2x256xf32>
    %84 = arith.addf %76, %83 : vector<2x256xf32>
    %c0_23 = arith.constant 0 : index
    %c2 = arith.constant 2 : index
    %85 = vector.load %arg5[%c0_23, %c2] : memref<2x25xf32, #tpu.memory_space<vmem>>, vector<2x1xf32>
    %86 = vector.broadcast %85 : vector<2x1xf32> to vector<2x256xf32>
    %87 = arith.mulf %68, %86 : vector<2x256xf32>
    %88 = arith.addf %84, %87 : vector<2x256xf32>
    %c255_i32 = arith.constant 255 : i32
    %89 = tpu.dynamic_rotate %68 by %c255_i32 dim 1 : vector<2x256xf32>, i32 -> vector<2x256xf32>
    %c3 = arith.constant 3 : index
    %c0_24 = arith.constant 0 : index
    %90 = vector.load %arg14[%c3, %c0_24] : memref<5x256xf32, #tpu.memory_space<vmem>>, vector<1x256xf32>
    %91 = vector.broadcast %90 : vector<1x256xf32> to vector<2x256xf32>
    %92 = arith.mulf %89, %91 : vector<2x256xf32>
    %c0_25 = arith.constant 0 : index
    %c3_26 = arith.constant 3 : index
    %93 = vector.load %arg5[%c0_25, %c3_26] : memref<2x25xf32, #tpu.memory_space<vmem>>, vector<2x1xf32>
    %94 = vector.broadcast %93 : vector<2x1xf32> to vector<2x256xf32>
    %95 = arith.mulf %92, %94 : vector<2x256xf32>
    %96 = arith.addf %88, %95 : vector<2x256xf32>
    %c254_i32 = arith.constant 254 : i32
    %97 = tpu.dynamic_rotate %68 by %c254_i32 dim 1 : vector<2x256xf32>, i32 -> vector<2x256xf32>
    %c4 = arith.constant 4 : index
    %c0_27 = arith.constant 0 : index
    %98 = vector.load %arg14[%c4, %c0_27] : memref<5x256xf32, #tpu.memory_space<vmem>>, vector<1x256xf32>
    %99 = vector.broadcast %98 : vector<1x256xf32> to vector<2x256xf32>
    %100 = arith.mulf %97, %99 : vector<2x256xf32>
    %c0_28 = arith.constant 0 : index
    %c4_29 = arith.constant 4 : index
    %101 = vector.load %arg5[%c0_28, %c4_29] : memref<2x25xf32, #tpu.memory_space<vmem>>, vector<2x1xf32>
    %102 = vector.broadcast %101 : vector<2x1xf32> to vector<2x256xf32>
    %103 = arith.mulf %100, %102 : vector<2x256xf32>
    %104 = arith.addf %96, %103 : vector<2x256xf32>
    %c0_30 = arith.constant 0 : index
    %c112 = arith.constant 112 : index
    %105 = vector.load %arg16[%c0_30, %c112] : memref<2x512xf32, #tpu.memory_space<vmem>>, vector<2x256xf32>
    %c2_i32_31 = arith.constant 2 : i32
    %106 = tpu.dynamic_rotate %105 by %c2_i32_31 dim 1 : vector<2x256xf32>, i32 -> vector<2x256xf32>
    %c0_32 = arith.constant 0 : index
    %c0_33 = arith.constant 0 : index
    %107 = vector.load %arg14[%c0_32, %c0_33] : memref<5x256xf32, #tpu.memory_space<vmem>>, vector<1x256xf32>
    %108 = vector.broadcast %107 : vector<1x256xf32> to vector<2x256xf32>
    %109 = arith.mulf %106, %108 : vector<2x256xf32>
    %c0_34 = arith.constant 0 : index
    %c5 = arith.constant 5 : index
    %110 = vector.load %arg5[%c0_34, %c5] : memref<2x25xf32, #tpu.memory_space<vmem>>, vector<2x1xf32>
    %111 = vector.broadcast %110 : vector<2x1xf32> to vector<2x256xf32>
    %112 = arith.mulf %109, %111 : vector<2x256xf32>
    %113 = arith.addf %104, %112 : vector<2x256xf32>
    %c1_i32_35 = arith.constant 1 : i32
    %114 = tpu.dynamic_rotate %105 by %c1_i32_35 dim 1 : vector<2x256xf32>, i32 -> vector<2x256xf32>
    %c1_36 = arith.constant 1 : index
    %c0_37 = arith.constant 0 : index
    %115 = vector.load %arg14[%c1_36, %c0_37] : memref<5x256xf32, #tpu.memory_space<vmem>>, vector<1x256xf32>
    %116 = vector.broadcast %115 : vector<1x256xf32> to vector<2x256xf32>
    %117 = arith.mulf %114, %116 : vector<2x256xf32>
    %c0_38 = arith.constant 0 : index
    %c6 = arith.constant 6 : index
    %118 = vector.load %arg5[%c0_38, %c6] : memref<2x25xf32, #tpu.memory_space<vmem>>, vector<2x1xf32>
    %119 = vector.broadcast %118 : vector<2x1xf32> to vector<2x256xf32>
    %120 = arith.mulf %117, %119 : vector<2x256xf32>
    %121 = arith.addf %113, %120 : vector<2x256xf32>
    %c0_39 = arith.constant 0 : index
    %c7 = arith.constant 7 : index
    %122 = vector.load %arg5[%c0_39, %c7] : memref<2x25xf32, #tpu.memory_space<vmem>>, vector<2x1xf32>
    %123 = vector.broadcast %122 : vector<2x1xf32> to vector<2x256xf32>
    %124 = arith.mulf %105, %123 : vector<2x256xf32>
    %125 = arith.addf %121, %124 : vector<2x256xf32>
    %c255_i32_40 = arith.constant 255 : i32
    %126 = tpu.dynamic_rotate %105 by %c255_i32_40 dim 1 : vector<2x256xf32>, i32 -> vector<2x256xf32>
    %c3_41 = arith.constant 3 : index
    %c0_42 = arith.constant 0 : index
    %127 = vector.load %arg14[%c3_41, %c0_42] : memref<5x256xf32, #tpu.memory_space<vmem>>, vector<1x256xf32>
    %128 = vector.broadcast %127 : vector<1x256xf32> to vector<2x256xf32>
    %129 = arith.mulf %126, %128 : vector<2x256xf32>
    %c0_43 = arith.constant 0 : index
    %c8 = arith.constant 8 : index
    %130 = vector.load %arg5[%c0_43, %c8] : memref<2x25xf32, #tpu.memory_space<vmem>>, vector<2x1xf32>
    %131 = vector.broadcast %130 : vector<2x1xf32> to vector<2x256xf32>
    %132 = arith.mulf %129, %131 : vector<2x256xf32>
    %133 = arith.addf %125, %132 : vector<2x256xf32>
    %c254_i32_44 = arith.constant 254 : i32
    %134 = tpu.dynamic_rotate %105 by %c254_i32_44 dim 1 : vector<2x256xf32>, i32 -> vector<2x256xf32>
    %c4_45 = arith.constant 4 : index
    %c0_46 = arith.constant 0 : index
    %135 = vector.load %arg14[%c4_45, %c0_46] : memref<5x256xf32, #tpu.memory_space<vmem>>, vector<1x256xf32>
    %136 = vector.broadcast %135 : vector<1x256xf32> to vector<2x256xf32>
    %137 = arith.mulf %134, %136 : vector<2x256xf32>
    %c0_47 = arith.constant 0 : index
    %c9 = arith.constant 9 : index
    %138 = vector.load %arg5[%c0_47, %c9] : memref<2x25xf32, #tpu.memory_space<vmem>>, vector<2x1xf32>
    %139 = vector.broadcast %138 : vector<2x1xf32> to vector<2x256xf32>
    %140 = arith.mulf %137, %139 : vector<2x256xf32>
    %141 = arith.addf %133, %140 : vector<2x256xf32>
    %c0_48 = arith.constant 0 : index
    %c128_49 = arith.constant 128 : index
    %142 = vector.load %arg16[%c0_48, %c128_49] : memref<2x512xf32, #tpu.memory_space<vmem>>, vector<2x256xf32>
    %c2_i32_50 = arith.constant 2 : i32
    %143 = tpu.dynamic_rotate %142 by %c2_i32_50 dim 1 : vector<2x256xf32>, i32 -> vector<2x256xf32>
    %c0_51 = arith.constant 0 : index
    %c0_52 = arith.constant 0 : index
    %144 = vector.load %arg14[%c0_51, %c0_52] : memref<5x256xf32, #tpu.memory_space<vmem>>, vector<1x256xf32>
    %145 = vector.broadcast %144 : vector<1x256xf32> to vector<2x256xf32>
    %146 = arith.mulf %143, %145 : vector<2x256xf32>
    %c0_53 = arith.constant 0 : index
    %c10 = arith.constant 10 : index
    %147 = vector.load %arg5[%c0_53, %c10] : memref<2x25xf32, #tpu.memory_space<vmem>>, vector<2x1xf32>
    %148 = vector.broadcast %147 : vector<2x1xf32> to vector<2x256xf32>
    %149 = arith.mulf %146, %148 : vector<2x256xf32>
    %150 = arith.addf %141, %149 : vector<2x256xf32>
    %c1_i32_54 = arith.constant 1 : i32
    %151 = tpu.dynamic_rotate %142 by %c1_i32_54 dim 1 : vector<2x256xf32>, i32 -> vector<2x256xf32>
    %c1_55 = arith.constant 1 : index
    %c0_56 = arith.constant 0 : index
    %152 = vector.load %arg14[%c1_55, %c0_56] : memref<5x256xf32, #tpu.memory_space<vmem>>, vector<1x256xf32>
    %153 = vector.broadcast %152 : vector<1x256xf32> to vector<2x256xf32>
    %154 = arith.mulf %151, %153 : vector<2x256xf32>
    %c0_57 = arith.constant 0 : index
    %c11 = arith.constant 11 : index
    %155 = vector.load %arg5[%c0_57, %c11] : memref<2x25xf32, #tpu.memory_space<vmem>>, vector<2x1xf32>
    %156 = vector.broadcast %155 : vector<2x1xf32> to vector<2x256xf32>
    %157 = arith.mulf %154, %156 : vector<2x256xf32>
    %158 = arith.addf %150, %157 : vector<2x256xf32>
    %c0_58 = arith.constant 0 : index
    %c12 = arith.constant 12 : index
    %159 = vector.load %arg5[%c0_58, %c12] : memref<2x25xf32, #tpu.memory_space<vmem>>, vector<2x1xf32>
    %160 = vector.broadcast %159 : vector<2x1xf32> to vector<2x256xf32>
    %161 = arith.mulf %142, %160 : vector<2x256xf32>
    %162 = arith.addf %158, %161 : vector<2x256xf32>
    %c255_i32_59 = arith.constant 255 : i32
    %163 = tpu.dynamic_rotate %142 by %c255_i32_59 dim 1 : vector<2x256xf32>, i32 -> vector<2x256xf32>
    %c3_60 = arith.constant 3 : index
    %c0_61 = arith.constant 0 : index
    %164 = vector.load %arg14[%c3_60, %c0_61] : memref<5x256xf32, #tpu.memory_space<vmem>>, vector<1x256xf32>
    %165 = vector.broadcast %164 : vector<1x256xf32> to vector<2x256xf32>
    %166 = arith.mulf %163, %165 : vector<2x256xf32>
    %c0_62 = arith.constant 0 : index
    %c13 = arith.constant 13 : index
    %167 = vector.load %arg5[%c0_62, %c13] : memref<2x25xf32, #tpu.memory_space<vmem>>, vector<2x1xf32>
    %168 = vector.broadcast %167 : vector<2x1xf32> to vector<2x256xf32>
    %169 = arith.mulf %166, %168 : vector<2x256xf32>
    %170 = arith.addf %162, %169 : vector<2x256xf32>
    %c254_i32_63 = arith.constant 254 : i32
    %171 = tpu.dynamic_rotate %142 by %c254_i32_63 dim 1 : vector<2x256xf32>, i32 -> vector<2x256xf32>
    %c4_64 = arith.constant 4 : index
    %c0_65 = arith.constant 0 : index
    %172 = vector.load %arg14[%c4_64, %c0_65] : memref<5x256xf32, #tpu.memory_space<vmem>>, vector<1x256xf32>
    %173 = vector.broadcast %172 : vector<1x256xf32> to vector<2x256xf32>
    %174 = arith.mulf %171, %173 : vector<2x256xf32>
    %c0_66 = arith.constant 0 : index
    %c14 = arith.constant 14 : index
    %175 = vector.load %arg5[%c0_66, %c14] : memref<2x25xf32, #tpu.memory_space<vmem>>, vector<2x1xf32>
    %176 = vector.broadcast %175 : vector<2x1xf32> to vector<2x256xf32>
    %177 = arith.mulf %174, %176 : vector<2x256xf32>
    %178 = arith.addf %170, %177 : vector<2x256xf32>
    %c0_67 = arith.constant 0 : index
    %c144 = arith.constant 144 : index
    %179 = vector.load %arg16[%c0_67, %c144] : memref<2x512xf32, #tpu.memory_space<vmem>>, vector<2x256xf32>
    %c2_i32_68 = arith.constant 2 : i32
    %180 = tpu.dynamic_rotate %179 by %c2_i32_68 dim 1 : vector<2x256xf32>, i32 -> vector<2x256xf32>
    %c0_69 = arith.constant 0 : index
    %c0_70 = arith.constant 0 : index
    %181 = vector.load %arg14[%c0_69, %c0_70] : memref<5x256xf32, #tpu.memory_space<vmem>>, vector<1x256xf32>
    %182 = vector.broadcast %181 : vector<1x256xf32> to vector<2x256xf32>
    %183 = arith.mulf %180, %182 : vector<2x256xf32>
    %c0_71 = arith.constant 0 : index
    %c15 = arith.constant 15 : index
    %184 = vector.load %arg5[%c0_71, %c15] : memref<2x25xf32, #tpu.memory_space<vmem>>, vector<2x1xf32>
    %185 = vector.broadcast %184 : vector<2x1xf32> to vector<2x256xf32>
    %186 = arith.mulf %183, %185 : vector<2x256xf32>
    %187 = arith.addf %178, %186 : vector<2x256xf32>
    %c1_i32_72 = arith.constant 1 : i32
    %188 = tpu.dynamic_rotate %179 by %c1_i32_72 dim 1 : vector<2x256xf32>, i32 -> vector<2x256xf32>
    %c1_73 = arith.constant 1 : index
    %c0_74 = arith.constant 0 : index
    %189 = vector.load %arg14[%c1_73, %c0_74] : memref<5x256xf32, #tpu.memory_space<vmem>>, vector<1x256xf32>
    %190 = vector.broadcast %189 : vector<1x256xf32> to vector<2x256xf32>
    %191 = arith.mulf %188, %190 : vector<2x256xf32>
    %c0_75 = arith.constant 0 : index
    %c16 = arith.constant 16 : index
    %192 = vector.load %arg5[%c0_75, %c16] : memref<2x25xf32, #tpu.memory_space<vmem>>, vector<2x1xf32>
    %193 = vector.broadcast %192 : vector<2x1xf32> to vector<2x256xf32>
    %194 = arith.mulf %191, %193 : vector<2x256xf32>
    %195 = arith.addf %187, %194 : vector<2x256xf32>
    %c0_76 = arith.constant 0 : index
    %c17 = arith.constant 17 : index
    %196 = vector.load %arg5[%c0_76, %c17] : memref<2x25xf32, #tpu.memory_space<vmem>>, vector<2x1xf32>
    %197 = vector.broadcast %196 : vector<2x1xf32> to vector<2x256xf32>
    %198 = arith.mulf %179, %197 : vector<2x256xf32>
    %199 = arith.addf %195, %198 : vector<2x256xf32>
    %c255_i32_77 = arith.constant 255 : i32
    %200 = tpu.dynamic_rotate %179 by %c255_i32_77 dim 1 : vector<2x256xf32>, i32 -> vector<2x256xf32>
    %c3_78 = arith.constant 3 : index
    %c0_79 = arith.constant 0 : index
    %201 = vector.load %arg14[%c3_78, %c0_79] : memref<5x256xf32, #tpu.memory_space<vmem>>, vector<1x256xf32>
    %202 = vector.broadcast %201 : vector<1x256xf32> to vector<2x256xf32>
    %203 = arith.mulf %200, %202 : vector<2x256xf32>
    %c0_80 = arith.constant 0 : index
    %c18 = arith.constant 18 : index
    %204 = vector.load %arg5[%c0_80, %c18] : memref<2x25xf32, #tpu.memory_space<vmem>>, vector<2x1xf32>
    %205 = vector.broadcast %204 : vector<2x1xf32> to vector<2x256xf32>
    %206 = arith.mulf %203, %205 : vector<2x256xf32>
    %207 = arith.addf %199, %206 : vector<2x256xf32>
    %c254_i32_81 = arith.constant 254 : i32
    %208 = tpu.dynamic_rotate %179 by %c254_i32_81 dim 1 : vector<2x256xf32>, i32 -> vector<2x256xf32>
    %c4_82 = arith.constant 4 : index
    %c0_83 = arith.constant 0 : index
    %209 = vector.load %arg14[%c4_82, %c0_83] : memref<5x256xf32, #tpu.memory_space<vmem>>, vector<1x256xf32>
    %210 = vector.broadcast %209 : vector<1x256xf32> to vector<2x256xf32>
    %211 = arith.mulf %208, %210 : vector<2x256xf32>
    %c0_84 = arith.constant 0 : index
    %c19 = arith.constant 19 : index
    %212 = vector.load %arg5[%c0_84, %c19] : memref<2x25xf32, #tpu.memory_space<vmem>>, vector<2x1xf32>
    %213 = vector.broadcast %212 : vector<2x1xf32> to vector<2x256xf32>
    %214 = arith.mulf %211, %213 : vector<2x256xf32>
    %215 = arith.addf %207, %214 : vector<2x256xf32>
    %c0_85 = arith.constant 0 : index
    %c160 = arith.constant 160 : index
    %216 = vector.load %arg16[%c0_85, %c160] : memref<2x512xf32, #tpu.memory_space<vmem>>, vector<2x256xf32>
    %c2_i32_86 = arith.constant 2 : i32
    %217 = tpu.dynamic_rotate %216 by %c2_i32_86 dim 1 : vector<2x256xf32>, i32 -> vector<2x256xf32>
    %c0_87 = arith.constant 0 : index
    %c0_88 = arith.constant 0 : index
    %218 = vector.load %arg14[%c0_87, %c0_88] : memref<5x256xf32, #tpu.memory_space<vmem>>, vector<1x256xf32>
    %219 = vector.broadcast %218 : vector<1x256xf32> to vector<2x256xf32>
    %220 = arith.mulf %217, %219 : vector<2x256xf32>
    %c0_89 = arith.constant 0 : index
    %c20 = arith.constant 20 : index
    %221 = vector.load %arg5[%c0_89, %c20] : memref<2x25xf32, #tpu.memory_space<vmem>>, vector<2x1xf32>
    %222 = vector.broadcast %221 : vector<2x1xf32> to vector<2x256xf32>
    %223 = arith.mulf %220, %222 : vector<2x256xf32>
    %224 = arith.addf %215, %223 : vector<2x256xf32>
    %c1_i32_90 = arith.constant 1 : i32
    %225 = tpu.dynamic_rotate %216 by %c1_i32_90 dim 1 : vector<2x256xf32>, i32 -> vector<2x256xf32>
    %c1_91 = arith.constant 1 : index
    %c0_92 = arith.constant 0 : index
    %226 = vector.load %arg14[%c1_91, %c0_92] : memref<5x256xf32, #tpu.memory_space<vmem>>, vector<1x256xf32>
    %227 = vector.broadcast %226 : vector<1x256xf32> to vector<2x256xf32>
    %228 = arith.mulf %225, %227 : vector<2x256xf32>
    %c0_93 = arith.constant 0 : index
    %c21 = arith.constant 21 : index
    %229 = vector.load %arg5[%c0_93, %c21] : memref<2x25xf32, #tpu.memory_space<vmem>>, vector<2x1xf32>
    %230 = vector.broadcast %229 : vector<2x1xf32> to vector<2x256xf32>
    %231 = arith.mulf %228, %230 : vector<2x256xf32>
    %232 = arith.addf %224, %231 : vector<2x256xf32>
    %c0_94 = arith.constant 0 : index
    %c22 = arith.constant 22 : index
    %233 = vector.load %arg5[%c0_94, %c22] : memref<2x25xf32, #tpu.memory_space<vmem>>, vector<2x1xf32>
    %234 = vector.broadcast %233 : vector<2x1xf32> to vector<2x256xf32>
    %235 = arith.mulf %216, %234 : vector<2x256xf32>
    %236 = arith.addf %232, %235 : vector<2x256xf32>
    %c255_i32_95 = arith.constant 255 : i32
    %237 = tpu.dynamic_rotate %216 by %c255_i32_95 dim 1 : vector<2x256xf32>, i32 -> vector<2x256xf32>
    %c3_96 = arith.constant 3 : index
    %c0_97 = arith.constant 0 : index
    %238 = vector.load %arg14[%c3_96, %c0_97] : memref<5x256xf32, #tpu.memory_space<vmem>>, vector<1x256xf32>
    %239 = vector.broadcast %238 : vector<1x256xf32> to vector<2x256xf32>
    %240 = arith.mulf %237, %239 : vector<2x256xf32>
    %c0_98 = arith.constant 0 : index
    %c23 = arith.constant 23 : index
    %241 = vector.load %arg5[%c0_98, %c23] : memref<2x25xf32, #tpu.memory_space<vmem>>, vector<2x1xf32>
    %242 = vector.broadcast %241 : vector<2x1xf32> to vector<2x256xf32>
    %243 = arith.mulf %240, %242 : vector<2x256xf32>
    %244 = arith.addf %236, %243 : vector<2x256xf32>
    %c254_i32_99 = arith.constant 254 : i32
    %245 = tpu.dynamic_rotate %216 by %c254_i32_99 dim 1 : vector<2x256xf32>, i32 -> vector<2x256xf32>
    %c4_100 = arith.constant 4 : index
    %c0_101 = arith.constant 0 : index
    %246 = vector.load %arg14[%c4_100, %c0_101] : memref<5x256xf32, #tpu.memory_space<vmem>>, vector<1x256xf32>
    %247 = vector.broadcast %246 : vector<1x256xf32> to vector<2x256xf32>
    %248 = arith.mulf %245, %247 : vector<2x256xf32>
    %c0_102 = arith.constant 0 : index
    %c24 = arith.constant 24 : index
    %249 = vector.load %arg5[%c0_102, %c24] : memref<2x25xf32, #tpu.memory_space<vmem>>, vector<2x1xf32>
    %250 = vector.broadcast %249 : vector<2x1xf32> to vector<2x256xf32>
    %251 = arith.mulf %248, %250 : vector<2x256xf32>
    %252 = arith.addf %244, %251 : vector<2x256xf32>
    %c0_103 = arith.constant 0 : index
    %c0_104 = arith.constant 0 : index
    %253 = vector.load %arg6[%c0_103, %c0_104] : memref<2x1xf32, #tpu.memory_space<vmem>>, vector<2x1xf32>
    %254 = vector.broadcast %253 : vector<2x1xf32> to vector<2x256xf32>
    %255 = arith.mulf %252, %254 : vector<2x256xf32>
    %c0_105 = arith.constant 0 : index
    %c0_106 = arith.constant 0 : index
    %256 = vector.load %arg7[%c0_105, %c0_106] : memref<2x1xf32, #tpu.memory_space<vmem>>, vector<2x1xf32>
    %257 = vector.broadcast %256 : vector<2x1xf32> to vector<2x256xf32>
    %258 = arith.addf %255, %257 : vector<2x256xf32>
    %cst_107 = arith.constant 0.000000e+00 : f32
    %259 = vector.broadcast %cst_107 : f32 to vector<2x256xf32>
    %260 = arith.subf %259, %258 : vector<2x256xf32>
    %261 = math.exp %260 : vector<2x256xf32>
    %cst_108 = arith.constant 1.000000e+00 : f32
    %262 = vector.broadcast %cst_108 : f32 to vector<2x256xf32>
    %263 = arith.addf %262, %261 : vector<2x256xf32>
    %264 = tpu.reciprocal %263 {approx = true} : vector<2x256xf32> -> vector<2x256xf32>
    %265 = arith.mulf %258, %264 : vector<2x256xf32>
    %c0_109 = arith.constant 0 : index
    %c0_110 = arith.constant 0 : index
    %266 = vector.load %arg8[%c0_109, %c0_110] : memref<4x4xf32, #tpu.memory_space<vmem>>, vector<4x4xf32>
    %267 = vector.extract_strided_slice %266 {offsets = [0, 0], sizes = [4, 1], strides = [1, 1]} : vector<4x4xf32> to vector<4x1xf32>
    %268 = vector.extract_strided_slice %62 {offsets = [0, 0], sizes = [1, 256], strides = [1, 1]} : vector<2x256xf32> to vector<1x256xf32>
    %269 = vector.broadcast %267 : vector<4x1xf32> to vector<4x256xf32>
    %270 = vector.broadcast %268 : vector<1x256xf32> to vector<4x256xf32>
    %271 = arith.mulf %269, %270 : vector<4x256xf32>
    %272 = vector.extract_strided_slice %266 {offsets = [0, 1], sizes = [4, 1], strides = [1, 1]} : vector<4x4xf32> to vector<4x1xf32>
    %273 = vector.extract_strided_slice %62 {offsets = [1, 0], sizes = [1, 256], strides = [1, 1]} : vector<2x256xf32> to vector<1x256xf32>
    %274 = vector.broadcast %272 : vector<4x1xf32> to vector<4x256xf32>
    %275 = vector.broadcast %273 : vector<1x256xf32> to vector<4x256xf32>
    %276 = arith.mulf %274, %275 : vector<4x256xf32>
    %277 = arith.addf %271, %276 : vector<4x256xf32>
    %278 = vector.extract_strided_slice %266 {offsets = [0, 2], sizes = [4, 1], strides = [1, 1]} : vector<4x4xf32> to vector<4x1xf32>
    %279 = vector.extract_strided_slice %265 {offsets = [0, 0], sizes = [1, 256], strides = [1, 1]} : vector<2x256xf32> to vector<1x256xf32>
    %280 = vector.broadcast %278 : vector<4x1xf32> to vector<4x256xf32>
    %281 = vector.broadcast %279 : vector<1x256xf32> to vector<4x256xf32>
    %282 = arith.mulf %280, %281 : vector<4x256xf32>
    %283 = arith.addf %277, %282 : vector<4x256xf32>
    %284 = vector.extract_strided_slice %266 {offsets = [0, 3], sizes = [4, 1], strides = [1, 1]} : vector<4x4xf32> to vector<4x1xf32>
    %285 = vector.extract_strided_slice %265 {offsets = [1, 0], sizes = [1, 256], strides = [1, 1]} : vector<2x256xf32> to vector<1x256xf32>
    %286 = vector.broadcast %284 : vector<4x1xf32> to vector<4x256xf32>
    %287 = vector.broadcast %285 : vector<1x256xf32> to vector<4x256xf32>
    %288 = arith.mulf %286, %287 : vector<4x256xf32>
    %289 = arith.addf %283, %288 : vector<4x256xf32>
    %c0_111 = arith.constant 0 : index
    %c0_112 = arith.constant 0 : index
    %290 = vector.load %arg9[%c0_111, %c0_112] : memref<4x1xf32, #tpu.memory_space<vmem>>, vector<4x1xf32>
    %291 = vector.broadcast %290 : vector<4x1xf32> to vector<4x256xf32>
    %292 = arith.mulf %289, %291 : vector<4x256xf32>
    %c0_113 = arith.constant 0 : index
    %c0_114 = arith.constant 0 : index
    %293 = vector.load %arg10[%c0_113, %c0_114] : memref<4x1xf32, #tpu.memory_space<vmem>>, vector<4x1xf32>
    %294 = vector.broadcast %293 : vector<4x1xf32> to vector<4x256xf32>
    %295 = arith.addf %292, %294 : vector<4x256xf32>
    %cst_115 = arith.constant 0.000000e+00 : f32
    %296 = vector.broadcast %cst_115 : f32 to vector<4x128xf32>
    %c0_116 = arith.constant 0 : index
    %c0_117 = arith.constant 0 : index
    %297 = vector.load %arg17[%c0_116, %c0_117] : memref<4x512xf32, #tpu.memory_space<vmem>>, vector<4x128xf32>
    tpu.vector_store %arg17[%c0_116, %c0_117], %296 {strides = array<i32>} : memref<4x512xf32, #tpu.memory_space<vmem>>, vector<4x128xf32>,
    %c0_118 = arith.constant 0 : index
    %c384_119 = arith.constant 384 : index
    %298 = vector.load %arg17[%c0_118, %c384_119] : memref<4x512xf32, #tpu.memory_space<vmem>>, vector<4x128xf32>
    tpu.vector_store %arg17[%c0_118, %c384_119], %296 {strides = array<i32>} : memref<4x512xf32, #tpu.memory_space<vmem>>, vector<4x128xf32>,
    %c0_120 = arith.constant 0 : index
    %c128_121 = arith.constant 128 : index
    %299 = vector.load %arg17[%c0_120, %c128_121] : memref<4x512xf32, #tpu.memory_space<vmem>>, vector<4x256xf32>
    tpu.vector_store %arg17[%c0_120, %c128_121], %295 {strides = array<i32>} : memref<4x512xf32, #tpu.memory_space<vmem>>, vector<4x256xf32>,
    %cst_122 = arith.constant 0.000000e+00 : f32
    %300 = vector.broadcast %cst_122 : f32 to vector<4x256xf32>
    %c0_123 = arith.constant 0 : index
    %c96_124 = arith.constant 96 : index
    %301 = vector.load %arg17[%c0_123, %c96_124] : memref<4x512xf32, #tpu.memory_space<vmem>>, vector<4x256xf32>
    %c2_i32_125 = arith.constant 2 : i32
    %302 = tpu.dynamic_rotate %301 by %c2_i32_125 dim 1 : vector<4x256xf32>, i32 -> vector<4x256xf32>
    %c0_126 = arith.constant 0 : index
    %c0_127 = arith.constant 0 : index
    %303 = vector.load %arg14[%c0_126, %c0_127] : memref<5x256xf32, #tpu.memory_space<vmem>>, vector<1x256xf32>
    %304 = vector.broadcast %303 : vector<1x256xf32> to vector<4x256xf32>
    %305 = arith.mulf %302, %304 : vector<4x256xf32>
    %c0_128 = arith.constant 0 : index
    %c0_129 = arith.constant 0 : index
    %306 = vector.load %arg11[%c0_128, %c0_129] : memref<4x25xf32, #tpu.memory_space<vmem>>, vector<4x1xf32>
    %307 = vector.broadcast %306 : vector<4x1xf32> to vector<4x256xf32>
    %308 = arith.mulf %305, %307 : vector<4x256xf32>
    %309 = arith.addf %300, %308 : vector<4x256xf32>
    %c1_i32_130 = arith.constant 1 : i32
    %310 = tpu.dynamic_rotate %301 by %c1_i32_130 dim 1 : vector<4x256xf32>, i32 -> vector<4x256xf32>
    %c1_131 = arith.constant 1 : index
    %c0_132 = arith.constant 0 : index
    %311 = vector.load %arg14[%c1_131, %c0_132] : memref<5x256xf32, #tpu.memory_space<vmem>>, vector<1x256xf32>
    %312 = vector.broadcast %311 : vector<1x256xf32> to vector<4x256xf32>
    %313 = arith.mulf %310, %312 : vector<4x256xf32>
    %c0_133 = arith.constant 0 : index
    %c1_134 = arith.constant 1 : index
    %314 = vector.load %arg11[%c0_133, %c1_134] : memref<4x25xf32, #tpu.memory_space<vmem>>, vector<4x1xf32>
    %315 = vector.broadcast %314 : vector<4x1xf32> to vector<4x256xf32>
    %316 = arith.mulf %313, %315 : vector<4x256xf32>
    %317 = arith.addf %309, %316 : vector<4x256xf32>
    %c0_135 = arith.constant 0 : index
    %c2_136 = arith.constant 2 : index
    %318 = vector.load %arg11[%c0_135, %c2_136] : memref<4x25xf32, #tpu.memory_space<vmem>>, vector<4x1xf32>
    %319 = vector.broadcast %318 : vector<4x1xf32> to vector<4x256xf32>
    %320 = arith.mulf %301, %319 : vector<4x256xf32>
    %321 = arith.addf %317, %320 : vector<4x256xf32>
    %c255_i32_137 = arith.constant 255 : i32
    %322 = tpu.dynamic_rotate %301 by %c255_i32_137 dim 1 : vector<4x256xf32>, i32 -> vector<4x256xf32>
    %c3_138 = arith.constant 3 : index
    %c0_139 = arith.constant 0 : index
    %323 = vector.load %arg14[%c3_138, %c0_139] : memref<5x256xf32, #tpu.memory_space<vmem>>, vector<1x256xf32>
    %324 = vector.broadcast %323 : vector<1x256xf32> to vector<4x256xf32>
    %325 = arith.mulf %322, %324 : vector<4x256xf32>
    %c0_140 = arith.constant 0 : index
    %c3_141 = arith.constant 3 : index
    %326 = vector.load %arg11[%c0_140, %c3_141] : memref<4x25xf32, #tpu.memory_space<vmem>>, vector<4x1xf32>
    %327 = vector.broadcast %326 : vector<4x1xf32> to vector<4x256xf32>
    %328 = arith.mulf %325, %327 : vector<4x256xf32>
    %329 = arith.addf %321, %328 : vector<4x256xf32>
    %c254_i32_142 = arith.constant 254 : i32
    %330 = tpu.dynamic_rotate %301 by %c254_i32_142 dim 1 : vector<4x256xf32>, i32 -> vector<4x256xf32>
    %c4_143 = arith.constant 4 : index
    %c0_144 = arith.constant 0 : index
    %331 = vector.load %arg14[%c4_143, %c0_144] : memref<5x256xf32, #tpu.memory_space<vmem>>, vector<1x256xf32>
    %332 = vector.broadcast %331 : vector<1x256xf32> to vector<4x256xf32>
    %333 = arith.mulf %330, %332 : vector<4x256xf32>
    %c0_145 = arith.constant 0 : index
    %c4_146 = arith.constant 4 : index
    %334 = vector.load %arg11[%c0_145, %c4_146] : memref<4x25xf32, #tpu.memory_space<vmem>>, vector<4x1xf32>
    %335 = vector.broadcast %334 : vector<4x1xf32> to vector<4x256xf32>
    %336 = arith.mulf %333, %335 : vector<4x256xf32>
    %337 = arith.addf %329, %336 : vector<4x256xf32>
    %c0_147 = arith.constant 0 : index
    %c112_148 = arith.constant 112 : index
    %338 = vector.load %arg17[%c0_147, %c112_148] : memref<4x512xf32, #tpu.memory_space<vmem>>, vector<4x256xf32>
    %c2_i32_149 = arith.constant 2 : i32
    %339 = tpu.dynamic_rotate %338 by %c2_i32_149 dim 1 : vector<4x256xf32>, i32 -> vector<4x256xf32>
    %c0_150 = arith.constant 0 : index
    %c0_151 = arith.constant 0 : index
    %340 = vector.load %arg14[%c0_150, %c0_151] : memref<5x256xf32, #tpu.memory_space<vmem>>, vector<1x256xf32>
    %341 = vector.broadcast %340 : vector<1x256xf32> to vector<4x256xf32>
    %342 = arith.mulf %339, %341 : vector<4x256xf32>
    %c0_152 = arith.constant 0 : index
    %c5_153 = arith.constant 5 : index
    %343 = vector.load %arg11[%c0_152, %c5_153] : memref<4x25xf32, #tpu.memory_space<vmem>>, vector<4x1xf32>
    %344 = vector.broadcast %343 : vector<4x1xf32> to vector<4x256xf32>
    %345 = arith.mulf %342, %344 : vector<4x256xf32>
    %346 = arith.addf %337, %345 : vector<4x256xf32>
    %c1_i32_154 = arith.constant 1 : i32
    %347 = tpu.dynamic_rotate %338 by %c1_i32_154 dim 1 : vector<4x256xf32>, i32 -> vector<4x256xf32>
    %c1_155 = arith.constant 1 : index
    %c0_156 = arith.constant 0 : index
    %348 = vector.load %arg14[%c1_155, %c0_156] : memref<5x256xf32, #tpu.memory_space<vmem>>, vector<1x256xf32>
    %349 = vector.broadcast %348 : vector<1x256xf32> to vector<4x256xf32>
    %350 = arith.mulf %347, %349 : vector<4x256xf32>
    %c0_157 = arith.constant 0 : index
    %c6_158 = arith.constant 6 : index
    %351 = vector.load %arg11[%c0_157, %c6_158] : memref<4x25xf32, #tpu.memory_space<vmem>>, vector<4x1xf32>
    %352 = vector.broadcast %351 : vector<4x1xf32> to vector<4x256xf32>
    %353 = arith.mulf %350, %352 : vector<4x256xf32>
    %354 = arith.addf %346, %353 : vector<4x256xf32>
    %c0_159 = arith.constant 0 : index
    %c7_160 = arith.constant 7 : index
    %355 = vector.load %arg11[%c0_159, %c7_160] : memref<4x25xf32, #tpu.memory_space<vmem>>, vector<4x1xf32>
    %356 = vector.broadcast %355 : vector<4x1xf32> to vector<4x256xf32>
    %357 = arith.mulf %338, %356 : vector<4x256xf32>
    %358 = arith.addf %354, %357 : vector<4x256xf32>
    %c255_i32_161 = arith.constant 255 : i32
    %359 = tpu.dynamic_rotate %338 by %c255_i32_161 dim 1 : vector<4x256xf32>, i32 -> vector<4x256xf32>
    %c3_162 = arith.constant 3 : index
    %c0_163 = arith.constant 0 : index
    %360 = vector.load %arg14[%c3_162, %c0_163] : memref<5x256xf32, #tpu.memory_space<vmem>>, vector<1x256xf32>
    %361 = vector.broadcast %360 : vector<1x256xf32> to vector<4x256xf32>
    %362 = arith.mulf %359, %361 : vector<4x256xf32>
    %c0_164 = arith.constant 0 : index
    %c8_165 = arith.constant 8 : index
    %363 = vector.load %arg11[%c0_164, %c8_165] : memref<4x25xf32, #tpu.memory_space<vmem>>, vector<4x1xf32>
    %364 = vector.broadcast %363 : vector<4x1xf32> to vector<4x256xf32>
    %365 = arith.mulf %362, %364 : vector<4x256xf32>
    %366 = arith.addf %358, %365 : vector<4x256xf32>
    %c254_i32_166 = arith.constant 254 : i32
    %367 = tpu.dynamic_rotate %338 by %c254_i32_166 dim 1 : vector<4x256xf32>, i32 -> vector<4x256xf32>
    %c4_167 = arith.constant 4 : index
    %c0_168 = arith.constant 0 : index
    %368 = vector.load %arg14[%c4_167, %c0_168] : memref<5x256xf32, #tpu.memory_space<vmem>>, vector<1x256xf32>
    %369 = vector.broadcast %368 : vector<1x256xf32> to vector<4x256xf32>
    %370 = arith.mulf %367, %369 : vector<4x256xf32>
    %c0_169 = arith.constant 0 : index
    %c9_170 = arith.constant 9 : index
    %371 = vector.load %arg11[%c0_169, %c9_170] : memref<4x25xf32, #tpu.memory_space<vmem>>, vector<4x1xf32>
    %372 = vector.broadcast %371 : vector<4x1xf32> to vector<4x256xf32>
    %373 = arith.mulf %370, %372 : vector<4x256xf32>
    %374 = arith.addf %366, %373 : vector<4x256xf32>
    %c0_171 = arith.constant 0 : index
    %c128_172 = arith.constant 128 : index
    %375 = vector.load %arg17[%c0_171, %c128_172] : memref<4x512xf32, #tpu.memory_space<vmem>>, vector<4x256xf32>
    %c2_i32_173 = arith.constant 2 : i32
    %376 = tpu.dynamic_rotate %375 by %c2_i32_173 dim 1 : vector<4x256xf32>, i32 -> vector<4x256xf32>
    %c0_174 = arith.constant 0 : index
    %c0_175 = arith.constant 0 : index
    %377 = vector.load %arg14[%c0_174, %c0_175] : memref<5x256xf32, #tpu.memory_space<vmem>>, vector<1x256xf32>
    %378 = vector.broadcast %377 : vector<1x256xf32> to vector<4x256xf32>
    %379 = arith.mulf %376, %378 : vector<4x256xf32>
    %c0_176 = arith.constant 0 : index
    %c10_177 = arith.constant 10 : index
    %380 = vector.load %arg11[%c0_176, %c10_177] : memref<4x25xf32, #tpu.memory_space<vmem>>, vector<4x1xf32>
    %381 = vector.broadcast %380 : vector<4x1xf32> to vector<4x256xf32>
    %382 = arith.mulf %379, %381 : vector<4x256xf32>
    %383 = arith.addf %374, %382 : vector<4x256xf32>
    %c1_i32_178 = arith.constant 1 : i32
    %384 = tpu.dynamic_rotate %375 by %c1_i32_178 dim 1 : vector<4x256xf32>, i32 -> vector<4x256xf32>
    %c1_179 = arith.constant 1 : index
    %c0_180 = arith.constant 0 : index
    %385 = vector.load %arg14[%c1_179, %c0_180] : memref<5x256xf32, #tpu.memory_space<vmem>>, vector<1x256xf32>
    %386 = vector.broadcast %385 : vector<1x256xf32> to vector<4x256xf32>
    %387 = arith.mulf %384, %386 : vector<4x256xf32>
    %c0_181 = arith.constant 0 : index
    %c11_182 = arith.constant 11 : index
    %388 = vector.load %arg11[%c0_181, %c11_182] : memref<4x25xf32, #tpu.memory_space<vmem>>, vector<4x1xf32>
    %389 = vector.broadcast %388 : vector<4x1xf32> to vector<4x256xf32>
    %390 = arith.mulf %387, %389 : vector<4x256xf32>
    %391 = arith.addf %383, %390 : vector<4x256xf32>
    %c0_183 = arith.constant 0 : index
    %c12_184 = arith.constant 12 : index
    %392 = vector.load %arg11[%c0_183, %c12_184] : memref<4x25xf32, #tpu.memory_space<vmem>>, vector<4x1xf32>
    %393 = vector.broadcast %392 : vector<4x1xf32> to vector<4x256xf32>
    %394 = arith.mulf %375, %393 : vector<4x256xf32>
    %395 = arith.addf %391, %394 : vector<4x256xf32>
    %c255_i32_185 = arith.constant 255 : i32
    %396 = tpu.dynamic_rotate %375 by %c255_i32_185 dim 1 : vector<4x256xf32>, i32 -> vector<4x256xf32>
    %c3_186 = arith.constant 3 : index
    %c0_187 = arith.constant 0 : index
    %397 = vector.load %arg14[%c3_186, %c0_187] : memref<5x256xf32, #tpu.memory_space<vmem>>, vector<1x256xf32>
    %398 = vector.broadcast %397 : vector<1x256xf32> to vector<4x256xf32>
    %399 = arith.mulf %396, %398 : vector<4x256xf32>
    %c0_188 = arith.constant 0 : index
    %c13_189 = arith.constant 13 : index
    %400 = vector.load %arg11[%c0_188, %c13_189] : memref<4x25xf32, #tpu.memory_space<vmem>>, vector<4x1xf32>
    %401 = vector.broadcast %400 : vector<4x1xf32> to vector<4x256xf32>
    %402 = arith.mulf %399, %401 : vector<4x256xf32>
    %403 = arith.addf %395, %402 : vector<4x256xf32>
    %c254_i32_190 = arith.constant 254 : i32
    %404 = tpu.dynamic_rotate %375 by %c254_i32_190 dim 1 : vector<4x256xf32>, i32 -> vector<4x256xf32>
    %c4_191 = arith.constant 4 : index
    %c0_192 = arith.constant 0 : index
    %405 = vector.load %arg14[%c4_191, %c0_192] : memref<5x256xf32, #tpu.memory_space<vmem>>, vector<1x256xf32>
    %406 = vector.broadcast %405 : vector<1x256xf32> to vector<4x256xf32>
    %407 = arith.mulf %404, %406 : vector<4x256xf32>
    %c0_193 = arith.constant 0 : index
    %c14_194 = arith.constant 14 : index
    %408 = vector.load %arg11[%c0_193, %c14_194] : memref<4x25xf32, #tpu.memory_space<vmem>>, vector<4x1xf32>
    %409 = vector.broadcast %408 : vector<4x1xf32> to vector<4x256xf32>
    %410 = arith.mulf %407, %409 : vector<4x256xf32>
    %411 = arith.addf %403, %410 : vector<4x256xf32>
    %c0_195 = arith.constant 0 : index
    %c144_196 = arith.constant 144 : index
    %412 = vector.load %arg17[%c0_195, %c144_196] : memref<4x512xf32, #tpu.memory_space<vmem>>, vector<4x256xf32>
    %c2_i32_197 = arith.constant 2 : i32
    %413 = tpu.dynamic_rotate %412 by %c2_i32_197 dim 1 : vector<4x256xf32>, i32 -> vector<4x256xf32>
    %c0_198 = arith.constant 0 : index
    %c0_199 = arith.constant 0 : index
    %414 = vector.load %arg14[%c0_198, %c0_199] : memref<5x256xf32, #tpu.memory_space<vmem>>, vector<1x256xf32>
    %415 = vector.broadcast %414 : vector<1x256xf32> to vector<4x256xf32>
    %416 = arith.mulf %413, %415 : vector<4x256xf32>
    %c0_200 = arith.constant 0 : index
    %c15_201 = arith.constant 15 : index
    %417 = vector.load %arg11[%c0_200, %c15_201] : memref<4x25xf32, #tpu.memory_space<vmem>>, vector<4x1xf32>
    %418 = vector.broadcast %417 : vector<4x1xf32> to vector<4x256xf32>
    %419 = arith.mulf %416, %418 : vector<4x256xf32>
    %420 = arith.addf %411, %419 : vector<4x256xf32>
    %c1_i32_202 = arith.constant 1 : i32
    %421 = tpu.dynamic_rotate %412 by %c1_i32_202 dim 1 : vector<4x256xf32>, i32 -> vector<4x256xf32>
    %c1_203 = arith.constant 1 : index
    %c0_204 = arith.constant 0 : index
    %422 = vector.load %arg14[%c1_203, %c0_204] : memref<5x256xf32, #tpu.memory_space<vmem>>, vector<1x256xf32>
    %423 = vector.broadcast %422 : vector<1x256xf32> to vector<4x256xf32>
    %424 = arith.mulf %421, %423 : vector<4x256xf32>
    %c0_205 = arith.constant 0 : index
    %c16_206 = arith.constant 16 : index
    %425 = vector.load %arg11[%c0_205, %c16_206] : memref<4x25xf32, #tpu.memory_space<vmem>>, vector<4x1xf32>
    %426 = vector.broadcast %425 : vector<4x1xf32> to vector<4x256xf32>
    %427 = arith.mulf %424, %426 : vector<4x256xf32>
    %428 = arith.addf %420, %427 : vector<4x256xf32>
    %c0_207 = arith.constant 0 : index
    %c17_208 = arith.constant 17 : index
    %429 = vector.load %arg11[%c0_207, %c17_208] : memref<4x25xf32, #tpu.memory_space<vmem>>, vector<4x1xf32>
    %430 = vector.broadcast %429 : vector<4x1xf32> to vector<4x256xf32>
    %431 = arith.mulf %412, %430 : vector<4x256xf32>
    %432 = arith.addf %428, %431 : vector<4x256xf32>
    %c255_i32_209 = arith.constant 255 : i32
    %433 = tpu.dynamic_rotate %412 by %c255_i32_209 dim 1 : vector<4x256xf32>, i32 -> vector<4x256xf32>
    %c3_210 = arith.constant 3 : index
    %c0_211 = arith.constant 0 : index
    %434 = vector.load %arg14[%c3_210, %c0_211] : memref<5x256xf32, #tpu.memory_space<vmem>>, vector<1x256xf32>
    %435 = vector.broadcast %434 : vector<1x256xf32> to vector<4x256xf32>
    %436 = arith.mulf %433, %435 : vector<4x256xf32>
    %c0_212 = arith.constant 0 : index
    %c18_213 = arith.constant 18 : index
    %437 = vector.load %arg11[%c0_212, %c18_213] : memref<4x25xf32, #tpu.memory_space<vmem>>, vector<4x1xf32>
    %438 = vector.broadcast %437 : vector<4x1xf32> to vector<4x256xf32>
    %439 = arith.mulf %436, %438 : vector<4x256xf32>
    %440 = arith.addf %432, %439 : vector<4x256xf32>
    %c254_i32_214 = arith.constant 254 : i32
    %441 = tpu.dynamic_rotate %412 by %c254_i32_214 dim 1 : vector<4x256xf32>, i32 -> vector<4x256xf32>
    %c4_215 = arith.constant 4 : index
    %c0_216 = arith.constant 0 : index
    %442 = vector.load %arg14[%c4_215, %c0_216] : memref<5x256xf32, #tpu.memory_space<vmem>>, vector<1x256xf32>
    %443 = vector.broadcast %442 : vector<1x256xf32> to vector<4x256xf32>
    %444 = arith.mulf %441, %443 : vector<4x256xf32>
    %c0_217 = arith.constant 0 : index
    %c19_218 = arith.constant 19 : index
    %445 = vector.load %arg11[%c0_217, %c19_218] : memref<4x25xf32, #tpu.memory_space<vmem>>, vector<4x1xf32>
    %446 = vector.broadcast %445 : vector<4x1xf32> to vector<4x256xf32>
    %447 = arith.mulf %444, %446 : vector<4x256xf32>
    %448 = arith.addf %440, %447 : vector<4x256xf32>
    %c0_219 = arith.constant 0 : index
    %c160_220 = arith.constant 160 : index
    %449 = vector.load %arg17[%c0_219, %c160_220] : memref<4x512xf32, #tpu.memory_space<vmem>>, vector<4x256xf32>
    %c2_i32_221 = arith.constant 2 : i32
    %450 = tpu.dynamic_rotate %449 by %c2_i32_221 dim 1 : vector<4x256xf32>, i32 -> vector<4x256xf32>
    %c0_222 = arith.constant 0 : index
    %c0_223 = arith.constant 0 : index
    %451 = vector.load %arg14[%c0_222, %c0_223] : memref<5x256xf32, #tpu.memory_space<vmem>>, vector<1x256xf32>
    %452 = vector.broadcast %451 : vector<1x256xf32> to vector<4x256xf32>
    %453 = arith.mulf %450, %452 : vector<4x256xf32>
    %c0_224 = arith.constant 0 : index
    %c20_225 = arith.constant 20 : index
    %454 = vector.load %arg11[%c0_224, %c20_225] : memref<4x25xf32, #tpu.memory_space<vmem>>, vector<4x1xf32>
    %455 = vector.broadcast %454 : vector<4x1xf32> to vector<4x256xf32>
    %456 = arith.mulf %453, %455 : vector<4x256xf32>
    %457 = arith.addf %448, %456 : vector<4x256xf32>
    %c1_i32_226 = arith.constant 1 : i32
    %458 = tpu.dynamic_rotate %449 by %c1_i32_226 dim 1 : vector<4x256xf32>, i32 -> vector<4x256xf32>
    %c1_227 = arith.constant 1 : index
    %c0_228 = arith.constant 0 : index
    %459 = vector.load %arg14[%c1_227, %c0_228] : memref<5x256xf32, #tpu.memory_space<vmem>>, vector<1x256xf32>
    %460 = vector.broadcast %459 : vector<1x256xf32> to vector<4x256xf32>
    %461 = arith.mulf %458, %460 : vector<4x256xf32>
    %c0_229 = arith.constant 0 : index
    %c21_230 = arith.constant 21 : index
    %462 = vector.load %arg11[%c0_229, %c21_230] : memref<4x25xf32, #tpu.memory_space<vmem>>, vector<4x1xf32>
    %463 = vector.broadcast %462 : vector<4x1xf32> to vector<4x256xf32>
    %464 = arith.mulf %461, %463 : vector<4x256xf32>
    %465 = arith.addf %457, %464 : vector<4x256xf32>
    %c0_231 = arith.constant 0 : index
    %c22_232 = arith.constant 22 : index
    %466 = vector.load %arg11[%c0_231, %c22_232] : memref<4x25xf32, #tpu.memory_space<vmem>>, vector<4x1xf32>
    %467 = vector.broadcast %466 : vector<4x1xf32> to vector<4x256xf32>
    %468 = arith.mulf %449, %467 : vector<4x256xf32>
    %469 = arith.addf %465, %468 : vector<4x256xf32>
    %c255_i32_233 = arith.constant 255 : i32
    %470 = tpu.dynamic_rotate %449 by %c255_i32_233 dim 1 : vector<4x256xf32>, i32 -> vector<4x256xf32>
    %c3_234 = arith.constant 3 : index
    %c0_235 = arith.constant 0 : index
    %471 = vector.load %arg14[%c3_234, %c0_235] : memref<5x256xf32, #tpu.memory_space<vmem>>, vector<1x256xf32>
    %472 = vector.broadcast %471 : vector<1x256xf32> to vector<4x256xf32>
    %473 = arith.mulf %470, %472 : vector<4x256xf32>
    %c0_236 = arith.constant 0 : index
    %c23_237 = arith.constant 23 : index
    %474 = vector.load %arg11[%c0_236, %c23_237] : memref<4x25xf32, #tpu.memory_space<vmem>>, vector<4x1xf32>
    %475 = vector.broadcast %474 : vector<4x1xf32> to vector<4x256xf32>
    %476 = arith.mulf %473, %475 : vector<4x256xf32>
    %477 = arith.addf %469, %476 : vector<4x256xf32>
    %c254_i32_238 = arith.constant 254 : i32
    %478 = tpu.dynamic_rotate %449 by %c254_i32_238 dim 1 : vector<4x256xf32>, i32 -> vector<4x256xf32>
    %c4_239 = arith.constant 4 : index
    %c0_240 = arith.constant 0 : index
    %479 = vector.load %arg14[%c4_239, %c0_240] : memref<5x256xf32, #tpu.memory_space<vmem>>, vector<1x256xf32>
    %480 = vector.broadcast %479 : vector<1x256xf32> to vector<4x256xf32>
    %481 = arith.mulf %478, %480 : vector<4x256xf32>
    %c0_241 = arith.constant 0 : index
    %c24_242 = arith.constant 24 : index
    %482 = vector.load %arg11[%c0_241, %c24_242] : memref<4x25xf32, #tpu.memory_space<vmem>>, vector<4x1xf32>
    %483 = vector.broadcast %482 : vector<4x1xf32> to vector<4x256xf32>
    %484 = arith.mulf %481, %483 : vector<4x256xf32>
    %485 = arith.addf %477, %484 : vector<4x256xf32>
    %c0_243 = arith.constant 0 : index
    %c0_244 = arith.constant 0 : index
    %486 = vector.load %arg12[%c0_243, %c0_244] : memref<4x1xf32, #tpu.memory_space<vmem>>, vector<4x1xf32>
    %487 = vector.broadcast %486 : vector<4x1xf32> to vector<4x256xf32>
    %488 = arith.mulf %485, %487 : vector<4x256xf32>
    %c0_245 = arith.constant 0 : index
    %c0_246 = arith.constant 0 : index
    %489 = vector.load %arg13[%c0_245, %c0_246] : memref<4x1xf32, #tpu.memory_space<vmem>>, vector<4x1xf32>
    %490 = vector.broadcast %489 : vector<4x1xf32> to vector<4x256xf32>
    %491 = arith.addf %488, %490 : vector<4x256xf32>
    %492 = vector.extract_strided_slice %1 {offsets = [0, 0], sizes = [4, 256], strides = [1, 1]} : vector<8x256xf32> to vector<4x256xf32>
    %493 = arith.addf %295, %492 : vector<4x256xf32>
    %c0_247 = arith.constant 0 : index
    %c0_248 = arith.constant 0 : index
    %c0_249 = arith.constant 0 : index
    %494 = vector.load %arg15[%c0_247, %c0_248, %c0_249] : memref<1x8x256xf32, #tpu.memory_space<vmem>>, vector<1x4x256xf32>
    %495 = vector.shape_cast %494 : vector<1x4x256xf32> to vector<4x256xf32>
    %496 = vector.shape_cast %493 : vector<4x256xf32> to vector<1x4x256xf32>
    tpu.vector_store %arg15[%c0_247, %c0_248, %c0_249], %496 {strides = array<i32>} : memref<1x8x256xf32, #tpu.memory_space<vmem>>, vector<1x4x256xf32>,
    %497 = vector.extract_strided_slice %1 {offsets = [4, 0], sizes = [4, 256], strides = [1, 1]} : vector<8x256xf32> to vector<4x256xf32>
    %498 = arith.addf %491, %497 : vector<4x256xf32>
    %c0_250 = arith.constant 0 : index
    %c4_251 = arith.constant 4 : index
    %c0_252 = arith.constant 0 : index
    %499 = vector.load %arg15[%c0_250, %c4_251, %c0_252] : memref<1x8x256xf32, #tpu.memory_space<vmem>>, vector<1x4x256xf32>
    %500 = vector.shape_cast %499 : vector<1x4x256xf32> to vector<4x256xf32>
    %501 = vector.shape_cast %498 : vector<4x256xf32> to vector<1x4x256xf32>
    tpu.vector_store %arg15[%c0_250, %c4_251, %c0_252], %501 {strides = array<i32>} : memref<1x8x256xf32, #tpu.memory_space<vmem>>, vector<1x4x256xf32>,
    return
  }
  func.func @transform_0(%arg0: i32) -> (i32, i32, i32) {
    %c0_i32 = arith.constant 0 : i32
    %c0_i32_0 = arith.constant 0 : i32
    %c0_i32_1 = arith.constant 0 : i32
    return %arg0, %c0_i32, %c0_i32_0 : i32, i32, i32
  }
  func.func @transform_1(%arg0: i32) -> (i32, i32) {
    %c0_i32 = arith.constant 0 : i32
    %c0_i32_0 = arith.constant 0 : i32
    %c0_i32_1 = arith.constant 0 : i32
    return %c0_i32, %c0_i32_0 : i32, i32
  }
  func.func @transform_2(%arg0: i32) -> (i32, i32) {
    %c0_i32 = arith.constant 0 : i32
    %c0_i32_0 = arith.constant 0 : i32
    %c0_i32_1 = arith.constant 0 : i32
    return %c0_i32, %c0_i32_0 : i32, i32
  }
  func.func @transform_3(%arg0: i32) -> (i32, i32) {
    %c0_i32 = arith.constant 0 : i32
    %c0_i32_0 = arith.constant 0 : i32
    %c0_i32_1 = arith.constant 0 : i32
    return %c0_i32, %c0_i32_0 : i32, i32
  }
  func.func @transform_4(%arg0: i32) -> (i32, i32) {
    %c0_i32 = arith.constant 0 : i32
    %c0_i32_0 = arith.constant 0 : i32
    %c0_i32_1 = arith.constant 0 : i32
    return %c0_i32, %c0_i32_0 : i32, i32
  }
  func.func @transform_5(%arg0: i32) -> (i32, i32) {
    %c0_i32 = arith.constant 0 : i32
    %c0_i32_0 = arith.constant 0 : i32
    %c0_i32_1 = arith.constant 0 : i32
    return %c0_i32, %c0_i32_0 : i32, i32
  }
  func.func @transform_6(%arg0: i32) -> (i32, i32) {
    %c0_i32 = arith.constant 0 : i32
    %c0_i32_0 = arith.constant 0 : i32
    %c0_i32_1 = arith.constant 0 : i32
    return %c0_i32, %c0_i32_0 : i32, i32
  }
  func.func @transform_7(%arg0: i32) -> (i32, i32) {
    %c0_i32 = arith.constant 0 : i32
    %c0_i32_0 = arith.constant 0 : i32
    %c0_i32_1 = arith.constant 0 : i32
    return %c0_i32, %c0_i32_0 : i32, i32
  }
  func.func @transform_8(%arg0: i32) -> (i32, i32) {
    %c0_i32 = arith.constant 0 : i32
    %c0_i32_0 = arith.constant 0 : i32
    %c0_i32_1 = arith.constant 0 : i32
    return %c0_i32, %c0_i32_0 : i32, i32
  }
  func.func @transform_9(%arg0: i32) -> (i32, i32) {
    %c0_i32 = arith.constant 0 : i32
    %c0_i32_0 = arith.constant 0 : i32
    %c0_i32_1 = arith.constant 0 : i32
    return %c0_i32, %c0_i32_0 : i32, i32
  }
  func.func @transform_10(%arg0: i32) -> (i32, i32) {
    %c0_i32 = arith.constant 0 : i32
    %c0_i32_0 = arith.constant 0 : i32
    %c0_i32_1 = arith.constant 0 : i32
    return %c0_i32, %c0_i32_0 : i32, i32
  }
  func.func @transform_11(%arg0: i32) -> (i32, i32) {
    %c0_i32 = arith.constant 0 : i32
    %c0_i32_0 = arith.constant 0 : i32
    %c0_i32_1 = arith.constant 0 : i32
    return %c0_i32, %c0_i32_0 : i32, i32
  }
  func.func @transform_12(%arg0: i32) -> (i32, i32) {
    %c0_i32 = arith.constant 0 : i32
    %c0_i32_0 = arith.constant 0 : i32
    %c0_i32_1 = arith.constant 0 : i32
    return %c0_i32, %c0_i32_0 : i32, i32
  }
  func.func @transform_13(%arg0: i32) -> (i32, i32) {
    %c0_i32 = arith.constant 0 : i32
    %c0_i32_0 = arith.constant 0 : i32
    %c0_i32_1 = arith.constant 0 : i32
    return %c0_i32, %c0_i32_0 : i32, i32
  }
  func.func @transform_14(%arg0: i32) -> (i32, i32, i32) {
    %c0_i32 = arith.constant 0 : i32
    %c0_i32_0 = arith.constant 0 : i32
    %c0_i32_1 = arith.constant 0 : i32
    return %arg0, %c0_i32, %c0_i32_0 : i32, i32, i32
  }
}

</mosaic_0001>

<bundles_post_ra>
// kernel: ghost_bottleneck.1
= control target key start
LH: loop header
LB: loop body
LE: loop exit
PB: predicated region body
PF: predicated region fallthrough
CT: control target
= control target key end

     0   :  { %s2456_s29 = smov 0   ;;  %s3649_s0 = inlined_call_operand.vmem [shape: f32[2,8,256], index: 0, kind: input, shape index: {}]   ;;  %s3650_s1 = inlined_call_operand.vmem [shape: f32[2,8], index: 1, kind: input, shape index: {}]   ;;  %s3651_s2 = inlined_call_operand.vmem [shape: f32[2,1], index: 2, kind: input, shape index: {}]   ;;  %s3652_s3 = inlined_call_operand.vmem [shape: f32[2,1], index: 3, kind: input, shape index: {}]   ;;  %s3653_s4 = inlined_call_operand.vmem [shape: f32[2,25], index: 4, kind: input, shape index: {}]   ;;  %s3654_s5 = inlined_call_operand.vmem [shape: f32[2,1], index: 5, kind: input, shape index: {}]   ;;  %s3655_s6 = inlined_call_operand.vmem [shape: f32[2,1], index: 6, kind: input, shape index: {}]   ;;  %s3656_s7 = inlined_call_operand.vmem [shape: f32[4,4], index: 7, kind: input, shape index: {}]   ;;  %s3657_s8 = inlined_call_operand.vmem [shape: f32[4,1], index: 8, kind: input, shape index: {}]   ;;  %s3658_s9 = inlined_call_operand.vmem [shape: f32[4,1], index: 9, kind: input, shape index: {}]   ;;  %s3659_s10 = inlined_call_operand.vmem [shape: f32[4,25], index: 10, kind: input, shape index: {}]   ;;  %s3660_s11 = inlined_call_operand.vmem [shape: f32[4,1], index: 11, kind: input, shape index: {}]   ;;  %s3661_s12 = inlined_call_operand.vmem [shape: f32[4,1], index: 12, kind: input, shape index: {}]   ;;  %s3662_s13 = inlined_call_operand.vmem [shape: f32[5,256], index: 13, kind: input, shape index: {}]   ;;  %s3663_s14 = inlined_call_operand.vmem [shape: f32[2,8,256], index: 14, kind: output, shape index: {}]  }
   0x1 LB: > { %s2181_s30 = sadd.s32 4294967295, %s2342_s29   ;;  %p2185_p0 = scmp.ge.s32.totalorder %s2342_s29, 1  ;;  %s2342_s29 = sphi %s2456_s29, %s24_s29  }
   0x2   : > { %p412_p1 = scmp.lt.s32.totalorder %s2342_s29, 3 }
   0x4   : > { %p413_p2 = pnand %p2185_p0, %p412_p1 }
   0x6   : > { %416 = sbr.rel (%p413_p2) target bundleno = 1026 (0x402), region = 76 }
   0xd   : > { %v470_v0 = vld [vmem:[%s3650_s1] sm:$0x3]  ;;  %v2344_v1 = vmov 2   ;;  %v3676_v2 = vmov 0   ;;  %v2346_v3 = vmov 3   ;;  %v2347_v4 = vmov 1  }
   0xe   : > { %2248 = vset.pattern.permute.xlu1 %v2344_v1  ;;  %2246 = vset.pattern.permute.xlu0 %v3676_v2  ;;  %v2348_v5 = vmov 4   ;;  %v2349_v6 = vmov 5   ;;  %v598_v7 = vld [vmem:[%s3651_s2] sm:$0x3]  ;;  %v2350_v8 = vmov 6   ;;  %v2351_v9 = vmov 7  }
   0xf   : > { %503 = vperm.xlu1 %2248, %v470_v0   ;;  %473 = vperm.xlu0 %2246, %v470_v0   ;;  %v724_v10 = vld [vmem:[%s3653_s4] sm:$0x3]  ;;  %v2352_v16 = vmov 8   ;;  %v2353_v19 = vmov 9   ;;  %v3681_v21 = vmov 10   ;;  %v2355_v23 = vmov 17  }
  0x10   : > { %v606_v11 = vld [vmem:[%s3652_s3] sm:$0x3]  ;;  %v3679_v25 = vmov 11   ;;  %v3686_v27 = vmov 12   ;;  %v3680_v28 = vmov 14   ;;  %v2359_v31 = vmov 22  }
  0x11   : > { %v829_v12 = vld [vmem:[%s3653_s4] sm:$0x3]  ;;  %v3675_v32 = vmov 15   ;;  %v2361_v33 = vmov 0.0   ;;  %v3678_v35 = vmov 13   ;;  %v3674_v36 = vmov 16  }
  0x12   : > { %v894_v13 = vld [vmem:[%s3653_s4] sm:$0x3]  ;;  %626 = vst [vmem:[#allocation2] sm:$0x3] %v2361_v33  ;;  %627 = vst [vmem:[#allocation2 + $0x6] sm:$0x3] %v2361_v33  ;;  %v476_v41 = vlaneseq }
  0x13   : > { %2249 = vset.pattern.permute.xlu1 %v2346_v3  ;;  %2247 = vset.pattern.permute.xlu0 %v2347_v4  ;;  %v797_v14 = vld [vmem:[%s3653_s4] sm:$0x3]  ;;  %1482 = vst [vmem:[#allocation3] sm:$0xf] %v2361_v33  ;;  %1483 = vst [vmem:[#allocation3 + $0xc] sm:$0xf] %v2361_v33 }
  0x14   : > { %519 = vperm.xlu1 %2249, %v470_v0   ;;  %487 = vperm.xlu0 %2247, %v470_v0   ;;  %v953_v15 = vld [vmem:[%s3653_s4] sm:$0x3]  ;;  %v3673_v38 = vmov 18   ;;  %v3667_v39 = vmov 19   ;;  %v3666_v40 = vmov 20   ;;  %p458_p3 = scmp.lt.s32.totalorder %s2181_s30, 1 }
  0x15   : > { %v876_v17 = vld [vmem:[%s3653_s4] sm:$0x3]  ;;  %v2560_v42 = vshrl.u32 %v476_v41, 7  ;;  %s2369_s27 = smov 112   ;;  %s3668_s28 = smov 32   ;;  %vm664_vm0 = vcmask 261120  }
  0x16   : > { %v971_v18 = vld [vmem:[%s3653_s4] sm:$0x3]  ;;  %s3765_s30 = smov (!%p458_p3, %s2181_s30), 1  ;;  %s2371_s15 = smov 96   ;;  %vm863_vm1 = vcmask 130048   ;;  %vm1114_vm2 = vcmask 916480  }
  0x17   : > { %v1001_v20 = vld [vmem:[%s3653_s4] sm:$0x3]  ;;  %s2199_s23 = sshll.u32 %s3765_s30, 4  ;;  %3706 = vst [vmem:[#allocation4_spill] sm:$0xff] %v2560_v42  ;;  %v2570_v43 = vsub.s32 0, %v2560_v42  ;;  %v2573_v44 = vsub.s32 1, %v2560_v42 }
  0x18   : > { %2250 = vset.pattern.permute.xlu1 %v2348_v5  ;;  %2251 = vset.pattern.permute.xlu0 %v2349_v6  ;;  %v1145_v22 = vld [vmem:[%s3653_s4] sm:$0x3]  ;;  %s2567_s26 = scalar_lea.vmem %s3649_s0, %s2199_s23  ;;  %v508_v45 = vsub.s32 2, %v2560_v42  ;;  %v524_v50 = vsub.s32 3, %v2560_v42  ;;  %v540_v55 = vsub.s32 4, %v2560_v42  ;;  %v556_v62 = vsub.s32 5, %v2560_v42  ;;  %s3189_s21 = scalar_lea.vmem %s3663_s14, %s2199_s23 }
  0x19   : > { %535 = vperm.xlu1 %2250, %v470_v0   ;;  %551 = vperm.xlu0 %2251, %v470_v0   ;;  %v1019_v24 = vld [vmem:[%s3653_s4] sm:$0x3]  ;;  %3707 = vst [vmem:[#allocation5_spill] sm:$0xff] %v2573_v44  ;;  %v469_v49 = vld [vmem:[%s2567_s26 + $0x8] sm:$0xff]  ;;  %s3670_s16 = smov 16   ;;  %s3682_s17 = smov 126  }
  0x1a   : > { %v1080_v26 = vld [vmem:[%s3653_s4] sm:$0x3]  ;;  %v483_v52 = vrot.slane %v469_v49, %v2570_v43  ;;  %v497_v54 = vrot.slane %v469_v49, %v2573_v44  ;;  %v513_v57 = vrot.slane %v469_v49, %v508_v45  ;;  %v529_v60 = vrot.slane %v469_v49, %v524_v50  ;;  %s2374_s18 = smov 2   ;;  %s2375_s19 = smov 1  }
  0x1b   : > { %v2533_v29 = vld [vmem:[%s3653_s4] sm:$0x3]  ;;  %s3684_s20 = smov 127   ;;  %vm1256_vm3 = vcmask 785408   ;;  %s3735_s30 = smov 16  }
  0x1c   : > { %v1127_v30 = vld [vmem:[%s3653_s4] sm:$0x3]  ;;  %s3736_s23 = smov 32   ;;  %s3744_s22 = smov 126  }
  0x1d   : > { %2252 = vset.pattern.permute.xlu1 %v2350_v8  ;;  %2254 = vset.pattern.permute.xlu0 %v3676_v2  ;;  %v1062_v34 = vld [vmem:[%s3653_s4] sm:$0x3] }
  0x1e   : > { %567 = vperm.xlu1 %2252, %v470_v0   ;;  %601 = vperm.xlu0 %2254, %v598_v7   ;;  %v1204_v37 = vld [vmem:[%s3653_s4] sm:$0x3] }
  0x1f   : > { %v468_v48 = vld [vmem:[%s2567_s26] sm:$0xff] }
  0x20   : > { %v479_v51 = vrot.slane %v468_v48, %v2570_v43  ;;  %v493_v53 = vrot.slane %v468_v48, %v2573_v44  ;;  %v509_v56 = vrot.slane %v468_v48, %v508_v45  ;;  %v525_v59 = vrot.slane %v468_v48, %v524_v50 }
  0x22   : > { %2253 = vset.pattern.permute.xlu1 %v2351_v9  ;;  %2257 = vset.pattern.permute.xlu0 %v2344_v1 }
  0x23   : > { %583 = vperm.xlu1 %2253, %v470_v0   ;;  %735 = vperm.xlu0 %2257, %v724_v10  }
  0x27   : > { %2255 = vset.pattern.permute.xlu1 %v3676_v2  ;;  %2259 = vset.pattern.permute.xlu0 %v2348_v5 }
  0x28   : > { %609 = vperm.xlu1 %2255, %v606_v11   ;;  %832 = vperm.xlu0 %2259, %v829_v12   ;;  %v541_v11 = vrot.slane %v468_v48, %v540_v55  ;;  %v545_v12 = vrot.slane %v469_v49, %v540_v55 }
  0x2c   : > { %2256 = vset.pattern.permute.xlu1 %v2347_v4  ;;  %2261 = vset.pattern.permute.xlu0 %v2350_v8 }
  0x2d   : > { %727 = vperm.xlu1 %2256, %v724_v10   ;;  %897 = vperm.xlu0 %2261, %v894_v13  }
  0x31   : > { %2258 = vset.pattern.permute.xlu1 %v2346_v3  ;;  %2263 = vset.pattern.permute.xlu0 %v2352_v16 }
  0x32   : > { %800 = vperm.xlu1 %2258, %v797_v14   ;;  %956 = vperm.xlu0 %2263, %v953_v15  }
  0x36   : > { %2260 = vset.pattern.permute.xlu1 %v2349_v6  ;;  %2264 = vset.pattern.permute.xlu0 %v2353_v19 }
  0x37   : > { %879 = vperm.xlu1 %2260, %v876_v17   ;;  %974 = vperm.xlu0 %2264, %v971_v18   ;;  %v557_v18 = vrot.slane %v468_v48, %v556_v62 }
  0x3b   : > { %2262 = vset.pattern.permute.xlu1 %v2351_v9  ;;  %2265 = vset.pattern.permute.xlu0 %v3681_v21  ;;  %v2191_v21 = vld [vmem:[%s3662_s13 + $0x1] ss:$8 sm:$0x3] }
  0x3c   : > { %905 = vperm.xlu1 %2262, %v894_v13   ;;  %1004 = vperm.xlu0 %2265, %v1001_v20   ;;  %v561_v20 = vrot.slane %v469_v49, %v556_v62 }
  0x40   : > { %2267 = vset.pattern.permute.xlu1 %v2355_v23  ;;  %2266 = vset.pattern.permute.xlu0 %v3679_v25  ;;  %v1739_v25 = vld [vmem:[%s3659_s10] sm:$0xf] }
  0x41   : > { %1156 = vperm.xlu1 %2267, %v1145_v22   ;;  %1022 = vperm.xlu0 %2266, %v1019_v24  }
  0x45   : > { %2268 = vset.pattern.permute.xlu1 %v3686_v27  ;;  %2271 = vset.pattern.permute.xlu0 %v3680_v28 }
  0x46   : > { %1030 = vperm.xlu1 %2268, %v1019_v24   ;;  %1083 = vperm.xlu0 %2271, %v1080_v26  }
  0x4a   : > { %2269 = vset.pattern.permute.xlu1 %v2359_v31  ;;  %2272 = vset.pattern.permute.xlu0 %v3675_v32 }
  0x4b   : > { %1298 = vperm.xlu1 %2269, %v2533_v29   ;;  %1130 = vperm.xlu0 %2272, %v1127_v30  }
  0x4f   : > { %2270 = vset.pattern.permute.xlu1 %v3678_v35  ;;  %2273 = vset.pattern.permute.xlu0 %v3674_v36  ;;  %v1675_v35 = vld [vmem:[%s3659_s10] sm:$0xf] }
  0x50   : > { %1065 = vperm.xlu1 %2270, %v1062_v34   ;;  %1148 = vperm.xlu0 %2273, %v1145_v22   ;;  %v572_v22 = vsub.s32 6, %v2560_v42 }
  0x52   : > { %v577_v55 = vrot.slane %v469_v49, %v572_v22 }
  0x54   : > { %2274 = vset.pattern.permute.xlu1 %v3673_v38  ;;  %2275 = vset.pattern.permute.xlu0 %v3667_v39 }
  0x55   : > { %1207 = vperm.xlu1 %2274, %v1204_v37  }
  0x59   : > { %2276 = vset.pattern.permute.xlu1 %v3666_v40 }
  0x8e   : > { %v504_v46 = vpop.permute.xlu1 %503  ;;  %v474_v47 = vpop.permute.xlu0 %473 }
  0x8f   : > { %v484_v63 = vmul.f32 %v479_v51, %v474_v47  ;;  %v485_v0 = vmul.f32 %v483_v52, %v474_v47  ;;  %v514_v13 = vmul.f32 %v509_v56, %v504_v46  ;;  %v515_v14 = vmul.f32 %v513_v57, %v504_v46 }
  0x90   : > { %v588_v52 = vsub.s32 7, %v2560_v42 }
  0x92   : > { %v589_v62 = vrot.slane %v468_v48, %v588_v52 }
  0x93   : > { %v520_v58 = vpop.permute.xlu1 %519  ;;  %v488_v61 = vpop.permute.xlu0 %487 }
  0x94   : > { %v498_v7 = vmul.f32 %v493_v53, %v488_v61  ;;  %v499_v10 = vmul.f32 %v497_v54, %v488_v61  ;;  %v530_v24 = vmul.f32 %v525_v59, %v520_v58  ;;  %v531_v26 = vmul.f32 %v529_v60, %v520_v58 }
  0x95   : > { %v573_v54 = vrot.slane %v468_v48, %v572_v22  ;;  %v593_v59 = vrot.slane %v469_v49, %v588_v52 }
  0x96   : > { %v500_v15 = vadd.f32 %v498_v7, %v484_v63  ;;  %v501_v17 = vadd.f32 %v499_v10, %v485_v0 }
  0x98   : > { %v516_v30 = vadd.f32 %v514_v13, %v500_v15  ;;  %v517_v33 = vadd.f32 %v515_v14, %v501_v17  ;;  %v536_v34 = vpop.permute.xlu1 %535  ;;  %v552_v37 = vpop.permute.xlu0 %551 }
  0x99   : > { %v546_v45 = vmul.f32 %v541_v11, %v536_v34  ;;  %v547_v47 = vmul.f32 %v545_v12, %v536_v34  ;;  %v562_v53 = vmul.f32 %v557_v18, %v552_v37  ;;  %v563_v46 = vmul.f32 %v561_v20, %v552_v37 }
  0x9a   : > { %v532_v50 = vadd.f32 %v530_v24, %v516_v30  ;;  %v533_v51 = vadd.f32 %v531_v26, %v517_v33 }
  0x9c   : > { %v548_v56 = vadd.f32 %v546_v45, %v532_v50  ;;  %v549_v57 = vadd.f32 %v547_v47, %v533_v51 }
  0x9d   : > { %v568_v61 = vpop.permute.xlu1 %567  ;;  %v602_v14 = vpop.permute.xlu0 %601 }
  0x9e   : > { %v564_v58 = vadd.f32 %v562_v53, %v548_v56  ;;  %v565_v60 = vadd.f32 %v563_v46, %v549_v57  ;;  %v578_v63 = vmul.f32 %v573_v54, %v568_v61  ;;  %v579_v0 = vmul.f32 %v577_v55, %v568_v61 }
  0x9f   : > { %v2367_v54 = vmov 269488144  }
  0xa0   : > { %v580_v10 = vadd.f32 %v578_v63, %v564_v58  ;;  %v581_v11 = vadd.f32 %v579_v0, %v565_v60  ;;  %v738_v55 = vunpack.c.l.s4 %v2367_v54  ;;  %v2368_v58 = vmov 1983009808  }
  0xa1   : > { %v644_v60 = vunpack.c.l.s4 %v2368_v58 }
  0xa2   : > { %v584_v7 = vpop.permute.xlu1 %583 }
  0xa3   : > { %v594_v12 = vmul.f32 %v589_v62, %v584_v7  ;;  %v595_v13 = vmul.f32 %v593_v59, %v584_v7  ;;  %v739_v59 = vunpack.c.0.s8 %v738_v55 }
  0xa5   : > { %v596_v15 = vadd.f32 %v594_v12, %v580_v10  ;;  %v597_v17 = vadd.f32 %v595_v13, %v581_v11  ;;  %v2604_v7 = vsub.s32 %v739_v59, %v2560_v42  ;;  %v645_v10 = vunpack.c.0.s8 %v644_v60 }
  0xa7   : > { %v604_v18 = vmul.f32 %v602_v14, %v596_v15  ;;  %v605_v20 = vmul.f32 %v602_v14, %v597_v17  ;;  %v610_v22 = vpop.permute.xlu1 %609  ;;  %v2608_v13 = vsub.s32 %v645_v10, %v2560_v42  ;;  %v1779_v42 = vld [vmem:[%s3659_s10] sm:$0xf] }
  0xa9   : > { %v612_v24 = vadd.f32 %v610_v22, %v604_v18  ;;  %v613_v26 = vadd.f32 %v610_v22, %v605_v20 }
  0xab   : > { %v614_v30 = vsub.f32 0.0, %v612_v24  ;;  %v615_v48 = vsub.f32 0.0, %v613_v26 }
  0xac   : > { %v2587_v49 = vpop.permute.xlu1 %727 }
  0xad   : > { %v616_v33 = vmul.f32 1.442695, %v614_v30  ;;  %v618_v34 = vmul.f32 1.442695, %v615_v48 }
  0xaf   : > { %2317 = vpow2.f32 %v616_v33 }
  0xb0   : > { %2319 = vpow2.f32 %v618_v34 }
  0xb1   : > { %v2589_v37 = vpop.permute.xlu1 %800 }
  0xb6   : > { %v2591_v45 = vpop.permute.xlu1 %879 }
  0xb9   : > { %v2318_v47 = vpop.eup %2317 }
  0xba   : > { %v2320_v50 = vpop.eup %2319  ;;  %v620_v51 = vadd.f32 1.0, %v2318_v47 }
  0xbb   : > { %v621_v52 = vadd.f32 1.0, %v2320_v50  ;;  %v2593_v53 = vpop.permute.xlu1 %905 }
  0xbc   : > { %2321 = vrcp.f32 %v620_v51 }
  0xbd   : > { %2323 = vrcp.f32 %v621_v52 }
  0xc0   : > { %v2595_v46 = vpop.permute.xlu1 %1156 }
  0xc5   : > { %v1031_v63 = vpop.permute.xlu1 %1030 }
  0xc6   : > { %v2322_v56 = vpop.eup %2321  ;;  %v1038_v12 = vrot.slane %v1031_v63, %v2604_v7  ;;  %v1222_v63 = vld [vmem:[%s3653_s4] sm:$0x3] }
  0xc7   : > { %v2324_v57 = vpop.eup %2323  ;;  %v2597_v61 = vmul.f32 %v2322_v56, %v612_v24 }
  0xc8   : > { %v2599_v62 = vmul.f32 %v2324_v57, %v613_v26  ;;  %v736_v57 = vpop.permute.xlu0 %735 }
  0xc9   : > { %3708 = vst [vmem:[#allocation6_spill] sm:$0xff] %v2597_v61  ;;  %v743_v59 = vrot.slane %v736_v57, %v2604_v7  ;;  %v1364_v57 = vld [vmem:[%s3653_s4] sm:$0x3] }
  0xca   : > { %3709 = vst [vmem:[#allocation7_spill] sm:$0xff] %v2599_v62  ;;  %v630_v0 = vcombine.low %v2597_v61, %v2599_v62  ;;  %v1299_v11 = vpop.permute.xlu1 %1298 }
  0xcb   : > { %v1306_v14 = vrot.slane %v1299_v11, %v2604_v7 }
  0xcc   : > { %2190 = vst.sshfl [vmem:[#allocation2 + $0x2] sm:$0x33 pattern:$0x76325410] %v630_v0 }
  0xd3   : > { %v2611_v15 = vld [vmem:[#allocation2 + $0x2] sm:$0x3f] }
  0xd4   : > { %v981_v17 = vld [vmem:[#allocation2 + $0x2] sm:$0xf]  ;;  %v2617_v24 = vrot.slane %v2611_v15, %v2608_v13 }
  0xd5   : > { %v1040_v18 = vmul.f32 %v1038_v12, %v981_v17  ;;  %v2613_v20 = vld [vmem:[#allocation2 + $0x2] sm:$0x3f]  ;;  %v989_v51 = vrot.slane %v981_v17, %v2608_v13  ;;  %v1346_v12 = vld [vmem:[%s3653_s4] sm:$0x3] }
  0xd6   : > { %v640_v22 = vld [vmem:[#allocation2] sm:$0x3f]  ;;  %v1308_v33 = vmul.f32 %v1306_v14, %v2613_v20  ;;  %1108 = vrot.lane.b32.xlu0 %v2617_v24, %s2369_s27  ;;  %v2629_v34 = vrot.slane %v2613_v20, %v2608_v13  ;;  %v3672_v14 = vmov 23  }
  0xd7   : > { %v649_v26 = vrot.slane %v640_v22, %v2608_v13  ;;  %v839_v30 = vld [vmem:[#allocation2] sm:$0x3f]  ;;  %v2621_v48 = vrot.slane %v1040_v18, %v2608_v13  ;;  %v642_v60 = vcombine.high %v640_v22, %v640_v22  ;;  %v745_v0 = vmul.f32 %v743_v59, %v640_v22 }
  0xd8   : > { %v848_v47 = vrot.slane %v839_v30, %v2608_v13  ;;  %v1310_v50 = vcombine.high %v1308_v33, %v1308_v33  ;;  %v2637_v52 = vrot.slane %v1308_v33, %v2608_v13  ;;  %v841_v56 = vcombine.high %v839_v30, %v839_v30  ;;  %v692_v18 = vld [vmem:[%s3653_s4] sm:$0x3] }
  0xd9   : > { %658 = vrot.lane.b32.xlu1 %v649_v26, %s3668_s28  ;;  %v657_v55 = vcombine.high %v649_v26, %v649_v26  ;;  %v656_v10 = vrot.slane %v642_v60, %v2608_v13  ;;  %v754_v11 = vrot.slane %v745_v0, %v2608_v13  ;;  %v1092_v22 = vcombine.high %v2611_v15, %v2611_v15  ;;  %v1269_v26 = vld [vmem:[%s3653_s4] sm:$0x3] }
  0xda   : > { %1250 = vrot.lane.b32.xlu0 %v2629_v34, %s2371_s15  ;;  %v2640_v54 = vrot.slane %v1310_v50, %v2608_v13  ;;  %v855_v58 = vrot.slane %v841_v56, %v2608_v13  ;;  %v856_v17 = vcombine.high %v848_v47, %v848_v47  ;;  %v913_v50 = vrot.slane %v2593_v53, %v2604_v7 }
  0xdb   : > { %v1106_v33 = vrot.slane %v1092_v22, %v2608_v13  ;;  %v990_v60 = vcombine.high %v989_v51, %v989_v51  ;;  %v3664_v53 = vmov 24   ;;  %v762_v22 = vcombine.high %v754_v11, %v754_v11 }
  0xdc   : > { %v915_v59 = vmul.f32 %v913_v50, %v839_v30 }
  0xdd   : > { %857 = vrot.lane.b32.xlu1 %v848_v47, %s3670_s16  ;;  %v1234_v47 = vcombine.high %v2613_v20, %v2613_v20  ;;  %v1164_v20 = vrot.slane %v2595_v46, %v2604_v7 }
  0xde   : > { %1072 = vrot.lane.b32.xlu0 %v989_v51, %s3682_s17 }
  0xdf   : > { %v1248_v56 = vrot.slane %v1234_v47, %v2608_v13 }
  0xe1   : > { %993 = vrot.lane.b32.xlu1 %v989_v51, %s2374_s18 }
  0xe2   : > { %660 = vrot.lane.b32.xlu0 %v657_v55, %s3668_s28  ;;  %v3665_v55 = vmov 21  }
  0xe5   : > { %1011 = vrot.lane.b32.xlu1 %v989_v51, %s2375_s19 }
  0xe6   : > { %861 = vrot.lane.b32.xlu0 %v855_v58, %s3670_s16  ;;  %v747_v58 = vcombine.high %v745_v0, %v745_v0  ;;  %v2704_v0 = vpop.permute.xlu0 %832 }
  0xe9   : > { %1054 = vrot.lane.b32.xlu1 %v989_v51, %s3684_s20  ;;  %v1249_v51 = vcombine.high %v2629_v34, %v2629_v34 }
  0xea   : > { %1225 = vperm.xlu0 %2275, %v1222_v63   ;;  %v761_v63 = vrot.slane %v747_v58, %v2608_v13 }
  0xed   : > { %662 = vrot.lane.b32.xlu1 %v656_v10, %s3668_s28  ;;  %v924_v10 = vrot.slane %v915_v59, %v2608_v13 }
  0xee   : > { %2278 = vset.pattern.permute.xlu0 %v3672_v14 }
  0xef   : > { %1349 = vperm.xlu0 %2278, %v1346_v12   ;;  %v932_v7 = vcombine.high %v924_v10, %v924_v10  ;;  %v2708_v12 = vpop.permute.xlu0 %897 }
  0xf1   : > { %763 = vrot.lane.b32.xlu1 %v754_v11, %s3668_s28 }
  0xf3   : > { %2279 = vset.pattern.permute.xlu0 %v3676_v2 }
  0xf4   : > { %695 = vperm.xlu0 %2279, %v692_v18   ;;  %v2712_v18 = vpop.permute.xlu0 %956 }
  0xf5   : > { %859 = vrot.lane.b32.xlu1 %v856_v17, %s3670_s16 }
  0xf8   : > { %1112 = vrot.lane.b32.xlu0 %v1106_v33, %s2369_s27  ;;  %v2717_v34 = vpop.permute.xlu0 %974 }
  0xf9   : > { %1272 = vperm.xlu1 %2276, %v1269_v26  }
  0xfc   : > { %1254 = vrot.lane.b32.xlu0 %v1248_v56, %s2371_s15  ;;  %v2721_v47 = vpop.permute.xlu0 %1004 }
  0xfd   : > { %2277 = vset.pattern.permute.xlu1 %v3665_v55 }
  0xfe   : > { %1290 = vperm.xlu1 %2277, %v2533_v29   ;;  %v1166_v29 = vmul.f32 %v1164_v20, %v2611_v15  ;;  %v1107_v15 = vcombine.high %v2617_v24, %v2617_v24  ;;  %v917_v24 = vcombine.high %v915_v59, %v915_v59 }
 0x100   : > { %1056 = vrot.lane.b32.xlu0 %v990_v60, %s3684_s20  ;;  %v1168_v46 = vcombine.high %v1166_v29, %v1166_v29  ;;  %v1175_v17 = vrot.slane %v1166_v29, %v2608_v13  ;;  %v931_v26 = vrot.slane %v917_v24, %v2608_v13  ;;  %v2724_v50 = vpop.permute.xlu0 %1022 }
 0x102   : > { %2280 = vset.pattern.permute.xlu1 %v3664_v53  ;;  %v1182_v30 = vrot.slane %v1168_v46, %v2608_v13  ;;  %v1183_v33 = vcombine.high %v1175_v17, %v1175_v17 }
 0x103   : > { %1367 = vperm.xlu1 %2280, %v1364_v57   ;;  %v2728_v57 = vpop.permute.xlu1 %1065 }
 0x104   : > { %767 = vrot.lane.b32.xlu0 %v761_v63, %s3668_s28  ;;  %v2726_v56 = vpop.permute.xlu0 %1083 }
 0x107   : > { %933 = vrot.lane.b32.xlu1 %v924_v10, %s3670_s16  ;;  %v2732_v59 = vpop.permute.xlu1 %1207 }
 0x108   : > { %2281 = vset.pattern.permute.xlu1 %v3676_v2  ;;  %935 = vrot.lane.b32.xlu0 %v932_v7, %s3670_s16  ;;  %v2730_v11 = vpop.permute.xlu0 %1130 }
 0x10b   : > { %995 = vrot.lane.b32.xlu1 %v990_v60, %s2374_s18 }
 0x10c   : > { %1188 = vrot.lane.b32.xlu0 %v1182_v30, %s2369_s27  ;;  %v2734_v20 = vpop.permute.xlu0 %1148 }
 0x10f   : > { %1013 = vrot.lane.b32.xlu1 %v990_v60, %s2375_s19 }
 0x113   : > { %1110 = vrot.lane.b32.xlu1 %v1107_v15, %s2369_s27 }
 0x117   : > { %1252 = vrot.lane.b32.xlu1 %v1249_v51, %s2371_s15 }
 0x11b   : > { %1074 = vrot.lane.b32.xlu1 %v990_v60, %s3682_s17 }
 0x11f   : > { %1184 = vrot.lane.b32.xlu1 %v1175_v17, %s2369_s27 }
 0x123   : > { %1326 = vrot.lane.b32.xlu1 %v2637_v52, %s2371_s15 }
 0x127   : > { %765 = vrot.lane.b32.xlu1 %v762_v22, %s3668_s28 }
 0x12b   : > { %937 = vrot.lane.b32.xlu1 %v931_v26, %s3670_s16 }
 0x12f   : > { %1186 = vrot.lane.b32.xlu1 %v1183_v33, %s2369_s27 }
 0x148   : > { %v1109_v13 = vpop.permute.xlu0 %1108 }
 0x14b   : > { %v659_v58 = vpop.permute.xlu1 %658 }
 0x14c   : > { %v1251_v60 = vpop.permute.xlu0 %1250 }
 0x14f   : > { %v858_v29 = vpop.permute.xlu1 %857 }
 0x150   : > { %v2736_v63 = vpop.permute.xlu0 %1072 }
 0x153   : > { %v2738_v10 = vpop.permute.xlu1 %993 }
 0x154   : > { %v661_v7 = vpop.permute.xlu0 %660 }
 0x155   : > { %v665_v30 = vsel %vm664_vm0, %v659_v58, %v661_v7 }
 0x156   : > { %669 = vrot.lane.b32.xlu0 %v665_v30, %s2374_s18 }
 0x157   : > { %v2740_v46 = vpop.permute.xlu1 %1011 }
 0x158   : > { %v862_v26 = vpop.permute.xlu0 %861 }
 0x15b   : > { %v2744_v15 = vpop.permute.xlu1 %1054 }
 0x15f   : > { %v663_v51 = vpop.permute.xlu1 %662 }
 0x160   : > { %v666_v17 = vsel %vm664_vm0, %v661_v7, %v663_v51  ;;  %v1325_v7 = vcombine.high %v2637_v52, %v2637_v52 }
 0x161   : > { %704 = vrot.lane.b32.xlu0 %v666_v17, %s2375_s19  ;;  %671 = vrot.lane.b32.xlu1 %v666_v17, %s2374_s18 }
 0x163   : > { %v2749_v24 = vpop.permute.xlu1 %763 }
 0x165   : > { %777 = vrot.lane.b32.xlu0 %v666_v17, %s3684_s20  ;;  %702 = vrot.lane.b32.xlu1 %v665_v30, %s2375_s19 }
 0x167   : > { %v860_v22 = vpop.permute.xlu1 %859 }
 0x168   : > { %v865_v33 = vsel %vm863_vm1, %v860_v22, %v862_v26  ;;  %v864_v58 = vsel %vm863_vm1, %v858_v29, %v860_v22 }
 0x169   : > { %807 = vrot.lane.b32.xlu0 %v665_v30, %s3682_s17  ;;  %775 = vrot.lane.b32.xlu1 %v665_v30, %s3684_s20  ;;  %v2773_v51 = vpop.permute.xlu0 %1225 }
 0x16d   : > { %809 = vrot.lane.b32.xlu1 %v666_v17, %s3682_s17  ;;  %870 = vrot.lane.b32.xlu0 %v865_v33, %s2374_s18 }
 0x16e   : > { %v2779_v52 = vpop.permute.xlu0 %1349 }
 0x16f   : > { %3712 = vst [vmem:[#allocation10_spill] sm:$0xff] %v2779_v52 }
 0x171   : > { %886 = vrot.lane.b32.xlu0 %v864_v58, %s2375_s19  ;;  %868 = vrot.lane.b32.xlu1 %v864_v58, %s2374_s18 }
 0x175   : > { %945 = vrot.lane.b32.xlu0 %v864_v58, %s3684_s20  ;;  %888 = vrot.lane.b32.xlu1 %v865_v33, %s2375_s19 }
 0x178   : > { %v2765_v30 = vpop.permute.xlu1 %1272 }
 0x179   : > { %1328 = vrot.lane.b32.xlu0 %v1325_v7, %s2371_s15  ;;  %1330 = vrot.lane.b32.xlu1 %v2640_v54, %s2371_s15  ;;  %v2785_v7 = vpop.permute.xlu0 %695 }
 0x17d   : > { %947 = vrot.lane.b32.xlu1 %v865_v33, %s3684_s20  ;;  %v2771_v29 = vpop.permute.xlu1 %1290  ;;  %v1113_v53 = vpop.permute.xlu0 %1112 }
 0x17e   : > { %3710 = vst [vmem:[#allocation8_spill] sm:$0xff] %v2771_v29 }
 0x181   : > { %963 = vrot.lane.b32.xlu1 %v864_v58, %s3682_s17 }
 0x182   : > { %v2776_v17 = vpop.permute.xlu1 %1367 }
 0x183   : > { %3711 = vst [vmem:[#allocation9_spill] sm:$0xff] %v2776_v17  ;;  %v3719_v17 = vmov 10  }
 0x185   : > { %965 = vrot.lane.b32.xlu1 %v865_v33, %s3682_s17 }
 0x186   : > { %v2781_v22 = vpop.permute.xlu1 %933 }
 0x18a   : > { %v2783_v26 = vpop.permute.xlu1 %995 }
 0x18e   : > { %v2787_v54 = vpop.permute.xlu1 %1013 }
 0x192   : > { %v1111_v55 = vpop.permute.xlu1 %1110 }
 0x193   : > { %v1116_v40 = vsel %vm1114_vm2, %v1111_v55, %v1113_v53  ;;  %v1115_v58 = vsel %vm1114_vm2, %v1109_v13, %v1111_v55  ;;  %v1255_v55 = vpop.permute.xlu0 %1254  ;;  %v1374_v13 = vld [vmem:[%s3654_s5] sm:$0x3] }
 0x194   : > { %1198 = vrot.lane.b32.xlu0 %v1116_v40, %s3684_s20  ;;  %1119 = vrot.lane.b32.xlu1 %v1115_v58, %s2374_s18 }
 0x196   : > { %v1253_v33 = vpop.permute.xlu1 %1252 }
 0x197   : > { %v1257_v39 = vsel %vm1256_vm3, %v1251_v60, %v1253_v33  ;;  %v1258_v53 = vsel %vm1256_vm3, %v1253_v33, %v1255_v55  ;;  %v1524_v55 = vld [vmem:[%s3659_s10] sm:$0xf] }
 0x198   : > { %1216 = vrot.lane.b32.xlu0 %v1116_v40, %s3682_s17  ;;  %1121 = vrot.lane.b32.xlu1 %v1116_v40, %s2374_s18 }
 0x19a   : > { %v2814_v60 = vpop.permute.xlu1 %1074 }
 0x19c   : > { %1137 = vrot.lane.b32.xlu1 %v1115_v58, %s2375_s19  ;;  %1261 = vrot.lane.b32.xlu0 %v1257_v39, %s2374_s18 }
 0x19e   : > { %v2821_v33 = vpop.permute.xlu1 %1184 }
 0x1a0   : > { %1139 = vrot.lane.b32.xlu1 %v1116_v40, %s2375_s19  ;;  %1279 = vrot.lane.b32.xlu0 %v1257_v39, %s2375_s19  ;;  %v1402_v40 = vld [vmem:[%s3656_s7] sm:$0xf] }
 0x1a2   : > { %v2833_v14 = vpop.permute.xlu1 %1326 }
 0x1a3   : > { %3713 = vst [vmem:[#allocation11_spill] sm:$0xff] %v2833_v14  ;;  %v3722_v14 = vmov 11  }
 0x1a4   : > { %1196 = vrot.lane.b32.xlu1 %v1115_v58, %s3684_s20  ;;  %1340 = vrot.lane.b32.xlu0 %v1258_v53, %s3684_s20 }
 0x1a6   : > { %v2841_v38 = vpop.permute.xlu1 %765 }
 0x1a8   : > { %1214 = vrot.lane.b32.xlu1 %v1115_v58, %s3682_s17  ;;  %1356 = vrot.lane.b32.xlu0 %v1257_v39, %s3682_s17  ;;  %v1466_v58 = vld [vmem:[%s3657_s8] sm:$0xf] }
 0x1aa   : > { %v2851_v36 = vpop.permute.xlu1 %937 }
 0x1ac   : > { %1263 = vrot.lane.b32.xlu1 %v1258_v53, %s2374_s18  ;;  %1377 = vperm.xlu0 %2279, %v1374_v13   ;;  %v1382_v13 = vld [vmem:[%s3655_s6] sm:$0x3] }
 0x1b0   : > { %1281 = vrot.lane.b32.xlu1 %v1258_v53, %s2375_s19  ;;  %2282 = vset.pattern.permute.xlu0 %v2347_v4 }
 0x1b1   : > { %1419 = vperm.xlu0 %2282, %v1402_v40  }
 0x1b4   : > { %1338 = vrot.lane.b32.xlu1 %v1257_v39, %s3684_s20  ;;  %v1554_v39 = vld [vmem:[%s3659_s10] sm:$0xf] }
 0x1b5   : > { %2285 = vset.pattern.permute.xlu0 %v3676_v2 }
 0x1b6   : > { %1469 = vperm.xlu0 %2285, %v1466_v58   ;;  %v2836_v58 = vpop.permute.xlu0 %1056 }
 0x1b8   : > { %1358 = vrot.lane.b32.xlu1 %v1258_v53, %s3682_s17  ;;  %v1642_v53 = vld [vmem:[%s3659_s10] sm:$0xf]  ;;  %s3740_s17 = smov 127  }
 0x1ba   : > { %1527 = vperm.xlu0 %2285, %v1524_v55   ;;  %v2845_v55 = vpop.permute.xlu0 %767 }
 0x1bc   : > { %1385 = vperm.xlu1 %2281, %v1382_v13   ;;  %v1693_v13 = vld [vmem:[%s3659_s10] sm:$0xf] }
 0x1be   : > { %2288 = vset.pattern.permute.xlu0 %v2344_v1  ;;  %v2854_v32 = vpop.permute.xlu0 %935 }
 0x1bf   : > { %1565 = vperm.xlu0 %2288, %v1554_v39  }
 0x1c0   : > { %1405 = vperm.xlu1 %2281, %v1402_v40  }
 0x1c3   : > { %2290 = vset.pattern.permute.xlu0 %v2348_v5  ;;  %v2861_v5 = vpop.permute.xlu1 %1186 }
 0x1c4   : > { %2283 = vset.pattern.permute.xlu1 %v2344_v1  ;;  %1645 = vperm.xlu0 %2290, %v1642_v53   ;;  %v1474_v1 = vld [vmem:[%s3658_s9] sm:$0xf] }
 0x1c5   : > { %1435 = vperm.xlu1 %2283, %v1402_v40  }
 0x1c8   : > { %2292 = vset.pattern.permute.xlu0 %v2351_v9  ;;  %v2866_v9 = vld [vmem:[%s3659_s10] sm:$0xf] }
 0x1c9   : > { %2284 = vset.pattern.permute.xlu1 %v2346_v3  ;;  %1704 = vperm.xlu0 %2292, %v1693_v13   ;;  %3714 = vst [vmem:[#allocation12_spill] sm:$0xff] %v2866_v9 }
 0x1ca   : > { %1451 = vperm.xlu1 %2284, %v1402_v40   ;;  %v2868_v40 = vpop.permute.xlu0 %1188 }
 0x1cd   : > { %2293 = vset.pattern.permute.xlu0 %v2350_v8  ;;  %v2873_v8 = vld [vmem:[#allocation3 + $0xc] sm:$0xf] }
 0x1ce   : > { %2286 = vset.pattern.permute.xlu1 %v3676_v2  ;;  %1696 = vperm.xlu0 %2293, %v1693_v13   ;;  %3715 = vst [vmem:[#allocation13_spill] sm:$0xff] %v2873_v8  ;;  %v670_v13 = vpop.permute.xlu0 %669 }
 0x1cf   : > { %1477 = vperm.xlu1 %2286, %v1474_v1   ;;  %v1612_v1 = vld [vmem:[%s3659_s10] sm:$0xf] }
 0x1d2   : > { %2294 = vset.pattern.permute.xlu0 %v2355_v23  ;;  %v2881_v23 = vld [vmem:[#allocation3 + $0xc] sm:$0xf] }
 0x1d3   : > { %v672_v53 = vpop.permute.xlu1 %671  ;;  %2287 = vset.pattern.permute.xlu1 %v2347_v4  ;;  %1912 = vperm.xlu0 %2294, %v2866_v9   ;;  %3716 = vst [vmem:[#allocation14_spill] sm:$0xff] %v2881_v23  ;;  %v705_v4 = vpop.permute.xlu0 %704 }
 0x1d4   : > { %1557 = vperm.xlu1 %2287, %v1554_v39  }
 0x1d7   : > { %v703_v2 = vpop.permute.xlu1 %702  ;;  %1869 = vrot.lane.b32.xlu0 %v2873_v8, %s2369_s27 }
 0x1d8   : > { %2289 = vset.pattern.permute.xlu1 %v2346_v3  ;;  %2296 = vset.pattern.permute.xlu0 %v2352_v16  ;;  %v778_v3 = vpop.permute.xlu0 %777  ;;  %v2894_v16 = vand.u32 127, %v476_v41 }
 0x1d9   : > { %1615 = vperm.xlu1 %2289, %v1612_v1   ;;  %v2899_v1 = vld [vmem:[%s3659_s10] sm:$0xf] }
 0x1da   : > { %3717 = vst [vmem:[#allocation15_spill] sm:$0xff] %v2899_v1  ;;  %vm706_vm4 = vcmp.lt.s32.totalorder %v2894_v16, 1  ;;  %vm675_vm5 = vcmp.lt.s32.totalorder %v2894_v16, 2  ;;  %vm779_vm6 = vcmp.lt.s32.totalorder %v2894_v16, 127  ;;  %vm811_vm7 = vcmp.lt.s32.totalorder %v2894_v16, 126 }
 0x1db   : > { %v776_v39 = vpop.permute.xlu1 %775  ;;  %1984 = vrot.lane.b32.xlu0 %v2881_v23, %s2371_s15  ;;  %v708_v41 = vsel %vm706_vm4, %v705_v4, %v703_v2  ;;  %v2920_v23 = vrot.slane %v2191_v21, %v2570_v43  ;;  %v676_v8 = vsel %vm675_vm5, %v670_v13, %v672_v53 }
 0x1dd   : > { %2291 = vset.pattern.permute.xlu1 %v2349_v6  ;;  %v1757_v6 = vld [vmem:[%s3659_s10] sm:$0xf] }
 0x1de   : > { %1678 = vperm.xlu1 %2291, %v1675_v35   ;;  %v707_v35 = vsel %vm706_vm4, %v703_v2, %v705_v4  ;;  %v677_v2 = vsel %vm675_vm5, %v672_v53, %v670_v13  ;;  %v808_v4 = vpop.permute.xlu0 %807  ;;  %v3718_v13 = vmov 12  }
 0x1df   : > { %v810_v28 = vpop.permute.xlu1 %809  ;;  %1742 = vperm.xlu0 %2296, %v1739_v25   ;;  %v678_v25 = vld [vmem:[%s3662_s13] ss:$8 sm:$0x3] }
 0x1e0   : > { %v2936_v9 = vrot.slane %v678_v25, %v2573_v44 }
 0x1e2   : > { %2295 = vset.pattern.permute.xlu1 %v2359_v31  ;;  %v2923_v31 = vrot.slane %v2191_v21, %v2573_v44  ;;  %v722_v21 = vmul.f32 %v2920_v23, %v708_v41  ;;  %v691_v61 = vmul.f32 %v2936_v9, %v676_v8  ;;  %v871_v52 = vpop.permute.xlu0 %870  ;;  %v2193_v8 = vld [vmem:[%s3662_s13 + $0x4] ss:$8 sm:$0x3] }
 0x1e3   : > { %v869_v27 = vpop.permute.xlu1 %868  ;;  %2027 = vperm.xlu1 %2295, %v2899_v1   ;;  %2297 = vset.pattern.permute.xlu0 %v2353_v19  ;;  %v1797_v19 = vld [vmem:[%s3659_s10] sm:$0xf]  ;;  %v2933_v1 = vrot.slane %v678_v25, %v2570_v43 }
 0x1e4   : > { %1760 = vperm.xlu0 %2297, %v1757_v6   ;;  %v723_v6 = vmul.f32 %v2923_v31, %v707_v35  ;;  %v2192_v25 = vld [vmem:[%s3662_s13 + $0x3] ss:$8 sm:$0x3]  ;;  %v730_v35 = vmul.f32 %v2587_v49, %v722_v21  ;;  %v781_v21 = vsel %vm779_vm6, %v778_v3, %v776_v39 }
 0x1e5   : > { %v690_v62 = vmul.f32 %v2933_v1, %v677_v2  ;;  %v780_v2 = vsel %vm779_vm6, %v776_v39, %v778_v3  ;;  %v813_v39 = vsel %vm811_vm7, %v810_v28, %v808_v4  ;;  %v2978_v3 = vrot.slane %v2193_v8, %v2570_v43 }
 0x1e6   : > { %v731_v41 = vmul.f32 %v2587_v49, %v723_v6  ;;  %v3721_v49 = vmov 14   ;;  %v2967_v6 = vrot.slane %v2192_v25, %v2570_v43 }
 0x1e7   : > { %v889_v53 = vpop.permute.xlu1 %888  ;;  %2300 = vset.pattern.permute.xlu1 %v3718_v13 }
 0x1e8   : > { %1808 = vperm.xlu1 %2300, %v1797_v19   ;;  %2298 = vset.pattern.permute.xlu0 %v3719_v17  ;;  %v698_v17 = vmul.f32 %v2785_v7, %v690_v62 }
 0x1e9   : > { %1782 = vperm.xlu0 %2298, %v1779_v42   ;;  %v699_v42 = vmul.f32 %v2785_v7, %v691_v61  ;;  %v812_v7 = vsel %vm811_vm7, %v808_v4, %v810_v28  ;;  %v769_v28 = vsel %vm664_vm0, %v2749_v24, %v2841_v38  ;;  %v770_v4 = vsel %vm664_vm0, %v2841_v38, %v2845_v55 }
 0x1ea   : > { %v732_v62 = vadd.f32 %v730_v35, %v698_v17  ;;  %v872_v35 = vsel %vm675_vm5, %v869_v27, %v871_v52  ;;  %v887_v17 = vpop.permute.xlu0 %886 }
 0x1eb   : > { %v2953_v13 = vpop.permute.xlu1 %1330  ;;  %v733_v61 = vadd.f32 %v731_v41, %v699_v42  ;;  %v873_v41 = vsel %vm675_vm5, %v871_v52, %v869_v27  ;;  %v891_v27 = vsel %vm706_vm4, %v889_v53, %v887_v17  ;;  %v3723_v52 = vmov 13  }
 0x1ec   : > { %3720 = vst [vmem:[#allocation16_spill] sm:$0xff] %v2953_v13  ;;  %2302 = vset.pattern.permute.xlu1 %v3721_v49  ;;  %v2970_v13 = vrot.slane %v2192_v25, %v2573_v44  ;;  %v2981_v49 = vrot.slane %v2193_v8, %v2573_v44  ;;  %v795_v25 = vmul.f32 %v2967_v6, %v780_v2 }
 0x1ed   : > { %2299 = vset.pattern.permute.xlu0 %v3722_v14  ;;  %v773_v42 = vadd.f32 %v769_v28, %v732_v62  ;;  %v774_v2 = vadd.f32 %v770_v4, %v733_v61  ;;  %v874_v38 = vmul.f32 %v873_v41, %v2933_v1  ;;  %v875_v55 = vmul.f32 %v872_v35, %v2936_v9 }
 0x1ee   : > { %1800 = vperm.xlu0 %2299, %v1797_v19   ;;  %v796_v29 = vmul.f32 %v2970_v13, %v781_v21  ;;  %v827_v19 = vmul.f32 %v2978_v3, %v812_v7  ;;  %v828_v8 = vmul.f32 %v2981_v49, %v813_v39  ;;  %v890_v21 = vsel %vm706_vm4, %v887_v17, %v889_v53 }
 0x1ef   : > { %v948_v14 = vpop.permute.xlu1 %947  ;;  %v803_v24 = vmul.f32 %v2589_v37, %v795_v25  ;;  %v892_v39 = vmul.f32 %v891_v27, %v2920_v23  ;;  %v893_v28 = vmul.f32 %v890_v21, %v2923_v31  ;;  %v882_v17 = vmul.f32 %v2591_v45, %v874_v38 }
 0x1f0   : > { %v804_v44 = vmul.f32 %v2589_v37, %v796_v29  ;;  %v835_v62 = vmul.f32 %v2704_v0, %v827_v19  ;;  %v836_v61 = vmul.f32 %v2704_v0, %v828_v8  ;;  %v883_v25 = vmul.f32 %v2591_v45, %v875_v55  ;;  %v946_v37 = vpop.permute.xlu0 %945 }
 0x1f1   : > { %v805_v53 = vadd.f32 %v803_v24, %v773_v42  ;;  %v949_v35 = vsel %vm779_vm6, %v946_v37, %v948_v14  ;;  %v950_v41 = vsel %vm779_vm6, %v948_v14, %v946_v37  ;;  %v900_v8 = vmul.f32 %v2708_v12, %v892_v39 }
 0x1f2   : > { %2301 = vset.pattern.permute.xlu0 %v3723_v52  ;;  %v806_v4 = vadd.f32 %v804_v44, %v774_v2  ;;  %v901_v21 = vmul.f32 %v2708_v12, %v893_v28  ;;  %v951_v27 = vmul.f32 %v949_v35, %v2967_v6  ;;  %v952_v52 = vmul.f32 %v950_v41, %v2970_v13 }
 0x1f3   : > { %v964_v7 = vpop.permute.xlu1 %963  ;;  %v837_v19 = vadd.f32 %v835_v62, %v805_v53  ;;  %v998_v39 = vsel %vm675_vm5, %v2783_v26, %v2738_v10  ;;  %v940_v28 = vsel %vm863_vm1, %v2854_v32, %v2851_v36 }
 0x1f4   : > { %v838_v0 = vadd.f32 %v836_v61, %v806_v4  ;;  %v959_v12 = vmul.f32 %v2712_v18, %v951_v27  ;;  %v960_v62 = vmul.f32 %v2712_v18, %v952_v52  ;;  %v997_v61 = vsel %vm675_vm5, %v2738_v10, %v2783_v26 }
 0x1f5   : > { %v884_v42 = vadd.f32 %v882_v17, %v837_v19  ;;  %v999_v17 = vmul.f32 %v998_v39, %v2933_v1  ;;  %v1015_v10 = vsel %vm706_vm4, %v2740_v46, %v2787_v54 }
 0x1f6   : > { %v885_v2 = vadd.f32 %v883_v25, %v838_v0  ;;  %v1000_v25 = vmul.f32 %v997_v61, %v2936_v9  ;;  %v1018_v0 = vmul.f32 %v1015_v10, %v2923_v31 }
 0x1f7   : > { %v966_v29 = vpop.permute.xlu1 %965  ;;  %v902_v24 = vadd.f32 %v900_v8, %v884_v42  ;;  %v3058_v8 = vpop.permute.xlu0 %1328 }
 0x1f8   : > { %v967_v44 = vsel %vm811_vm7, %v964_v7, %v966_v29  ;;  %v968_v45 = vsel %vm811_vm7, %v966_v29, %v964_v7  ;;  %v903_v14 = vadd.f32 %v901_v21, %v885_v2  ;;  %v939_v7 = vsel %vm863_vm1, %v2781_v22, %v2854_v32 }
 0x1f9   : > { %v969_v38 = vmul.f32 %v967_v44, %v2978_v3  ;;  %v970_v55 = vmul.f32 %v968_v45, %v2981_v49  ;;  %v943_v53 = vadd.f32 %v939_v7, %v902_v24  ;;  %v1016_v32 = vsel %vm706_vm4, %v2787_v54, %v2740_v46 }
 0x1fa   : > { %v944_v18 = vadd.f32 %v940_v28, %v903_v14  ;;  %v1008_v41 = vmul.f32 %v2721_v47, %v1000_v25  ;;  %v1017_v19 = vmul.f32 %v1016_v32, %v2920_v23  ;;  %v1058_v46 = vsel %vm779_vm6, %v2744_v15, %v2836_v58 }
 0x1fb   : > { %v977_v4 = vmul.f32 %v2717_v34, %v969_v38  ;;  %v978_v22 = vmul.f32 %v2717_v34, %v970_v55  ;;  %v961_v37 = vadd.f32 %v959_v12, %v943_v53  ;;  %v1007_v34 = vmul.f32 %v2721_v47, %v999_v17 }
 0x1fc   : > { %v962_v29 = vadd.f32 %v960_v62, %v944_v18  ;;  %v1059_v54 = vsel %vm779_vm6, %v2836_v58, %v2744_v15  ;;  %v1025_v47 = vmul.f32 %v2724_v50, %v1017_v19  ;;  %v1026_v42 = vmul.f32 %v2724_v50, %v1018_v0 }
 0x1fd   : > { %v979_v36 = vadd.f32 %v977_v4, %v961_v37  ;;  %v1060_v24 = vmul.f32 %v1058_v46, %v2967_v6  ;;  %v1061_v14 = vmul.f32 %v1059_v54, %v2970_v13  ;;  %v1049_v55 = vcombine.high %v2621_v48, %v2621_v48 }
 0x1fe   : > { %v980_v26 = vadd.f32 %v978_v22, %v962_v29  ;;  %v1076_v15 = vsel %vm811_vm7, %v2736_v63, %v2814_v60  ;;  %v1077_v50 = vsel %vm811_vm7, %v2814_v60, %v2736_v63 }
 0x1ff   : > { %v1009_v21 = vadd.f32 %v1007_v34, %v979_v36  ;;  %v1068_v61 = vmul.f32 %v2728_v57, %v1060_v24  ;;  %v1069_v39 = vmul.f32 %v2728_v57, %v1061_v14  ;;  %v1078_v28 = vmul.f32 %v1076_v15, %v2978_v3 }
 0x200   : > { %v1010_v44 = vadd.f32 %v1008_v41, %v980_v26  ;;  %v1079_v53 = vmul.f32 %v1077_v50, %v2981_v49 }
 0x201   : > { %v1027_v27 = vadd.f32 %v1025_v47, %v1009_v21  ;;  %v1086_v10 = vmul.f32 %v2726_v56, %v1078_v28 }
 0x202   : > { %v1028_v52 = vadd.f32 %v1026_v42, %v1010_v44  ;;  %v1087_v32 = vmul.f32 %v2726_v56, %v1079_v53 }
 0x203   : > { %v1052_v62 = vadd.f32 %v2621_v48, %v1027_v27 }
 0x204   : > { %v1053_v7 = vadd.f32 %v1049_v55, %v1028_v52  ;;  %v1191_v55 = vsel %vm1114_vm2, %v2861_v5, %v2868_v40 }
 0x205   : > { %v1070_v17 = vadd.f32 %v1068_v61, %v1052_v62 }
 0x206   : > { %v1120_v35 = vpop.permute.xlu1 %1119  ;;  %v1199_v2 = vpop.permute.xlu0 %1198  ;;  %v1071_v25 = vadd.f32 %v1069_v39, %v1053_v7 }
 0x207   : > { %v1088_v34 = vadd.f32 %v1086_v10, %v1070_v17 }
 0x208   : > { %v1089_v41 = vadd.f32 %v1087_v32, %v1071_v25  ;;  %v3724_v25 = vld [vmem:[#allocation8_spill] sm:$0xff] }
 0x20a   : > { %v1122_v45 = vpop.permute.xlu1 %1121  ;;  %v1217_v18 = vpop.permute.xlu0 %1216 }
 0x20b   : > { %v1123_v58 = vsel %vm675_vm5, %v1120_v35, %v1122_v45  ;;  %v1124_v12 = vsel %vm675_vm5, %v1122_v45, %v1120_v35 }
 0x20c   : > { %v1125_v63 = vmul.f32 %v1124_v12, %v2933_v1  ;;  %v1126_v60 = vmul.f32 %v1123_v58, %v2936_v9 }
 0x20e   : > { %v1138_v38 = vpop.permute.xlu1 %1137  ;;  %v1133_v36 = vmul.f32 %v2730_v11, %v1125_v63  ;;  %v1134_v26 = vmul.f32 %v2730_v11, %v1126_v60  ;;  %v1262_v35 = vpop.permute.xlu0 %1261 }
 0x210   : > { %v1135_v44 = vadd.f32 %v1133_v36, %v1088_v34  ;;  %v1136_v45 = vadd.f32 %v1134_v26, %v1089_v41 }
 0x212   : > { %v1140_v4 = vpop.permute.xlu1 %1139  ;;  %v1280_v27 = vpop.permute.xlu0 %1279 }
 0x213   : > { %v1141_v22 = vsel %vm706_vm4, %v1138_v38, %v1140_v4  ;;  %v1142_v48 = vsel %vm706_vm4, %v1140_v4, %v1138_v38  ;;  %v1190_v38 = vsel %vm1114_vm2, %v2821_v33, %v2861_v5 }
 0x214   : > { %v1143_v57 = vmul.f32 %v1142_v48, %v2920_v23  ;;  %v1144_v37 = vmul.f32 %v1141_v22, %v2923_v31 }
 0x216   : > { %v1197_v29 = vpop.permute.xlu1 %1196  ;;  %v1151_v19 = vmul.f32 %v2734_v20, %v1143_v57  ;;  %v1152_v0 = vmul.f32 %v2734_v20, %v1144_v37  ;;  %v1341_v40 = vpop.permute.xlu0 %1340 }
 0x217   : > { %v1200_v46 = vsel %vm779_vm6, %v1197_v29, %v1199_v2  ;;  %v1201_v56 = vsel %vm779_vm6, %v1199_v2, %v1197_v29 }
 0x218   : > { %v1153_v54 = vadd.f32 %v1151_v19, %v1135_v44  ;;  %v1154_v47 = vadd.f32 %v1152_v0, %v1136_v45  ;;  %v1202_v20 = vmul.f32 %v1200_v46, %v2967_v6  ;;  %v1203_v52 = vmul.f32 %v1201_v56, %v2970_v13  ;;  %v3726_v45 = vld [vmem:[#allocation16_spill] sm:$0xff]  ;;  %v3727_v56 = vld [vmem:[#allocation10_spill] sm:$0xff] }
 0x219   : > { %v1333_v46 = vsel %vm1256_vm3, %v3058_v8, %v3726_v45 }
 0x21a   : > { %v1215_v21 = vpop.permute.xlu1 %1214  ;;  %v1194_v58 = vadd.f32 %v1190_v38, %v1153_v54  ;;  %v1195_v12 = vadd.f32 %v1191_v55, %v1154_v47  ;;  %v1210_v62 = vmul.f32 %v2732_v59, %v1202_v20  ;;  %v1211_v7 = vmul.f32 %v2732_v59, %v1203_v52 }
 0x21b   : > { %v1218_v11 = vsel %vm811_vm7, %v1215_v21, %v1217_v18  ;;  %v1219_v42 = vsel %vm811_vm7, %v1217_v18, %v1215_v21  ;;  %v3725_v21 = vld [vmem:[#allocation11_spill] sm:$0xff] }
 0x21c   : > { %v1220_v15 = vmul.f32 %v1218_v11, %v2978_v3  ;;  %v1221_v50 = vmul.f32 %v1219_v42, %v2981_v49  ;;  %v1212_v63 = vadd.f32 %v1210_v62, %v1194_v58  ;;  %v1332_v44 = vsel %vm1256_vm3, %v3725_v21, %v3058_v8  ;;  %v3728_v42 = vld [vmem:[#allocation9_spill] sm:$0xff] }
 0x21e   : > { %v1264_v24 = vpop.permute.xlu1 %1263  ;;  %v1228_v53 = vmul.f32 %v2773_v51, %v1220_v15  ;;  %v1229_v18 = vmul.f32 %v2773_v51, %v1221_v50 }
 0x21f   : > { %v1265_v14 = vsel %vm675_vm5, %v1262_v35, %v1264_v24  ;;  %v1266_v2 = vsel %vm675_vm5, %v1264_v24, %v1262_v35 }
 0x220   : > { %v1267_v61 = vmul.f32 %v1266_v2, %v2933_v1  ;;  %v1268_v39 = vmul.f32 %v1265_v14, %v2936_v9  ;;  %v1213_v1 = vadd.f32 %v1211_v7, %v1195_v12  ;;  %v1230_v48 = vadd.f32 %v1228_v53, %v1212_v63 }
 0x222   : > { %v1282_v28 = vpop.permute.xlu1 %1281  ;;  %v1275_v9 = vmul.f32 %v2765_v30, %v1267_v61  ;;  %v1276_v60 = vmul.f32 %v2765_v30, %v1268_v39  ;;  %v1231_v17 = vadd.f32 %v1229_v18, %v1213_v1  ;;  %v3729_v18 = vld [vmem:[#allocation6_spill] sm:$0xff] }
 0x223   : > { %v1283_v33 = vsel %vm706_vm4, %v1280_v27, %v1282_v28  ;;  %v1284_v5 = vsel %vm706_vm4, %v1282_v28, %v1280_v27 }
 0x224   : > { %v1285_v4 = vmul.f32 %v1284_v5, %v2920_v23  ;;  %v1286_v59 = vmul.f32 %v1283_v33, %v2923_v31  ;;  %v1357_v31 = vpop.permute.xlu0 %1356  ;;  %v1277_v29 = vadd.f32 %v1275_v9, %v1230_v48  ;;  %v1278_v10 = vadd.f32 %v1276_v60, %v1231_v17  ;;  %v3730_v9 = vld [vmem:[#allocation7_spill] sm:$0xff]  ;;  %v3731_v48 = vld [vmem:[#allocation5_spill] sm:$0xff] }
 0x225   : > { %v1415_v60 = vrot.slane %v3730_v9, %v2570_v43  ;;  %v1425_v17 = vrot.slane %v3729_v18, %v3731_v48 }
 0x226   : > { %v1339_v22 = vpop.permute.xlu1 %1338  ;;  %v1293_v57 = vmul.f32 %v3724_v25, %v1285_v4  ;;  %v1294_v37 = vmul.f32 %v3724_v25, %v1286_v59  ;;  %v1411_v4 = vrot.slane %v3729_v18, %v2570_v43 }
 0x227   : > { %v1342_v51 = vsel %vm779_vm6, %v1339_v22, %v1341_v40  ;;  %v1343_v23 = vsel %vm779_vm6, %v1341_v40, %v1339_v22 }
 0x228   : > { %v1295_v26 = vadd.f32 %v1293_v57, %v1277_v29  ;;  %v1296_v35 = vadd.f32 %v1294_v37, %v1278_v10  ;;  %v1344_v34 = vmul.f32 %v1342_v51, %v2967_v6  ;;  %v1345_v41 = vmul.f32 %v1343_v23, %v2970_v13 }
 0x229   : > { %v1429_v37 = vrot.slane %v3730_v9, %v3731_v48  ;;  %v3738_v9 = vmov 16  }
 0x22a   : > { %v1359_v32 = vpop.permute.xlu1 %1358  ;;  %v1352_v54 = vmul.f32 %v3727_v56, %v1344_v34  ;;  %v1353_v47 = vmul.f32 %v3727_v56, %v1345_v41  ;;  %v1336_v11 = vadd.f32 %v1332_v44, %v1295_v26  ;;  %v1337_v6 = vadd.f32 %v1333_v46, %v1296_v35 }
 0x22b   : > { %v1360_v30 = vsel %vm811_vm7, %v1357_v31, %v1359_v32  ;;  %v1361_v36 = vsel %vm811_vm7, %v1359_v32, %v1357_v31  ;;  %v1378_v24 = vpop.permute.xlu0 %1377  ;;  %v2380_v31 = vmov 839922192  }
 0x22c   : > { %v1362_v19 = vmul.f32 %v1360_v30, %v2978_v3  ;;  %v1363_v0 = vmul.f32 %v1361_v36, %v2981_v49  ;;  %v1354_v27 = vadd.f32 %v1352_v54, %v1336_v11  ;;  %v1355_v49 = vadd.f32 %v1353_v47, %v1337_v6 }
 0x22d   : > { %v1568_v29 = vunpack.c.l.s4 %v2380_v31 }
 0x22e   : > { %v1370_v13 = vmul.f32 %v3728_v42, %v1362_v19  ;;  %v1371_v3 = vmul.f32 %v3728_v42, %v1363_v0 }
 0x22f   : > { %v1569_v44 = vunpack.c.0.s8 %v1568_v29  ;;  %v3743_v29 = vmov 23  }
 0x230   : > { %v1372_v20 = vadd.f32 %v1370_v13, %v1354_v27  ;;  %v1373_v52 = vadd.f32 %v1371_v3, %v1355_v49  ;;  %v1420_v1 = vpop.permute.xlu0 %1419  ;;  %v3732_v13 = vld [vmem:[#allocation4_spill] sm:$0xff] }
 0x231   : > { %v1430_v10 = vmul.f32 %v1425_v17, %v1420_v1  ;;  %v1431_v36 = vmul.f32 %v1429_v37, %v1420_v1  ;;  %v1572_v3 = vsub.s32 %v1569_v44, %v3732_v13  ;;  %v3737_v1 = vmov 15   ;;  %v1947_v17 = vld [vmem:[%s3659_s10] sm:$0xf] }
 0x232   : > { %v1380_v14 = vmul.f32 %v1378_v24, %v1372_v20  ;;  %v1381_v2 = vmul.f32 %v1378_v24, %v1373_v52  ;;  %v1850_v37 = vld [vmem:[%s3659_s10] sm:$0xf] }
 0x235   : > { %v1470_v6 = vpop.permute.xlu0 %1469 }
 0x23b   : > { %v1386_v38 = vpop.permute.xlu1 %1385 }
 0x23c   : > { %v1388_v55 = vadd.f32 %v1386_v38, %v1380_v14  ;;  %v1389_v8 = vadd.f32 %v1386_v38, %v1381_v2  ;;  %v3196_v2 = vld [vmem:[%s2567_s26] sm:$0xff] }
 0x23d   : > { %3733 = vst [vmem:[#allocation8_spill] sm:$0xff] %v3196_v2 }
 0x23e   : > { %v1390_v15 = vsub.f32 0.0, %v1388_v55  ;;  %v1391_v50 = vsub.f32 0.0, %v1389_v8 }
 0x23f   : > { %v1406_v62 = vpop.permute.xlu1 %1405 }
 0x240   : > { %v1392_v58 = vmul.f32 1.442695, %v1390_v15  ;;  %v1394_v12 = vmul.f32 1.442695, %v1391_v50  ;;  %v1416_v57 = vmul.f32 %v1411_v4, %v1406_v62  ;;  %v1417_v23 = vmul.f32 %v1415_v60, %v1406_v62  ;;  %v3201_v15 = vld [vmem:[%s2567_s26 + $0x8] sm:$0xff] }
 0x241   : > { %3734 = vst [vmem:[#allocation11_spill] sm:$0xff] %v3201_v15  ;;  %v1883_v4 = vld [vmem:[%s3659_s10] sm:$0xf] }
 0x242   : > { %2325 = vpow2.f32 %v1392_v58  ;;  %v1432_v41 = vadd.f32 %v1430_v10, %v1416_v57  ;;  %v1433_v0 = vadd.f32 %v1431_v36, %v1417_v23  ;;  %v3206_v58 = vpop.permute.xlu0 %1527  ;;  %v3741_v57 = vmov 18   ;;  %v1965_v36 = vld [vmem:[%s3659_s10] sm:$0xf] }
 0x243   : > { %2327 = vpow2.f32 %v1394_v12 }
 0x244   : > { %v1436_v7 = vpop.permute.xlu1 %1435  ;;  %v3762_v16 = vld [vmem:[#allocation8_spill] sm:$0xff] }
 0x249   : > { %v1452_v61 = vpop.permute.xlu1 %1451 }
 0x24c   : > { %v2326_v39 = vpop.eup %2325 }
 0x24d   : > { %v2328_v28 = vpop.eup %2327  ;;  %v1396_v33 = vadd.f32 1.0, %v2326_v39 }
 0x24e   : > { %v1397_v5 = vadd.f32 1.0, %v2328_v28  ;;  %v1478_v40 = vpop.permute.xlu1 %1477 }
 0x24f   : > { %2329 = vrcp.f32 %v1396_v33 }
 0x250   : > { %2331 = vrcp.f32 %v1397_v5 }
 0x253   : > { %v3165_v53 = vpop.permute.xlu1 %1557 }
 0x258   : > { %v3169_v59 = vpop.permute.xlu1 %1615 }
 0x259   : > { %v2330_v63 = vpop.eup %2329 }
 0x25a   : > { %v2332_v22 = vpop.eup %2331  ;;  %v1400_v25 = vmul.f32 %v2330_v63, %v1388_v55 }
 0x25b   : > { %v1401_v51 = vmul.f32 %v2332_v22, %v1389_v8  ;;  %v3739_v22 = vld [vmem:[#allocation12_spill] sm:$0xff] }
 0x25c   : > { %v1441_v32 = vrot.slane %v1400_v25, %v2570_v43  ;;  %v1457_v30 = vrot.slane %v1400_v25, %v3731_v48 }
 0x25d   : > { %v1445_v26 = vrot.slane %v1401_v51, %v2570_v43  ;;  %v1461_v35 = vrot.slane %v1401_v51, %v3731_v48  ;;  %v3181_v34 = vpop.permute.xlu1 %1678  ;;  %v3742_v51 = vld [vmem:[#allocation13_spill] sm:$0xff] }
 0x25e   : > { %v1446_v19 = vmul.f32 %v1441_v32, %v1436_v7  ;;  %v1462_v46 = vmul.f32 %v1457_v30, %v1452_v61  ;;  %v3745_v30 = vmov 19  }
 0x25f   : > { %v1447_v21 = vmul.f32 %v1445_v26, %v1436_v7  ;;  %v1463_v54 = vmul.f32 %v1461_v35, %v1452_v61  ;;  %v1566_v7 = vpop.permute.xlu0 %1565  ;;  %v1998_v35 = vld [vmem:[%s3659_s10] sm:$0xf] }
 0x260   : > { %v1448_v45 = vadd.f32 %v1446_v19, %v1432_v41  ;;  %v1573_v31 = vrot.slane %v1566_v7, %v1572_v3  ;;  %v3746_v19 = vmov 20  }
 0x261   : > { %v1449_v56 = vadd.f32 %v1447_v21, %v1433_v0  ;;  %v3747_v0 = vmov 21   ;;  %v3748_v21 = vld [vmem:[#allocation15_spill] sm:$0xff] }
 0x262   : > { %v1464_v47 = vadd.f32 %v1462_v46, %v1448_v45  ;;  %v2028_v11 = vpop.permute.xlu1 %2027  ;;  %v3749_v45 = vmov 24  }
 0x263   : > { %v1465_v42 = vadd.f32 %v1463_v54, %v1449_v56  ;;  %v3193_v24 = vrot.slane %v2028_v11, %v1572_v3  ;;  %v3216_v33 = vpop.permute.xlu0 %1645 }
 0x264   : > { %v1472_v27 = vmul.f32 %v1470_v6, %v1464_v47 }
 0x265   : > { %v1473_v49 = vmul.f32 %v1470_v6, %v1465_v42 }
 0x266   : > { %v1480_v20 = vadd.f32 %v1478_v40, %v1472_v27 }
 0x267   : > { %v3191_v52 = vadd.f32 %v1478_v40, %v1473_v49  ;;  %v1809_v14 = vpop.permute.xlu1 %1808  ;;  %v1832_v40 = vld [vmem:[%s3659_s10] sm:$0xf]  ;;  %v1705_v18 = vpop.permute.xlu0 %1704 }
 0x268   : > { %v2106_v38 = vadd.f32 %v3196_v2, %v1480_v20  ;;  %v1816_v55 = vrot.slane %v1809_v14, %v1572_v3  ;;  %v1712_v32 = vrot.slane %v1705_v18, %v1572_v3 }
 0x269   : > { %v1486_v8 = vcombine.low %v1480_v20, %v3191_v52  ;;  %v2107_v50 = vadd.f32 %v3201_v15, %v3191_v52  ;;  %v2335_v56 = vcombine.low %v3191_v52, %v3191_v52 }
 0x26a   : > { %2108 = vst [vmem:[%s3189_s21] sm:$0xf] %v2106_v38 }
 0x26b   : > { %1488 = vst [vmem:[#allocation3 + $0x4] sm:$0xff] %v1486_v8  ;;  %2109 = vst [vmem:[%s3189_s21 + $0x8] sm:$0xf] %v2107_v50  ;;  %v3209_v12 = vmul.f32 %v1816_v55, %v1486_v8  ;;  %v3212_v62 = vmul.f32 %v3193_v24, %v1486_v8  ;;  %v3229_v63 = vpop.permute.xlu0 %1696 }
 0x26f   : > { %v1913_v60 = vpop.permute.xlu0 %1912 }
 0x270   : > { %v1920_v25 = vrot.slane %v1913_v60, %v1572_v3 }
 0x272   : > { %v1489_v61 = vld [vmem:[#allocation3] sm:$0xff]  ;;  %v1653_v39 = vld [vmem:[#allocation3 + $0x8] sm:$0xf]  ;;  %v1923_v23 = vmul.f32 %v1920_v25, %v3742_v51  ;;  %v1922_v41 = vmul.f32 %v1920_v25, %v1486_v8 }
 0x273   : > { %1661 = vrot.lane.b32.xlu0 %v1653_v39, %s3735_s30  ;;  %1494 = vrot.lane.b32.xlu1 %v1489_v61, %s3736_s23  ;;  %v1490_v28 = vld [vmem:[#allocation3 + $0x8] sm:$0xf]  ;;  %v1493_v5 = vcombine.high %v1489_v61, %v1489_v61  ;;  %v1715_v26 = vmul.f32 %v1712_v32, %v1653_v39  ;;  %v1575_v44 = vmul.f32 %v1573_v31, %v1489_v61  ;;  %v3271_v54 = vpop.permute.xlu0 %1869 }
 0x274   : > { %v1576_v10 = vmul.f32 %v1573_v31, %v1490_v28  ;;  %v1714_v46 = vmul.f32 %v1712_v32, %v1489_v61  ;;  %v1926_v13 = vcombine.high %v1922_v41, %v1922_v41  ;;  %v2041_v31 = vcombine.high %v3212_v62, %v3212_v62 }
 0x275   : > { %v1579_v11 = vcombine.high %v1575_v44, %v1575_v44 }
 0x276   : > { %v1718_v6 = vcombine.high %v1714_v46, %v1714_v46 }
 0x277   : > { %1980 = vrot.lane.b32.xlu0 %v1486_v8, %s2371_s15  ;;  %1498 = vrot.lane.b32.xlu1 %v1490_v28, %s3736_s23  ;;  %v3275_v47 = vpop.permute.xlu0 %1984 }
 0x27b   : > { %1496 = vrot.lane.b32.xlu0 %v1493_v5, %s3736_s23  ;;  %1657 = vrot.lane.b32.xlu1 %v1489_v61, %s3735_s30  ;;  %v3278_v42 = vpop.permute.xlu0 %1742 }
 0x27f   : > { %1835 = vperm.xlu0 %2301, %v1832_v40   ;;  %1865 = vrot.lane.b32.xlu1 %v1486_v8, %s2369_s27  ;;  %v3282_v3 = vpop.permute.xlu0 %1760 }
 0x283   : > { %2303 = vset.pattern.permute.xlu0 %v3737_v1  ;;  %1771 = vrot.lane.b32.xlu1 %v1486_v8, %s2374_s18  ;;  %v3284_v27 = vpop.permute.xlu0 %1782 }
 0x284   : > { %1886 = vperm.xlu0 %2303, %v1883_v4  }
 0x287   : > { %1789 = vrot.lane.b32.xlu1 %v1486_v8, %s2375_s19  ;;  %v3286_v49 = vpop.permute.xlu0 %1800 }
 0x288   : > { %2304 = vset.pattern.permute.xlu0 %v3738_v9 }
 0x289   : > { %1904 = vperm.xlu0 %2304, %v3739_v22  }
 0x28b   : > { %1824 = vrot.lane.b32.xlu1 %v1486_v8, %s3740_s17 }
 0x28d   : > { %2305 = vset.pattern.permute.xlu0 %v3741_v57  ;;  %v2062_v57 = vld [vmem:[%s3659_s10] sm:$0xf] }
 0x28e   : > { %1950 = vperm.xlu0 %2305, %v1947_v17  }
 0x28f   : > { %1853 = vperm.xlu1 %2302, %v1850_v37   ;;  %v2080_v37 = vld [vmem:[%s3659_s10] sm:$0xf] }
 0x292   : > { %1931 = vrot.lane.b32.xlu0 %v1923_v23, %s2369_s27 }
 0x293   : > { %2309 = vset.pattern.permute.xlu0 %v3743_v29  ;;  %1842 = vrot.lane.b32.xlu1 %v1486_v8, %s3744_s22  ;;  %v3752_v29 = vmov 0  }
 0x294   : > { %2306 = vset.pattern.permute.xlu1 %v3745_v30 }
 0x296   : > { %1584 = vrot.lane.b32.xlu0 %v1576_v10, %s3736_s23  ;;  %v3753_v10 = vld [vmem:[#allocation14_spill] sm:$0xff] }
 0x297   : > { %1968 = vperm.xlu1 %2306, %v1965_v36   ;;  %v2038_v32 = vmul.f32 %v3193_v24, %v3753_v10  ;;  %v2195_v24 = vld [vmem:[%s3662_s13 + $0x3] ss:$8 sm:$0x3] }
 0x29a   : > { %1723 = vrot.lane.b32.xlu0 %v1715_v26, %s3735_s30 }
 0x29b   : > { %2307 = vset.pattern.permute.xlu1 %v3746_v19 }
 0x29c   : > { %2001 = vperm.xlu1 %2307, %v1998_v35  }
 0x29e   : > { %1927 = vrot.lane.b32.xlu0 %v1922_v41, %s2369_s27 }
 0x2a0   : > { %2308 = vset.pattern.permute.xlu1 %v3747_v0 }
 0x2a1   : > { %2019 = vperm.xlu1 %2308, %v3748_v21  }
 0x2a5   : > { %1580 = vrot.lane.b32.xlu1 %v1575_v44, %s3736_s23  ;;  %v3360_v44 = vrot.slane %v2195_v24, %v2570_v43 }
 0x2a6   : > { %2310 = vset.pattern.permute.xlu1 %v3749_v45  ;;  %v3363_v45 = vrot.slane %v2195_v24, %v3731_v48 }
 0x2a9   : > { %1659 = vrot.lane.b32.xlu1 %v1493_v5, %s3735_s30 }
 0x2ad   : > { %1719 = vrot.lane.b32.xlu1 %v1714_v46, %s3735_s30  ;;  %v2196_v46 = vld [vmem:[%s3662_s13 + $0x4] ss:$8 sm:$0x3] }
 0x2b1   : > { %1867 = vrot.lane.b32.xlu1 %v2335_v56, %s2369_s27 }
 0x2b5   : > { %1982 = vrot.lane.b32.xlu1 %v2335_v56, %s2371_s15 }
 0x2b9   : > { %1773 = vrot.lane.b32.xlu1 %v2335_v56, %s2374_s18 }
 0x2bd   : > { %1791 = vrot.lane.b32.xlu1 %v2335_v56, %s2375_s19 }
 0x2c1   : > { %1826 = vrot.lane.b32.xlu1 %v2335_v56, %s3740_s17 }
 0x2c5   : > { %1844 = vrot.lane.b32.xlu1 %v2335_v56, %s3744_s22 }
 0x2c9   : > { %1582 = vrot.lane.b32.xlu1 %v1579_v11, %s3736_s23 }
 0x2cd   : > { %1721 = vrot.lane.b32.xlu1 %v1718_v6, %s3735_s30 }
 0x2d1   : > { %1929 = vrot.lane.b32.xlu1 %v1926_v13, %s2369_s27  ;;  %v3374_v13 = vrot.slane %v2196_v46, %v2570_v43 }
 0x2e5   : > { %v1662_v20 = vpop.permute.xlu0 %1661  ;;  %v1495_v52 = vpop.permute.xlu1 %1494 }
 0x2e9   : > { %v1981_v14 = vpop.permute.xlu0 %1980  ;;  %v1499_v38 = vpop.permute.xlu1 %1498 }
 0x2ed   : > { %v1497_v55 = vpop.permute.xlu0 %1496  ;;  %v1658_v7 = vpop.permute.xlu1 %1657 }
 0x2ee   : > { %v1500_v8 = vsel %vm664_vm0, %v1495_v52, %v1497_v55  ;;  %v1501_v50 = vsel %vm664_vm0, %v1497_v55, %v1499_v38  ;;  %v3381_v38 = vrot.slane %v2196_v46, %v3731_v48 }
 0x2ef   : > { %1504 = vrot.lane.b32.xlu0 %v1500_v8, %s2374_s18  ;;  %1506 = vrot.lane.b32.xlu1 %v1501_v50, %s2374_s18 }
 0x2f1   : > { %v1866_v61 = vpop.permute.xlu1 %1865 }
 0x2f3   : > { %1536 = vrot.lane.b32.xlu0 %v1501_v50, %s2375_s19  ;;  %1534 = vrot.lane.b32.xlu1 %v1500_v8, %s2375_s19 }
 0x2f5   : > { %v1772_v39 = vpop.permute.xlu1 %1771 }
 0x2f7   : > { %1594 = vrot.lane.b32.xlu0 %v1501_v50, %s3740_s17  ;;  %1592 = vrot.lane.b32.xlu1 %v1500_v8, %s3740_s17 }
 0x2f9   : > { %v1790_v28 = vpop.permute.xlu1 %1789 }
 0x2fb   : > { %1622 = vrot.lane.b32.xlu0 %v1500_v8, %s3744_s22  ;;  %1624 = vrot.lane.b32.xlu1 %v1501_v50, %s3744_s22 }
 0x2fd   : > { %v1825_v5 = vpop.permute.xlu1 %1824 }
 0x30e   : > { %v3298_v40 = vpop.permute.xlu1 %1853 }
 0x312   : > { %v1843_v18 = vpop.permute.xlu1 %1842 }
 0x316   : > { %v3300_v4 = vpop.permute.xlu1 %1968 }
 0x31b   : > { %v3302_v1 = vpop.permute.xlu1 %2001 }
 0x31c   : > { %3750 = vst [vmem:[#allocation16_spill] sm:$0xff] %v3302_v1 }
 0x320   : > { %v3304_v9 = vpop.permute.xlu1 %2019 }
 0x321   : > { %3751 = vst [vmem:[#allocation10_spill] sm:$0xff] %v3304_v9 }
 0x324   : > { %v3306_v60 = vpop.permute.xlu1 %1580 }
 0x328   : > { %v1660_v22 = vpop.permute.xlu1 %1659 }
 0x329   : > { %v1663_v17 = vsel %vm863_vm1, %v1658_v7, %v1660_v22  ;;  %v3310_v25 = vsel %vm863_vm1, %v1660_v22, %v1662_v20 }
 0x32a   : > { %1669 = vrot.lane.b32.xlu0 %v3310_v25, %s2374_s18  ;;  %1667 = vrot.lane.b32.xlu1 %v1663_v17, %s2374_s18 }
 0x32c   : > { %v1720_v51 = vpop.permute.xlu1 %1719 }
 0x32e   : > { %2065 = vperm.xlu0 %2309, %v2062_v57   ;;  %2083 = vperm.xlu1 %2310, %v2080_v37  }
 0x330   : > { %v1868_v23 = vpop.permute.xlu1 %1867 }
 0x331   : > { %v1871_v36 = vsel %vm1114_vm2, %v1866_v61, %v1868_v23  ;;  %v1872_v35 = vsel %vm1114_vm2, %v1868_v23, %v3271_v54 }
 0x332   : > { %2044 = vrot.lane.b32.xlu0 %v2041_v31, %s2371_s15  ;;  %2042 = vrot.lane.b32.xlu1 %v3212_v62, %s2371_s15 }
 0x333   : > { %2311 = vset.pattern.permute.xlu0 %v3752_v29  ;;  %2312 = vset.pattern.permute.xlu1 %v3752_v29 }
 0x334   : > { %v1983_v30 = vpop.permute.xlu1 %1982 }
 0x335   : > { %v1986_v54 = vsel %vm1256_vm3, %v1981_v14, %v1983_v30  ;;  %v1836_v14 = vpop.permute.xlu0 %1835 }
 0x336   : > { %2046 = vrot.lane.b32.xlu1 %v2038_v32, %s2371_s15  ;;  %1893 = vrot.lane.b32.xlu0 %v1871_v36, %s2375_s19 }
 0x338   : > { %v1774_v26 = vpop.permute.xlu1 %1773 }
 0x339   : > { %v3337_v62 = vsel %vm675_vm5, %v1772_v39, %v1774_v26  ;;  %v3341_v41 = vsel %vm675_vm5, %v1774_v26, %v1772_v39 }
 0x33a   : > { %1685 = vrot.lane.b32.xlu1 %v1663_v17, %s2375_s19  ;;  %1941 = vrot.lane.b32.xlu0 %v1872_v35, %s3740_s17 }
 0x33c   : > { %v1792_v19 = vpop.permute.xlu1 %1791 }
 0x33d   : > { %v3350_v0 = vsel %vm706_vm4, %v1790_v28, %v1792_v19  ;;  %v3354_v21 = vsel %vm706_vm4, %v1792_v19, %v1790_v28 }
 0x33e   : > { %1687 = vrot.lane.b32.xlu1 %v3310_v25, %s2375_s19  ;;  %1959 = vrot.lane.b32.xlu0 %v1872_v35, %s3744_s22 }
 0x340   : > { %v1827_v56 = vpop.permute.xlu1 %1826 }
 0x341   : > { %v1828_v11 = vsel %vm779_vm6, %v1825_v5, %v1827_v56  ;;  %v1829_v6 = vsel %vm779_vm6, %v1827_v56, %v1825_v5  ;;  %v2194_v56 = vld [vmem:[%s3662_s13 + $0x1] ss:$8 sm:$0x3] }
 0x342   : > { %v1830_v20 = vmul.f32 %v1828_v11, %v3360_v44  ;;  %v1831_v52 = vmul.f32 %v1829_v6, %v3363_v45  ;;  %1731 = vrot.lane.b32.xlu1 %v1663_v17, %s3740_s17  ;;  %1990 = vrot.lane.b32.xlu0 %v1986_v54, %s2374_s18  ;;  %v1510_v6 = vld [vmem:[%s3662_s13] ss:$8 sm:$0x3]  ;;  %v3472_v15 = vrot.slane %v2194_v56, %v3731_v48 }
 0x344   : > { %v3383_v55 = vmul.f32 %v1836_v14, %v1830_v20  ;;  %v3385_v8 = vmul.f32 %v1836_v14, %v1831_v52  ;;  %v1845_v50 = vpop.permute.xlu1 %1844  ;;  %v3455_v52 = vrot.slane %v2194_v56, %v2570_v43 }
 0x345   : > { %v1846_v7 = vsel %vm811_vm7, %v1843_v18, %v1845_v50  ;;  %v1847_v61 = vsel %vm811_vm7, %v1845_v50, %v1843_v18  ;;  %v1987_v18 = vsel %vm1256_vm3, %v1983_v30, %v3275_v47  ;;  %v2098_v47 = vld [vmem:[%s3661_s12] sm:$0xf]  ;;  %v3460_v50 = vrot.slane %v1510_v6, %v2570_v43 }
 0x346   : > { %v1848_v39 = vmul.f32 %v1846_v7, %v3374_v13  ;;  %v1849_v28 = vmul.f32 %v1847_v61, %v3381_v38  ;;  %1733 = vrot.lane.b32.xlu1 %v3310_v25, %s3740_s17  ;;  %2008 = vrot.lane.b32.xlu0 %v1986_v54, %s2375_s19 }
 0x348   : > { %v3397_v5 = vmul.f32 %v3298_v40, %v1848_v39  ;;  %v3400_v22 = vmul.f32 %v3298_v40, %v1849_v28  ;;  %v3402_v57 = vpop.permute.xlu1 %1582  ;;  %v2090_v40 = vld [vmem:[%s3660_s11] sm:$0xf] }
 0x34a   : > { %1749 = vrot.lane.b32.xlu1 %v1663_v17, %s3744_s22  ;;  %2056 = vrot.lane.b32.xlu0 %v1987_v18, %s3740_s17  ;;  %v3432_v17 = vpop.permute.xlu0 %1886 }
 0x34c   : > { %v3408_v37 = vpop.permute.xlu1 %1721 }
 0x34d   : > { %v3412_v23 = vsel %vm863_vm1, %v1720_v51, %v3408_v37 }
 0x34e   : > { %1751 = vrot.lane.b32.xlu1 %v3310_v25, %s3744_s22  ;;  %2072 = vrot.lane.b32.xlu0 %v1986_v54, %s3744_s22  ;;  %v3434_v25 = vpop.permute.xlu0 %1904 }
 0x350   : > { %v3440_v10 = vpop.permute.xlu1 %1929 }
 0x352   : > { %1875 = vrot.lane.b32.xlu1 %v1871_v36, %s2374_s18  ;;  %2093 = vperm.xlu0 %2311, %v2090_v40   ;;  %v3436_v51 = vpop.permute.xlu0 %1950 }
 0x356   : > { %1877 = vrot.lane.b32.xlu1 %v1872_v35, %s2374_s18  ;;  %v3438_v31 = vpop.permute.xlu0 %1931 }
 0x35a   : > { %1895 = vrot.lane.b32.xlu1 %v1872_v35, %s2375_s19  ;;  %v1585_v29 = vpop.permute.xlu0 %1584 }
 0x35e   : > { %1939 = vrot.lane.b32.xlu1 %v1871_v36, %s3740_s17  ;;  %v3442_v32 = vpop.permute.xlu0 %1723 }
 0x361   : > { %v1507_v30 = vpop.permute.xlu1 %1506 }
 0x362   : > { %1957 = vrot.lane.b32.xlu1 %v1871_v36, %s3744_s22  ;;  %v3444_v36 = vpop.permute.xlu0 %1927 }
 0x365   : > { %v1535_v26 = vpop.permute.xlu1 %1534 }
 0x366   : > { %1992 = vrot.lane.b32.xlu1 %v1987_v18, %s2374_s18  ;;  %v1505_v35 = vpop.permute.xlu0 %1504 }
 0x367   : > { %v1509_v14 = vsel %vm675_vm5, %v1507_v30, %v1505_v35 }
 0x368   : > { %v1522_v39 = vmul.f32 %v3460_v50, %v1509_v14 }
 0x369   : > { %v1593_v24 = vpop.permute.xlu1 %1592 }
 0x36a   : > { %2010 = vrot.lane.b32.xlu1 %v1987_v18, %s2375_s19  ;;  %v1537_v19 = vpop.permute.xlu0 %1536  ;;  %v1530_v2 = vmul.f32 %v3206_v58, %v1522_v39 }
 0x36b   : > { %v1539_v20 = vsel %vm706_vm4, %v1537_v19, %v1535_v26 }
 0x36c   : > { %v1552_v7 = vmul.f32 %v3455_v52, %v1539_v20  ;;  %v1508_v20 = vsel %vm675_vm5, %v1505_v35, %v1507_v30 }
 0x36d   : > { %v1625_v46 = vpop.permute.xlu1 %1624 }
 0x36e   : > { %2054 = vrot.lane.b32.xlu1 %v1986_v54, %s3740_s17  ;;  %v1595_v54 = vpop.permute.xlu0 %1594  ;;  %v1560_v40 = vmul.f32 %v3165_v53, %v1552_v7 }
 0x36f   : > { %v1596_v43 = vsel %vm779_vm6, %v1593_v24, %v1595_v54 }
 0x370   : > { %v1562_v7 = vadd.f32 %v1560_v40, %v1530_v2  ;;  %v1610_v56 = vmul.f32 %v3360_v44, %v1596_v43 }
 0x372   : > { %2074 = vrot.lane.b32.xlu1 %v1987_v18, %s3744_s22  ;;  %v1623_v28 = vpop.permute.xlu0 %1622  ;;  %v1538_v18 = vsel %vm706_vm4, %v1535_v26, %v1537_v19  ;;  %v1618_v2 = vmul.f32 %v3169_v59, %v1610_v56 }
 0x373   : > { %v1553_v26 = vmul.f32 %v3472_v15, %v1538_v18  ;;  %v1626_v19 = vsel %vm811_vm7, %v1623_v28, %v1625_v46  ;;  %v1627_v1 = vsel %vm811_vm7, %v1625_v46, %v1623_v28 }
 0x374   : > { %v1640_v35 = vmul.f32 %v3374_v13, %v1626_v19 }
 0x376   : > { %2101 = vperm.xlu1 %2312, %v2098_v47  }
 0x39c   : > { %v1668_v11 = vpop.permute.xlu1 %1667  ;;  %v1670_v14 = vpop.permute.xlu0 %1669 }
 0x39d   : > { %v1672_v30 = vsel %vm675_vm5, %v1670_v14, %v1668_v11  ;;  %v1671_v56 = vsel %vm675_vm5, %v1668_v11, %v1670_v14 }
 0x39e   : > { %v1673_v18 = vmul.f32 %v1672_v30, %v3460_v50 }
 0x3ad   : > { %v3463_v61 = vpop.permute.xlu1 %2083  ;;  %v3518_v14 = vpop.permute.xlu0 %2065 }
 0x3ae   : > { %3754 = vst [vmem:[#allocation9_spill] sm:$0xff] %v3463_v61  ;;  %v3480_v61 = vrot.slane %v1510_v6, %v3731_v48  ;;  %v1586_v48 = vsel %vm664_vm0, %v3306_v60, %v3402_v57  ;;  %v1561_v6 = vmul.f32 %v3165_v53, %v1553_v26  ;;  %v1681_v26 = vmul.f32 %v3181_v34, %v1673_v18 }
 0x3af   : > { %v1590_v39 = vadd.f32 %v1586_v48, %v1562_v7 }
 0x3b0   : > { %v1523_v9 = vmul.f32 %v3480_v61, %v1508_v20  ;;  %v1597_v20 = vsel %vm779_vm6, %v1595_v54, %v1593_v24  ;;  %v1641_v24 = vmul.f32 %v3381_v38, %v1627_v1  ;;  %v1674_v48 = vmul.f32 %v1671_v56, %v3480_v61 }
 0x3b1   : > { %v3469_v47 = vpop.permute.xlu1 %2042  ;;  %v1611_v60 = vmul.f32 %v3363_v45, %v1597_v20  ;;  %v1620_v53 = vadd.f32 %v1618_v2, %v1590_v39 }
 0x3b2   : > { %3755 = vst [vmem:[#allocation6_spill] sm:$0xff] %v3469_v47  ;;  %v1531_v43 = vmul.f32 %v3206_v58, %v1523_v9  ;;  %v1587_v9 = vsel %vm664_vm0, %v3402_v57, %v1585_v29  ;;  %v1649_v57 = vmul.f32 %v3216_v33, %v1641_v24  ;;  %v1682_v2 = vmul.f32 %v3181_v34, %v1674_v48 }
 0x3b3   : > { %v1777_v24 = vmul.f32 %v3341_v41, %v3460_v50  ;;  %v1795_v41 = vmul.f32 %v3354_v21, %v3455_v52 }
 0x3b4   : > { %v1563_v19 = vadd.f32 %v1561_v6, %v1531_v43 }
 0x3b5   : > { %v3486_v47 = vpop.permute.xlu1 %2046 }
 0x3b6   : > { %3756 = vst [vmem:[#allocation7_spill] sm:$0xff] %v3486_v47  ;;  %v1648_v47 = vmul.f32 %v3216_v33, %v1640_v35  ;;  %v1591_v28 = vadd.f32 %v1587_v9, %v1563_v19  ;;  %v1619_v35 = vmul.f32 %v3169_v59, %v1611_v60  ;;  %v3529_v19 = vpop.permute.xlu0 %2044 }
 0x3b8   : > { %v1650_v54 = vadd.f32 %v1648_v47, %v1620_v53  ;;  %v1621_v47 = vadd.f32 %v1619_v35, %v1591_v28  ;;  %v1778_v28 = vmul.f32 %v3337_v62, %v3480_v61  ;;  %v1785_v62 = vmul.f32 %v3284_v27, %v1777_v24 }
 0x3b9   : > { %v1686_v40 = vpop.permute.xlu1 %1685 }
 0x3ba   : > { %v1683_v11 = vadd.f32 %v1681_v26, %v1650_v54  ;;  %v1651_v20 = vadd.f32 %v1649_v57, %v1621_v47  ;;  %v1786_v57 = vmul.f32 %v3284_v27, %v1778_v28 }
 0x3bc   : > { %v1684_v60 = vadd.f32 %v1682_v2, %v1651_v20  ;;  %v1803_v2 = vmul.f32 %v3286_v49, %v1795_v41 }
 0x3bd   : > { %v1688_v7 = vpop.permute.xlu1 %1687 }
 0x3be   : > { %v1690_v58 = vsel %vm706_vm4, %v1688_v7, %v1686_v40  ;;  %v1689_v30 = vsel %vm706_vm4, %v1686_v40, %v1688_v7 }
 0x3bf   : > { %v1691_v46 = vmul.f32 %v1690_v58, %v3455_v52  ;;  %v1692_v1 = vmul.f32 %v1689_v30, %v3472_v15 }
 0x3c1   : > { %v1699_v6 = vmul.f32 %v3229_v63, %v1691_v46  ;;  %v1732_v39 = vpop.permute.xlu1 %1731  ;;  %v1700_v33 = vmul.f32 %v3229_v63, %v1692_v1  ;;  %v1726_v63 = vsel %vm863_vm1, %v3408_v37, %v3442_v32  ;;  %v1796_v37 = vmul.f32 %v3350_v0, %v3472_v15 }
 0x3c3   : > { %v1701_v29 = vadd.f32 %v1699_v6, %v1683_v11  ;;  %v1702_v7 = vadd.f32 %v1700_v33, %v1684_v60  ;;  %v1804_v21 = vmul.f32 %v3286_v49, %v1796_v37 }
 0x3c5   : > { %v1729_v18 = vadd.f32 %v3412_v23, %v1701_v29  ;;  %v1734_v40 = vpop.permute.xlu1 %1733  ;;  %v1894_v23 = vpop.permute.xlu0 %1893  ;;  %v1730_v30 = vadd.f32 %v1726_v63, %v1702_v7 }
 0x3c6   : > { %v1735_v59 = vsel %vm779_vm6, %v1732_v39, %v1734_v40  ;;  %v1736_v43 = vsel %vm779_vm6, %v1734_v40, %v1732_v39 }
 0x3c7   : > { %v1737_v53 = vmul.f32 %v1735_v59, %v3360_v44  ;;  %v1738_v26 = vmul.f32 %v1736_v43, %v3363_v45  ;;  %v1820_v43 = vcombine.high %v3209_v12, %v3209_v12 }
 0x3c9   : > { %v1750_v34 = vpop.permute.xlu1 %1749  ;;  %v1745_v56 = vmul.f32 %v3278_v42, %v1737_v53  ;;  %v1746_v58 = vmul.f32 %v3278_v42, %v1738_v26  ;;  %v1942_v1 = vpop.permute.xlu0 %1941 }
 0x3cb   : > { %v1747_v32 = vadd.f32 %v1745_v56, %v1729_v18  ;;  %v1748_v48 = vadd.f32 %v1746_v58, %v1730_v30 }
 0x3cd   : > { %v1752_v9 = vpop.permute.xlu1 %1751  ;;  %v1960_v33 = vpop.permute.xlu0 %1959 }
 0x3ce   : > { %v1753_v54 = vsel %vm811_vm7, %v1750_v34, %v1752_v9  ;;  %v1754_v46 = vsel %vm811_vm7, %v1752_v9, %v1750_v34 }
 0x3cf   : > { %v1755_v42 = vmul.f32 %v1753_v54, %v3374_v13  ;;  %v1756_v35 = vmul.f32 %v1754_v46, %v3381_v38 }
 0x3d1   : > { %v1763_v11 = vmul.f32 %v3282_v3, %v1755_v42  ;;  %v1764_v6 = vmul.f32 %v3282_v3, %v1756_v35  ;;  %v1876_v39 = vpop.permute.xlu1 %1875  ;;  %v1991_v35 = vpop.permute.xlu0 %1990 }
 0x3d3   : > { %v1765_v29 = vadd.f32 %v1763_v11, %v1747_v32  ;;  %v1766_v47 = vadd.f32 %v1764_v6, %v1748_v48 }
 0x3d5   : > { %v1787_v40 = vadd.f32 %v1785_v62, %v1765_v29  ;;  %v1788_v0 = vadd.f32 %v1786_v57, %v1766_v47  ;;  %v1878_v18 = vpop.permute.xlu1 %1877 }
 0x3d6   : > { %v1879_v59 = vsel %vm675_vm5, %v1876_v39, %v1878_v18  ;;  %v1880_v3 = vsel %vm675_vm5, %v1878_v18, %v1876_v39 }
 0x3d7   : > { %v1805_v27 = vadd.f32 %v1803_v2, %v1787_v40  ;;  %v1806_v20 = vadd.f32 %v1804_v21, %v1788_v0  ;;  %v1881_v49 = vmul.f32 %v1880_v3, %v3460_v50  ;;  %v1882_v26 = vmul.f32 %v1879_v59, %v3480_v61 }
 0x3d9   : > { %v1822_v60 = vadd.f32 %v3209_v12, %v1805_v27  ;;  %v1823_v53 = vadd.f32 %v1820_v43, %v1806_v20  ;;  %v1896_v34 = vpop.permute.xlu1 %1895  ;;  %v1889_v46 = vmul.f32 %v3432_v17, %v1881_v49  ;;  %v1890_v28 = vmul.f32 %v3432_v17, %v1882_v26  ;;  %v3757_v43 = vld [vmem:[#allocation16_spill] sm:$0xff] }
 0x3da   : > { %v1897_v7 = vsel %vm706_vm4, %v1894_v23, %v1896_v34  ;;  %v1898_v56 = vsel %vm706_vm4, %v1896_v34, %v1894_v23  ;;  %v1933_v17 = vsel %vm1114_vm2, %v3444_v36, %v3440_v10 }
 0x3db   : > { %v1840_v58 = vadd.f32 %v3383_v55, %v1822_v60  ;;  %v1841_v9 = vadd.f32 %v3385_v8, %v1823_v53  ;;  %v1899_v24 = vmul.f32 %v1898_v56, %v3455_v52  ;;  %v1900_v12 = vmul.f32 %v1897_v7, %v3472_v15  ;;  %v3758_v56 = vld [vmem:[#allocation10_spill] sm:$0xff] }
 0x3dd   : > { %v1858_v63 = vadd.f32 %v3397_v5, %v1840_v58  ;;  %v1859_v54 = vadd.f32 %v3400_v22, %v1841_v9  ;;  %v1940_v30 = vpop.permute.xlu1 %1939  ;;  %v1907_v42 = vmul.f32 %v3434_v25, %v1899_v24  ;;  %v1908_v23 = vmul.f32 %v3434_v25, %v1900_v12 }
 0x3de   : > { %v1943_v55 = vsel %vm779_vm6, %v1940_v30, %v1942_v1  ;;  %v1944_v8 = vsel %vm779_vm6, %v1942_v1, %v1940_v30  ;;  %v1934_v25 = vsel %vm1114_vm2, %v3440_v10, %v3438_v31  ;;  %v2009_v31 = vpop.permute.xlu0 %2008 }
 0x3df   : > { %v1891_v41 = vadd.f32 %v1889_v46, %v1858_v63  ;;  %v1892_v5 = vadd.f32 %v1890_v28, %v1859_v54  ;;  %v1945_v22 = vmul.f32 %v1943_v55, %v3360_v44  ;;  %v1946_v37 = vmul.f32 %v1944_v8, %v3363_v45 }
 0x3e1   : > { %v1909_v32 = vadd.f32 %v1907_v42, %v1891_v41  ;;  %v1910_v48 = vadd.f32 %v1908_v23, %v1892_v5  ;;  %v1958_v11 = vpop.permute.xlu1 %1957  ;;  %v1953_v6 = vmul.f32 %v3436_v51, %v1945_v22  ;;  %v1954_v39 = vmul.f32 %v3436_v51, %v1946_v37  ;;  %v3760_v42 = vld [vmem:[#allocation7_spill] sm:$0xff] }
 0x3e2   : > { %v1961_v62 = vsel %vm811_vm7, %v1958_v11, %v1960_v33  ;;  %v1962_v57 = vsel %vm811_vm7, %v1960_v33, %v1958_v11  ;;  %v2057_v49 = vpop.permute.xlu0 %2056  ;;  %v2049_v23 = vsel %vm1256_vm3, %v3529_v19, %v3760_v42 }
 0x3e3   : > { %v1937_v1 = vadd.f32 %v1933_v17, %v1909_v32  ;;  %v1938_v29 = vadd.f32 %v1934_v25, %v1910_v48  ;;  %v1963_v36 = vmul.f32 %v1961_v62, %v3374_v13  ;;  %v1964_v47 = vmul.f32 %v1962_v57, %v3381_v38  ;;  %v3761_v32 = vld [vmem:[#allocation9_spill] sm:$0xff] }
 0x3e5   : > { %v1955_v10 = vadd.f32 %v1953_v6, %v1937_v1  ;;  %v1956_v2 = vadd.f32 %v1954_v39, %v1938_v29  ;;  %v1993_v21 = vpop.permute.xlu1 %1992  ;;  %v1971_v0 = vmul.f32 %v3300_v4, %v1963_v36  ;;  %v1972_v18 = vmul.f32 %v3300_v4, %v1964_v47  ;;  %v3763_v36 = vld [vmem:[#allocation11_spill] sm:$0xff] }
 0x3e6   : > { %v1994_v40 = vsel %vm675_vm5, %v1991_v35, %v1993_v21  ;;  %v1995_v51 = vsel %vm675_vm5, %v1993_v21, %v1991_v35  ;;  %v2073_v55 = vpop.permute.xlu0 %2072  ;;  %v2112_v29 = vrot.slane %v3762_v16, 4 }
 0x3e7   : > { %v1996_v59 = vmul.f32 %v1995_v51, %v3460_v50  ;;  %v1997_v3 = vmul.f32 %v1994_v40, %v3480_v61  ;;  %v1973_v26 = vadd.f32 %v1971_v0, %v1955_v10  ;;  %v1974_v34 = vadd.f32 %v1972_v18, %v1956_v2 }
 0x3e9   : > { %v2004_v27 = vmul.f32 %v3757_v43, %v1996_v59  ;;  %v2005_v20 = vmul.f32 %v3757_v43, %v1997_v3  ;;  %v2011_v33 = vpop.permute.xlu1 %2010 }
 0x3ea   : > { %v2012_v60 = vsel %vm706_vm4, %v2009_v31, %v2011_v33  ;;  %v2013_v53 = vsel %vm706_vm4, %v2011_v33, %v2009_v31  ;;  %v2094_v11 = vpop.permute.xlu0 %2093 }
 0x3eb   : > { %v2014_v4 = vmul.f32 %v2013_v53, %v3455_v52  ;;  %v2015_v50 = vmul.f32 %v2012_v60, %v3472_v15  ;;  %v2006_v7 = vadd.f32 %v2004_v27, %v1973_v26  ;;  %v2007_v61 = vadd.f32 %v2005_v20, %v1974_v34  ;;  %v3759_v15 = vld [vmem:[#allocation6_spill] sm:$0xff] }
 0x3ec   : > { %v2048_v30 = vsel %vm1256_vm3, %v3759_v15, %v3529_v19 }
 0x3ed   : > { %v2022_v58 = vmul.f32 %v3758_v56, %v2014_v4  ;;  %v2023_v9 = vmul.f32 %v3758_v56, %v2015_v50  ;;  %v2055_v24 = vpop.permute.xlu1 %2054 }
 0x3ee   : > { %v2058_v12 = vsel %vm779_vm6, %v2055_v24, %v2057_v49  ;;  %v2059_v63 = vsel %vm779_vm6, %v2057_v49, %v2055_v24 }
 0x3ef   : > { %v2024_v54 = vadd.f32 %v2022_v58, %v2006_v7  ;;  %v2025_v46 = vadd.f32 %v2023_v9, %v2007_v61  ;;  %v2060_v28 = vmul.f32 %v2058_v12, %v3360_v44  ;;  %v2061_v52 = vmul.f32 %v2059_v63, %v3363_v45 }
 0x3f1   : > { %v2068_v8 = vmul.f32 %v3518_v14, %v2060_v28  ;;  %v2069_v35 = vmul.f32 %v3518_v14, %v2061_v52  ;;  %v2075_v41 = vpop.permute.xlu1 %2074  ;;  %v2052_v5 = vadd.f32 %v2048_v30, %v2024_v54  ;;  %v2053_v22 = vadd.f32 %v2049_v23, %v2025_v46 }
 0x3f2   : > { %v2076_v44 = vsel %vm811_vm7, %v2073_v55, %v2075_v41  ;;  %v2077_v45 = vsel %vm811_vm7, %v2075_v41, %v2073_v55 }
 0x3f3   : > { %v2078_v37 = vmul.f32 %v2076_v44, %v3374_v13  ;;  %v2079_v17 = vmul.f32 %v2077_v45, %v3381_v38  ;;  %v2070_v25 = vadd.f32 %v2068_v8, %v2052_v5  ;;  %v2071_v19 = vadd.f32 %v2069_v35, %v2053_v22 }
 0x3f4   : > { %v2113_v13 = vrot.slane %v3763_v36, 4 }
 0x3f5   : > { %v2086_v48 = vmul.f32 %v3761_v32, %v2078_v37  ;;  %v2087_v14 = vmul.f32 %v3761_v32, %v2079_v17  ;;  %v2102_v62 = vpop.permute.xlu1 %2101 }
 0x3f7   : > { %v2088_v6 = vadd.f32 %v2086_v48, %v2070_v25  ;;  %v2089_v39 = vadd.f32 %v2087_v14, %v2071_v19 }
 0x3f9   : > { %v2096_v57 = vmul.f32 %v2094_v11, %v2088_v6  ;;  %v2097_v1 = vmul.f32 %v2094_v11, %v2089_v39 }
 0x3fb   : > { %v2104_v47 = vadd.f32 %v2102_v62, %v2096_v57  ;;  %v2105_v38 = vadd.f32 %v2102_v62, %v2097_v1 }
 0x3fd   : > { %v2116_v31 = vadd.f32 %v2112_v29, %v2104_v47  ;;  %v2117_v10 = vadd.f32 %v2113_v13, %v2105_v38 }
 0x3ff   : > { %v2120_v2 = vrot.slane %v2116_v31, 4  ;;  %v2121_v21 = vrot.slane %v2117_v10, 4 }
 0x401   : > { %2124 = vst [vmem:[%s3189_s21] sm:$0xf0] %v2120_v2  ;;  %2125 = vst [vmem:[%s3189_s21 + $0x8] sm:$0xf0] %v2121_v21 }
 0x402 PF: > { %s24_s29 = sadd.s32 1, %s2342_s29  }
 0x403   : > { %p21_p4 = scmp.ge.s32.totalorder %s24_s29, 4  }
 0x405   :  { %23 = sbr.rel (!%p21_p4) target bundleno = 1 (0x1), region = 109 }

</bundles_post_ra>
